<compile_context>
chip_gen: v6e
topology: v6e:2x2x1
jax: 0.10.0
libtpu: 0.0.40
codegen_flags: <defaults>
</compile_context>

<pallas_src>
import jax
import jax.numpy as jnp
from jax.experimental import pallas as pl
from jax.experimental.pallas import tpu as pltpu

BN_EPS = 1e-5
LANE = 128


def _round_up(v, m):
    return (v + m - 1) // m * m


def conv_bn_relu(x, weight, bias, gamma, beta, *, stride=1, padding=0, dilation=1):
    """Forward pass of Conv2d -> BatchNorm2d(training) -> ReLU.

    x:      (N, C_in, H, W) float32 (NCHW, PyTorch layout)
    weight: (C_out, C_in, KH, KW)
    bias:   (C_out,) - accepted for interface parity but unused: a per-channel
            constant is cancelled exactly by the BN mean subtraction.
    gamma, beta: (C_out,) BatchNorm affine parameters.
    """
    del bias  # dead work under training-mode BatchNorm (perf feedback)

    N, C_in, H, W = x.shape
    C_out, _, KH, KW = weight.shape
    H_out = (H + 2 * padding - dilation * (KH - 1) - 1) // stride + 1
    W_out = (W + 2 * padding - dilation * (KW - 1) - 1) // stride + 1
    H_pad, W_pad = H + 2 * padding, W + 2 * padding

    # Lane-dense channel padding: pad C_in and C_out to multiples of 128 so
    # vregs are full and output stores are unmasked. Padded output channels
    # have zero weights and are sliced off after the call.
    C_in_p = _round_up(C_in, LANE)
    C_out_p = _round_up(C_out, LANE)
    TC = LANE                       # C_out tile per grid step ("parallel" axis)
    num_co = C_out_p // TC

    # NCHW -> NHWC (channels on lanes), zero-pad spatially for `padding`.
    x_nhwc = jnp.transpose(x, (0, 2, 3, 1)).astype(jnp.float32)
    x_p = jnp.pad(x_nhwc, ((0, 0), (padding, padding), (padding, padding),
                           (0, C_in_p - C_in)))
    # (C_out, C_in, KH, KW) -> (KH, KW, C_in_p, C_out_p): patch @ W on the MXU.
    w = jnp.transpose(weight, (2, 3, 1, 0)).astype(jnp.float32)
    w = jnp.pad(w, ((0, 0), (0, 0), (0, C_in_p - C_in), (0, C_out_p - C_out)))
    gamma_p = jnp.pad(gamma.astype(jnp.float32), (0, C_out_p - C_out),
                      constant_values=1.0).reshape(1, C_out_p)
    beta_p = jnp.pad(beta.astype(jnp.float32),
                     (0, C_out_p - C_out)).reshape(1, C_out_p)

    m_total = N * H_out * W_out     # elements per channel for the BN stats

    # ---------------- kernel 1: conv (implicit GEMM) + BN statistics ---------
    def conv_stats_kernel(x_ref, w_ref, g_ref, b_ref, y_ref, ss_ref):
        n = pl.program_id(1)

        @pl.when(n == 0)
        def _init():
            ss_ref[...] = jnp.zeros_like(ss_ref)

        acc = jnp.zeros((H_out * W_out, TC), jnp.float32)
        for kh in range(KH):                      # small static unroll
            for kw in range(KW):
                h0 = kh * dilation
                w0 = kw * dilation
                if stride == 1:
                    patch = x_ref[0, h0:h0 + H_out, w0:w0 + W_out, :]
                else:
                    # stride > 1 path (not exercised by the demo below)
                    patch = x_ref[0, pl.ds(h0, H_out, stride),
                                  pl.ds(w0, W_out, stride), :]
                patch = patch.reshape(H_out * W_out, C_in_p)
                acc += jnp.dot(patch, w_ref[kh, kw],
                               preferred_element_type=jnp.float32)
        # conv bias intentionally omitted: cancelled by BN mean subtraction.

        y_ref[0] = acc.reshape(H_out, W_out, TC)

        # Single-pass BN statistics: accumulate sum and sum of squares.
        ysum = jnp.sum(acc, axis=0, keepdims=True)          # (1, TC)
        ysq = jnp.sum(acc * acc, axis=0, keepdims=True)     # (1, TC)
        ss_ref[...] = ss_ref[...] + jnp.concatenate([ysum, ysq], axis=0)

        # Finalize per-channel scale / shift once, on the last batch step.
        @pl.when(n == pl.num_programs(1) - 1)
        def _finalize():
            inv_m = 1.0 / float(m_total)
            s = ss_ref[...]                                  # (2, TC)
            mean = s[0:1, :] * inv_m
            var = s[1:2, :] * inv_m - mean * mean            # E[y^2] - E[y]^2
            scale = g_ref[...] * jax.lax.rsqrt(var + BN_EPS)
            shift = b_ref[...] - mean * scale
            ss_ref[...] = jnp.concatenate([scale, shift], axis=0)

    y_pre, scale_shift = pl.pallas_call(
        conv_stats_kernel,
        out_shape=(
            jax.ShapeDtypeStruct((N, H_out, W_out, C_out_p), jnp.float32),
            jax.ShapeDtypeStruct((2, C_out_p), jnp.float32),
        ),
        grid_spec=pltpu.PrefetchScalarGridSpec(
            num_scalar_prefetch=0,
            grid=(num_co, N),          # C_out tiles parallel, batch is the BN reduction
            in_specs=[
                pl.BlockSpec((1, H_pad, W_pad, C_in_p), lambda co, n: (n, 0, 0, 0)),
                pl.BlockSpec((KH, KW, C_in_p, TC), lambda co, n: (0, 0, 0, co)),
                pl.BlockSpec((1, TC), lambda co, n: (0, co)),
                pl.BlockSpec((1, TC), lambda co, n: (0, co)),
            ],
            out_specs=[
                pl.BlockSpec((1, H_out, W_out, TC), lambda co, n: (n, 0, 0, co)),
                pl.BlockSpec((2, TC), lambda co, n: (0, co)),
            ],
        ),
        compiler_params=pltpu.CompilerParams(
            dimension_semantics=("parallel", "arbitrary")),
    )(x_p, w, gamma_p, beta_p)

    # ---------------- kernel 2: apply y * scale + shift, ReLU ----------------
    def bn_relu_kernel(y_ref, ss_ref, o_ref):
        ss = ss_ref[...]                          # (2, TC): row0=scale, row1=shift
        scale = ss[0:1, :].reshape(1, 1, TC)
        shift = ss[1:2, :].reshape(1, 1, TC)
        o_ref[0] = jnp.maximum(y_ref[0] * scale + shift, 0.0).astype(o_ref.dtype)

    out = pl.pallas_call(
        bn_relu_kernel,
        out_shape=jax.ShapeDtypeStruct((N, H_out, W_out, C_out_p), jnp.float32),
        grid_spec=pltpu.PrefetchScalarGridSpec(
            num_scalar_prefetch=0,
            grid=(num_co, N),
            in_specs=[
                pl.BlockSpec((1, H_out, W_out, TC), lambda co, n: (n, 0, 0, co)),
                pl.BlockSpec((2, TC), lambda co, n: (0, co)),
            ],
            out_specs=pl.BlockSpec((1, H_out, W_out, TC),
                                   lambda co, n: (n, 0, 0, co)),
        ),
        compiler_params=pltpu.CompilerParams(
            dimension_semantics=("parallel", "parallel")),
    )(y_pre, scale_shift)

    # Strip channel padding and return to NCHW.
    return jnp.transpose(out[..., :C_out], (0, 3, 1, 2))


if __name__ == "__main__":
    # Small shapes consistent with the module: x is (N, C_in, H, W).
    N, C_IN, C_OUT, H, W = 2, 4, 8, 16, 16
    K, STRIDE, PAD, DIL = 3, 1, 1, 1

    key = jax.random.PRNGKey(0)
    k_x, k_w = jax.random.split(key)

    x = jax.random.normal(k_x, (N, C_IN, H, W), dtype=jnp.float32)

    # _initialize_weights(): xavier_uniform_ conv weight, bias = 0;
    # BatchNorm2d defaults: gamma = 1, beta = 0, training mode.
    fan_in, fan_out = C_IN * K * K, C_OUT * K * K
    bound = (6.0 / (fan_in + fan_out)) ** 0.5
    weight = jax.random.uniform(k_w, (C_OUT, C_IN, K, K), dtype=jnp.float32,
                                minval=-bound, maxval=bound)
    bias = jnp.zeros((C_OUT,), dtype=jnp.float32)
    gamma = jnp.ones((C_OUT,), dtype=jnp.float32)
    beta = jnp.zeros((C_OUT,), dtype=jnp.float32)

    out = conv_bn_relu(x, weight, bias, gamma, beta,
                       stride=STRIDE, padding=PAD, dilation=DIL)
    out = jax.block_until_ready(out)

    # Pure-JAX reference of the module's forward pass.
    y = jax.lax.conv_general_dilated(
        x, weight, window_strides=(STRIDE, STRIDE),
        padding=[(PAD, PAD), (PAD, PAD)],
        rhs_dilation=(DIL, DIL),
        dimension_numbers=("NCHW", "OIHW", "NCHW"),
        precision=jax.lax.Precision.HIGHEST,
    ) + bias.reshape(1, -1, 1, 1)
    m = y.mean(axis=(0, 2, 3), keepdims=True)
    v = ((y - m) ** 2).mean(axis=(0, 2, 3), keepdims=True)
    ref = jnp.maximum(
        gamma.reshape(1, -1, 1, 1) * (y - m) / jnp.sqrt(v + BN_EPS)
        + beta.reshape(1, -1, 1, 1), 0.0)

    H_OUT = (H + 2 * PAD - DIL * (K - 1) - 1) // STRIDE + 1
    assert out.shape == (N, C_OUT, H_OUT, H_OUT), out.shape
    assert jnp.allclose(out, ref, atol=2e-4, rtol=2e-4), float(
        jnp.max(jnp.abs(out - ref)))

    print("KERNEL_OK")
</pallas_src>

<mosaic_0001>
module attributes {stable_mosaic.version = 11 : i64} {
  func.func @conv_stats_kernel(%arg0: i32, %arg1: i32, %arg2: memref<1x18x18x128xf32, #tpu.memory_space<vmem>>, %arg3: memref<3x3x128x128xf32, #tpu.memory_space<vmem>>, %arg4: memref<1x128xf32, #tpu.memory_space<vmem>>, %arg5: memref<1x128xf32, #tpu.memory_space<vmem>>, %arg6: memref<1x16x16x128xf32, #tpu.memory_space<vmem>>, %arg7: memref<2x128xf32, #tpu.memory_space<vmem>>) attributes {dimension_semantics = [#tpu.dimension_semantics<parallel>, #tpu.dimension_semantics<arbitrary>], iteration_bounds = array<i64: 1, 2>, scalar_prefetch = 0 : i64, scratch_operands = 0 : i64, tpu.core_type = #tpu.core_type<tc>, window_params = [{transform_indices = @transform_0, window_bounds = array<i64: 1, 18, 18, 128>}, {transform_indices = @transform_1, window_bounds = array<i64: 3, 3, 128, 128>}, {transform_indices = @transform_2, window_bounds = array<i64: 1, 128>}, {transform_indices = @transform_3, window_bounds = array<i64: 1, 128>}, {transform_indices = @transform_4, window_bounds = array<i64: 1, 16, 16, 128>}, {transform_indices = @transform_5, window_bounds = array<i64: 2, 128>}]} {
    %c0_i32 = arith.constant 0 : i32
    %0 = arith.cmpi eq, %arg1, %c0_i32 : i32
    %1 = arith.extui %0 : i1 to i32
    %c0_i32_0 = arith.constant 0 : i32
    %2 = arith.cmpi ne, %1, %c0_i32_0 : i32
    scf.if %2 {
      %cst_90 = arith.constant 0.000000e+00 : f32
      %83 = vector.broadcast %cst_90 : f32 to vector<2x128xf32>
      %c0_91 = arith.constant 0 : index
      %c0_92 = arith.constant 0 : index
      %84 = vector.load %arg7[%c0_91, %c0_92] : memref<2x128xf32, #tpu.memory_space<vmem>>, vector<2x128xf32>
      tpu.vector_store %arg7[%c0_91, %c0_92], %83 {strides = array<i32>} : memref<2x128xf32, #tpu.memory_space<vmem>>, vector<2x128xf32>,
    } else {
    }
    %cst = arith.constant 0.000000e+00 : f32
    %3 = vector.broadcast %cst : f32 to vector<256x128xf32>
    %c0 = arith.constant 0 : index
    %c0_1 = arith.constant 0 : index
    %c0_2 = arith.constant 0 : index
    %c0_3 = arith.constant 0 : index
    %4 = vector.load %arg2[%c0, %c0_1, %c0_2, %c0_3] : memref<1x18x18x128xf32, #tpu.memory_space<vmem>>, vector<1x16x16x128xf32>
    %5 = vector.shape_cast %4 : vector<1x16x16x128xf32> to vector<16x16x128xf32>
    %6 = vector.shape_cast %5 : vector<16x16x128xf32> to vector<256x128xf32>
    %c0_4 = arith.constant 0 : index
    %c0_5 = arith.constant 0 : index
    %c0_6 = arith.constant 0 : index
    %c0_7 = arith.constant 0 : index
    %7 = vector.load %arg3[%c0_4, %c0_5, %c0_6, %c0_7] : memref<3x3x128x128xf32, #tpu.memory_space<vmem>>, vector<1x1x128x128xf32>
    %8 = vector.shape_cast %7 : vector<1x1x128x128xf32> to vector<128x128xf32>
    %cst_8 = arith.constant dense<0.000000e+00> : vector<256x128xf32>
    %9 = tpu.matmul %6, %8, %cst_8 {dimension_numbers = #tpu.dot_dimension_numbers<[1], [0], [0], [1], [0, 0, 1, 1], [], []>} : vector<256x128xf32>, vector<128x128xf32>, vector<256x128xf32> -> vector<256x128xf32>
    %10 = arith.addf %3, %9 : vector<256x128xf32>
    %c0_9 = arith.constant 0 : index
    %c0_10 = arith.constant 0 : index
    %c1 = arith.constant 1 : index
    %c0_11 = arith.constant 0 : index
    %11 = vector.load %arg2[%c0_9, %c0_10, %c1, %c0_11] : memref<1x18x18x128xf32, #tpu.memory_space<vmem>>, vector<1x16x16x128xf32>
    %12 = vector.shape_cast %11 : vector<1x16x16x128xf32> to vector<16x16x128xf32>
    %13 = vector.shape_cast %12 : vector<16x16x128xf32> to vector<256x128xf32>
    %c0_12 = arith.constant 0 : index
    %c1_13 = arith.constant 1 : index
    %c0_14 = arith.constant 0 : index
    %c0_15 = arith.constant 0 : index
    %14 = vector.load %arg3[%c0_12, %c1_13, %c0_14, %c0_15] : memref<3x3x128x128xf32, #tpu.memory_space<vmem>>, vector<1x1x128x128xf32>
    %15 = vector.shape_cast %14 : vector<1x1x128x128xf32> to vector<128x128xf32>
    %cst_16 = arith.constant dense<0.000000e+00> : vector<256x128xf32>
    %16 = tpu.matmul %13, %15, %cst_16 {dimension_numbers = #tpu.dot_dimension_numbers<[1], [0], [0], [1], [0, 0, 1, 1], [], []>} : vector<256x128xf32>, vector<128x128xf32>, vector<256x128xf32> -> vector<256x128xf32>
    %17 = arith.addf %10, %16 : vector<256x128xf32>
    %c0_17 = arith.constant 0 : index
    %c0_18 = arith.constant 0 : index
    %c2 = arith.constant 2 : index
    %c0_19 = arith.constant 0 : index
    %18 = vector.load %arg2[%c0_17, %c0_18, %c2, %c0_19] : memref<1x18x18x128xf32, #tpu.memory_space<vmem>>, vector<1x16x16x128xf32>
    %19 = vector.shape_cast %18 : vector<1x16x16x128xf32> to vector<16x16x128xf32>
    %20 = vector.shape_cast %19 : vector<16x16x128xf32> to vector<256x128xf32>
    %c0_20 = arith.constant 0 : index
    %c2_21 = arith.constant 2 : index
    %c0_22 = arith.constant 0 : index
    %c0_23 = arith.constant 0 : index
    %21 = vector.load %arg3[%c0_20, %c2_21, %c0_22, %c0_23] : memref<3x3x128x128xf32, #tpu.memory_space<vmem>>, vector<1x1x128x128xf32>
    %22 = vector.shape_cast %21 : vector<1x1x128x128xf32> to vector<128x128xf32>
    %cst_24 = arith.constant dense<0.000000e+00> : vector<256x128xf32>
    %23 = tpu.matmul %20, %22, %cst_24 {dimension_numbers = #tpu.dot_dimension_numbers<[1], [0], [0], [1], [0, 0, 1, 1], [], []>} : vector<256x128xf32>, vector<128x128xf32>, vector<256x128xf32> -> vector<256x128xf32>
    %24 = arith.addf %17, %23 : vector<256x128xf32>
    %c0_25 = arith.constant 0 : index
    %c1_26 = arith.constant 1 : index
    %c0_27 = arith.constant 0 : index
    %c0_28 = arith.constant 0 : index
    %25 = vector.load %arg2[%c0_25, %c1_26, %c0_27, %c0_28] : memref<1x18x18x128xf32, #tpu.memory_space<vmem>>, vector<1x16x16x128xf32>
    %26 = vector.shape_cast %25 : vector<1x16x16x128xf32> to vector<16x16x128xf32>
    %27 = vector.shape_cast %26 : vector<16x16x128xf32> to vector<256x128xf32>
    %c1_29 = arith.constant 1 : index
    %c0_30 = arith.constant 0 : index
    %c0_31 = arith.constant 0 : index
    %c0_32 = arith.constant 0 : index
    %28 = vector.load %arg3[%c1_29, %c0_30, %c0_31, %c0_32] : memref<3x3x128x128xf32, #tpu.memory_space<vmem>>, vector<1x1x128x128xf32>
    %29 = vector.shape_cast %28 : vector<1x1x128x128xf32> to vector<128x128xf32>
    %cst_33 = arith.constant dense<0.000000e+00> : vector<256x128xf32>
    %30 = tpu.matmul %27, %29, %cst_33 {dimension_numbers = #tpu.dot_dimension_numbers<[1], [0], [0], [1], [0, 0, 1, 1], [], []>} : vector<256x128xf32>, vector<128x128xf32>, vector<256x128xf32> -> vector<256x128xf32>
    %31 = arith.addf %24, %30 : vector<256x128xf32>
    %c0_34 = arith.constant 0 : index
    %c1_35 = arith.constant 1 : index
    %c1_36 = arith.constant 1 : index
    %c0_37 = arith.constant 0 : index
    %32 = vector.load %arg2[%c0_34, %c1_35, %c1_36, %c0_37] : memref<1x18x18x128xf32, #tpu.memory_space<vmem>>, vector<1x16x16x128xf32>
    %33 = vector.shape_cast %32 : vector<1x16x16x128xf32> to vector<16x16x128xf32>
    %34 = vector.shape_cast %33 : vector<16x16x128xf32> to vector<256x128xf32>
    %c1_38 = arith.constant 1 : index
    %c1_39 = arith.constant 1 : index
    %c0_40 = arith.constant 0 : index
    %c0_41 = arith.constant 0 : index
    %35 = vector.load %arg3[%c1_38, %c1_39, %c0_40, %c0_41] : memref<3x3x128x128xf32, #tpu.memory_space<vmem>>, vector<1x1x128x128xf32>
    %36 = vector.shape_cast %35 : vector<1x1x128x128xf32> to vector<128x128xf32>
    %cst_42 = arith.constant dense<0.000000e+00> : vector<256x128xf32>
    %37 = tpu.matmul %34, %36, %cst_42 {dimension_numbers = #tpu.dot_dimension_numbers<[1], [0], [0], [1], [0, 0, 1, 1], [], []>} : vector<256x128xf32>, vector<128x128xf32>, vector<256x128xf32> -> vector<256x128xf32>
    %38 = arith.addf %31, %37 : vector<256x128xf32>
    %c0_43 = arith.constant 0 : index
    %c1_44 = arith.constant 1 : index
    %c2_45 = arith.constant 2 : index
    %c0_46 = arith.constant 0 : index
    %39 = vector.load %arg2[%c0_43, %c1_44, %c2_45, %c0_46] : memref<1x18x18x128xf32, #tpu.memory_space<vmem>>, vector<1x16x16x128xf32>
    %40 = vector.shape_cast %39 : vector<1x16x16x128xf32> to vector<16x16x128xf32>
    %41 = vector.shape_cast %40 : vector<16x16x128xf32> to vector<256x128xf32>
    %c1_47 = arith.constant 1 : index
    %c2_48 = arith.constant 2 : index
    %c0_49 = arith.constant 0 : index
    %c0_50 = arith.constant 0 : index
    %42 = vector.load %arg3[%c1_47, %c2_48, %c0_49, %c0_50] : memref<3x3x128x128xf32, #tpu.memory_space<vmem>>, vector<1x1x128x128xf32>
    %43 = vector.shape_cast %42 : vector<1x1x128x128xf32> to vector<128x128xf32>
    %cst_51 = arith.constant dense<0.000000e+00> : vector<256x128xf32>
    %44 = tpu.matmul %41, %43, %cst_51 {dimension_numbers = #tpu.dot_dimension_numbers<[1], [0], [0], [1], [0, 0, 1, 1], [], []>} : vector<256x128xf32>, vector<128x128xf32>, vector<256x128xf32> -> vector<256x128xf32>
    %45 = arith.addf %38, %44 : vector<256x128xf32>
    %c0_52 = arith.constant 0 : index
    %c2_53 = arith.constant 2 : index
    %c0_54 = arith.constant 0 : index
    %c0_55 = arith.constant 0 : index
    %46 = vector.load %arg2[%c0_52, %c2_53, %c0_54, %c0_55] : memref<1x18x18x128xf32, #tpu.memory_space<vmem>>, vector<1x16x16x128xf32>
    %47 = vector.shape_cast %46 : vector<1x16x16x128xf32> to vector<16x16x128xf32>
    %48 = vector.shape_cast %47 : vector<16x16x128xf32> to vector<256x128xf32>
    %c2_56 = arith.constant 2 : index
    %c0_57 = arith.constant 0 : index
    %c0_58 = arith.constant 0 : index
    %c0_59 = arith.constant 0 : index
    %49 = vector.load %arg3[%c2_56, %c0_57, %c0_58, %c0_59] : memref<3x3x128x128xf32, #tpu.memory_space<vmem>>, vector<1x1x128x128xf32>
    %50 = vector.shape_cast %49 : vector<1x1x128x128xf32> to vector<128x128xf32>
    %cst_60 = arith.constant dense<0.000000e+00> : vector<256x128xf32>
    %51 = tpu.matmul %48, %50, %cst_60 {dimension_numbers = #tpu.dot_dimension_numbers<[1], [0], [0], [1], [0, 0, 1, 1], [], []>} : vector<256x128xf32>, vector<128x128xf32>, vector<256x128xf32> -> vector<256x128xf32>
    %52 = arith.addf %45, %51 : vector<256x128xf32>
    %c0_61 = arith.constant 0 : index
    %c2_62 = arith.constant 2 : index
    %c1_63 = arith.constant 1 : index
    %c0_64 = arith.constant 0 : index
    %53 = vector.load %arg2[%c0_61, %c2_62, %c1_63, %c0_64] : memref<1x18x18x128xf32, #tpu.memory_space<vmem>>, vector<1x16x16x128xf32>
    %54 = vector.shape_cast %53 : vector<1x16x16x128xf32> to vector<16x16x128xf32>
    %55 = vector.shape_cast %54 : vector<16x16x128xf32> to vector<256x128xf32>
    %c2_65 = arith.constant 2 : index
    %c1_66 = arith.constant 1 : index
    %c0_67 = arith.constant 0 : index
    %c0_68 = arith.constant 0 : index
    %56 = vector.load %arg3[%c2_65, %c1_66, %c0_67, %c0_68] : memref<3x3x128x128xf32, #tpu.memory_space<vmem>>, vector<1x1x128x128xf32>
    %57 = vector.shape_cast %56 : vector<1x1x128x128xf32> to vector<128x128xf32>
    %cst_69 = arith.constant dense<0.000000e+00> : vector<256x128xf32>
    %58 = tpu.matmul %55, %57, %cst_69 {dimension_numbers = #tpu.dot_dimension_numbers<[1], [0], [0], [1], [0, 0, 1, 1], [], []>} : vector<256x128xf32>, vector<128x128xf32>, vector<256x128xf32> -> vector<256x128xf32>
    %59 = arith.addf %52, %58 : vector<256x128xf32>
    %c0_70 = arith.constant 0 : index
    %c2_71 = arith.constant 2 : index
    %c2_72 = arith.constant 2 : index
    %c0_73 = arith.constant 0 : index
    %60 = vector.load %arg2[%c0_70, %c2_71, %c2_72, %c0_73] : memref<1x18x18x128xf32, #tpu.memory_space<vmem>>, vector<1x16x16x128xf32>
    %61 = vector.shape_cast %60 : vector<1x16x16x128xf32> to vector<16x16x128xf32>
    %62 = vector.shape_cast %61 : vector<16x16x128xf32> to vector<256x128xf32>
    %c2_74 = arith.constant 2 : index
    %c2_75 = arith.constant 2 : index
    %c0_76 = arith.constant 0 : index
    %c0_77 = arith.constant 0 : index
    %63 = vector.load %arg3[%c2_74, %c2_75, %c0_76, %c0_77] : memref<3x3x128x128xf32, #tpu.memory_space<vmem>>, vector<1x1x128x128xf32>
    %64 = vector.shape_cast %63 : vector<1x1x128x128xf32> to vector<128x128xf32>
    %cst_78 = arith.constant dense<0.000000e+00> : vector<256x128xf32>
    %65 = tpu.matmul %62, %64, %cst_78 {dimension_numbers = #tpu.dot_dimension_numbers<[1], [0], [0], [1], [0, 0, 1, 1], [], []>} : vector<256x128xf32>, vector<128x128xf32>, vector<256x128xf32> -> vector<256x128xf32>
    %66 = arith.addf %59, %65 : vector<256x128xf32>
    %67 = vector.shape_cast %66 : vector<256x128xf32> to vector<16x16x128xf32>
    %c0_79 = arith.constant 0 : index
    %c0_80 = arith.constant 0 : index
    %c0_81 = arith.constant 0 : index
    %c0_82 = arith.constant 0 : index
    %68 = vector.load %arg6[%c0_79, %c0_80, %c0_81, %c0_82] : memref<1x16x16x128xf32, #tpu.memory_space<vmem>>, vector<1x16x16x128xf32>
    %69 = vector.shape_cast %68 : vector<1x16x16x128xf32> to vector<16x16x128xf32>
    %70 = vector.shape_cast %67 : vector<16x16x128xf32> to vector<1x16x16x128xf32>
    tpu.vector_store %arg6[%c0_79, %c0_80, %c0_81, %c0_82], %70 {strides = array<i32>} : memref<1x16x16x128xf32, #tpu.memory_space<vmem>>, vector<1x16x16x128xf32>,
    %cst_83 = arith.constant dense<0.000000e+00> : vector<128xf32>
    %71 = vector.multi_reduction <add>, %66, %cst_83 [0] : vector<256x128xf32> to vector<128xf32>
    %72 = vector.shape_cast %71 : vector<128xf32> to vector<1x128xf32>
    %73 = arith.mulf %66, %66 : vector<256x128xf32>
    %cst_84 = arith.constant dense<0.000000e+00> : vector<128xf32>
    %74 = vector.multi_reduction <add>, %73, %cst_84 [0] : vector<256x128xf32> to vector<128xf32>
    %75 = vector.shape_cast %74 : vector<128xf32> to vector<1x128xf32>
    %c0_85 = arith.constant 0 : index
    %c0_86 = arith.constant 0 : index
    %76 = vector.load %arg7[%c0_85, %c0_86] : memref<2x128xf32, #tpu.memory_space<vmem>>, vector<2x128xf32>
    %77 = tpu.concatenate %72, %75 in 0 : vector<1x128xf32>, vector<1x128xf32> -> vector<2x128xf32>
    %78 = arith.addf %76, %77 : vector<2x128xf32>
    %c0_87 = arith.constant 0 : index
    %c0_88 = arith.constant 0 : index
    %79 = vector.load %arg7[%c0_87, %c0_88] : memref<2x128xf32, #tpu.memory_space<vmem>>, vector<2x128xf32>
    tpu.vector_store %arg7[%c0_87, %c0_88], %78 {strides = array<i32>} : memref<2x128xf32, #tpu.memory_space<vmem>>, vector<2x128xf32>,
    %c1_i32 = arith.constant 1 : i32
    %80 = arith.cmpi eq, %arg1, %c1_i32 : i32
    %81 = arith.extui %80 : i1 to i32
    %c0_i32_89 = arith.constant 0 : i32
    %82 = arith.cmpi ne, %81, %c0_i32_89 : i32
    scf.if %82 {
      %c0_90 = arith.constant 0 : index
      %c0_91 = arith.constant 0 : index
      %83 = vector.load %arg7[%c0_90, %c0_91] : memref<2x128xf32, #tpu.memory_space<vmem>>, vector<2x128xf32>
      %84 = vector.extract_strided_slice %83 {offsets = [0, 0], sizes = [1, 128], strides = [1, 1]} : vector<2x128xf32> to vector<1x128xf32>
      %cst_92 = arith.constant 0.001953125 : f32
      %85 = vector.broadcast %cst_92 : f32 to vector<1x128xf32>
      %86 = arith.mulf %84, %85 : vector<1x128xf32>
      %87 = vector.extract_strided_slice %83 {offsets = [1, 0], sizes = [1, 128], strides = [1, 1]} : vector<2x128xf32> to vector<1x128xf32>
      %cst_93 = arith.constant 0.001953125 : f32
      %88 = vector.broadcast %cst_93 : f32 to vector<1x128xf32>
      %89 = arith.mulf %87, %88 : vector<1x128xf32>
      %90 = arith.mulf %86, %86 : vector<1x128xf32>
      %91 = arith.subf %89, %90 : vector<1x128xf32>
      %c0_94 = arith.constant 0 : index
      %c0_95 = arith.constant 0 : index
      %92 = vector.load %arg4[%c0_94, %c0_95] : memref<1x128xf32, #tpu.memory_space<vmem>>, vector<1x128xf32>
      %cst_96 = arith.constant 9.99999974E-6 : f32
      %93 = vector.broadcast %cst_96 : f32 to vector<1x128xf32>
      %94 = arith.addf %91, %93 : vector<1x128xf32>
      %95 = math.rsqrt %94 : vector<1x128xf32>
      %96 = arith.mulf %92, %95 : vector<1x128xf32>
      %c0_97 = arith.constant 0 : index
      %c0_98 = arith.constant 0 : index
      %97 = vector.load %arg5[%c0_97, %c0_98] : memref<1x128xf32, #tpu.memory_space<vmem>>, vector<1x128xf32>
      %98 = arith.mulf %86, %96 : vector<1x128xf32>
      %99 = arith.subf %97, %98 : vector<1x128xf32>
      %100 = tpu.concatenate %96, %99 in 0 : vector<1x128xf32>, vector<1x128xf32> -> vector<2x128xf32>
      %c0_99 = arith.constant 0 : index
      %c0_100 = arith.constant 0 : index
      %101 = vector.load %arg7[%c0_99, %c0_100] : memref<2x128xf32, #tpu.memory_space<vmem>>, vector<2x128xf32>
      tpu.vector_store %arg7[%c0_99, %c0_100], %100 {strides = array<i32>} : memref<2x128xf32, #tpu.memory_space<vmem>>, vector<2x128xf32>,
    } else {
    }
    return
  }
  func.func @transform_0(%arg0: i32, %arg1: i32) -> (i32, i32, i32, i32) {
    %c0_i32 = arith.constant 0 : i32
    %c0_i32_0 = arith.constant 0 : i32
    %c0_i32_1 = arith.constant 0 : i32
    %c0_i32_2 = arith.constant 0 : i32
    return %arg1, %c0_i32, %c0_i32_0, %c0_i32_1 : i32, i32, i32, i32
  }
  func.func @transform_1(%arg0: i32, %arg1: i32) -> (i32, i32, i32, i32) {
    %c0_i32 = arith.constant 0 : i32
    %c0_i32_0 = arith.constant 0 : i32
    %c0_i32_1 = arith.constant 0 : i32
    %c0_i32_2 = arith.constant 0 : i32
    return %c0_i32, %c0_i32_0, %c0_i32_1, %arg0 : i32, i32, i32, i32
  }
  func.func @transform_2(%arg0: i32, %arg1: i32) -> (i32, i32) {
    %c0_i32 = arith.constant 0 : i32
    %c0_i32_0 = arith.constant 0 : i32
    return %c0_i32, %arg0 : i32, i32
  }
  func.func @transform_3(%arg0: i32, %arg1: i32) -> (i32, i32) {
    %c0_i32 = arith.constant 0 : i32
    %c0_i32_0 = arith.constant 0 : i32
    return %c0_i32, %arg0 : i32, i32
  }
  func.func @transform_4(%arg0: i32, %arg1: i32) -> (i32, i32, i32, i32) {
    %c0_i32 = arith.constant 0 : i32
    %c0_i32_0 = arith.constant 0 : i32
    %c0_i32_1 = arith.constant 0 : i32
    return %arg1, %c0_i32, %c0_i32_0, %arg0 : i32, i32, i32, i32
  }
  func.func @transform_5(%arg0: i32, %arg1: i32) -> (i32, i32) {
    %c0_i32 = arith.constant 0 : i32
    %c0_i32_0 = arith.constant 0 : i32
    return %c0_i32, %arg0 : i32, i32
  }
}

</mosaic_0001>

<bundles_post_ra>
// kernel: tpu_custom_call.1
= control target key start
LH: loop header
LB: loop body
LE: loop exit
PB: predicated region body
PF: predicated region fallthrough
CT: control target
= control target key end

     0   :  { %11 = vsyncpa [#allocation3], 0  ;;  %s6716_s0 = inlined_call_operand.vmem [shape: f32[2,18,18,128], index: 0, kind: input, shape index: {}]   ;;  %s6717_s1 = inlined_call_operand.vmem [shape: f32[3,3,128,128], index: 1, kind: input, shape index: {}]   ;;  %s6718_s2 = inlined_call_operand.vmem [shape: f32[1,128], index: 2, kind: input, shape index: {}]   ;;  %s6719_s3 = inlined_call_operand.vmem [shape: f32[1,128], index: 3, kind: input, shape index: {}]   ;;  %s6720_s4 = inlined_call_operand.hbm [shape: f32[2,16,16,128], index: 4, kind: output, shape index: {0}]   ;;  %s6721_s5 = inlined_call_operand.hbm [shape: f32[2,128], index: 5, kind: output, shape index: {1}]  }
   0x1   :  { %13 = vsyncpa [#allocation3 + $0x1], 0 }
   0x2   :  { %14 = vsyncpa [#allocation5], 0  ;;  %s5055_s18 = smov 0   ;;  %s5057_s19 = smov 0  }
   0x3   :  { %s5059_s20 = smov 0   ;;  %s5061_s21 = smov 0  }
   0x4   :  { %s5063_s22 = smov 0   ;;  %s5065_s23 = smov 0  }
   0x5 LB: > { %s3320_s24 = sadd.s32 4294967295, %s5017_s23   ;;  %s3321_s25 = sadd.s32 4294967294, %s5017_s23   ;;  %s5017_s23 = sphi %s5065_s23, %s20_s23   ;;  %s5013_s22 = sphi %s5063_s22, %s6901_s22   ;;  %s5009_s21 = sphi %s5061_s21, %s6900_s21   ;;  %s5005_s20 = sphi %s5059_s20, %s6899_s20   ;;  %s5001_s19 = sphi %s5057_s19, %s6898_s19   ;;  %s4997_s18 = sphi %s5055_s18, %s6897_s18  }
   0x6   : > { %s29_s26 = sadd.s32 1, %s5013_s22  ;;  %s145_s27 = sadd.s32 1, %s5005_s20 }
   0x7   : > { %p30_p0 = scmp.ge.s32.totalorder %s29_s26, 2  ;;  %p155_p1 = scmp.ne.s32.totalorder %s5005_s20, %s5001_s19 }
   0x8   : > { %p5091_p2 = scmp.eq.s32.totalorder %s3320_s24, 1  ;;  %p161_p3 = scmp.ne.s32.totalorder %s5001_s19, %s4997_s18 }
   0x9   : > { %s6903_s26 = smov (%p30_p0, %s29_s26), 0  ;;  %p162_p5 = scmp.eq.s32.totalorder %s3321_s25, 1 }
   0xa   : > { %p5101_p4 = por %p5091_p2, %p155_p1  ;;  %s140_s30 = ssub.s32 %s5013_s22, %s6903_s26 }
   0xb   : > { %p3327_p6 = scmp.ge.s32.totalorder %s5017_s23, 1  ;;  %p143_p7 = scmp.eq.s32.totalorder %s140_s30, 0 }
   0xc   : > { %p5108_p8 = por %p162_p5, %p161_p3  ;;  %p233_p9 = scmp.lt.s32.totalorder %s5017_s23, 3 }
   0xd   : > { %s5114_s7 = scalar_select %p143_p7, %s5005_s20, %s145_s27  }
   0xe   : > { %p234_p10 = pnand %p3327_p6, %p233_p9 }
  0x10   : > { %237 = sbr.rel (%p234_p10) target bundleno = 672 (0x2a0), region = 36 }
  0x15   : > { %s266_s8 = sand.u32 1, %s5001_s19   ;;  %p271_p11 = scmp.lt.s32.totalorder %s5009_s21, 1 }
  0x16   : > { %s3328_s9 = sshll.u32 %s266_s8, 8  ;;  %p3330_p12 = scmp.ne.s32.totalorder %s5009_s21, 0 }
  0x17   : > { %s272_s10 = scalar_select %p271_p11, %s5009_s21, 1 }
  0x18   : > { %s5126_s15 = scalar_lea.vmem [#allocation2], %s3328_s9  ;;  %289 = sbr.rel (%p3330_p12) target bundleno = 31 (0x1f), region = 40 }
  0x19   : > { %s4844_s11 = smul.u32 432, %s272_s10 }
  0x1b   : > { %s5124_s14 = scalar_lea.vmem %s6716_s0, %s4844_s11 }
  0x1d   : > { %v5019_v0 = vmov 0.0  }
  0x1e   : > { %290 = vst [vmem:[#allocation4] sm:$0x3] %v5019_v0 }
  0x1f PF: > { %v3346_v1 = vld [vmem:[%s6717_s1 + $0xf8] sm:$0xff]  ;;  %v3345_v2 = vld [vmem:[%s6717_s1 + $0xf0] sm:$0xff]  ;;  %v3344_v3 = vld [vmem:[%s6717_s1 + $0xe8] sm:$0xff]  ;;  %vm3121_vm0 = vcmask 1040384   ;;  %p3651_p13 = scmp.ne.s32.totalorder %s5009_s21, 1 }
  0x20   : > { %4812 = vmatprep.subr.mxu1 %v3346_v1  ;;  %4092 = vmatprep.subr.mxu0 %v3346_v1  ;;  %v3343_v4 = vld [vmem:[%s6717_s1 + $0xe0] sm:$0xff]  ;;  %v3342_v5 = vld [vmem:[%s6717_s1 + $0xd8] sm:$0xff]  ;;  %v3341_v6 = vld [vmem:[%s6717_s1 + $0xd0] sm:$0xff] }
  0x21   : > { %4828 = vmatpush3.msra.mxu1 %v3346_v1  ;;  %4093 = vmatpush3.msra.mxu0 %v3346_v1  ;;  %v3340_v7 = vld [vmem:[%s6717_s1 + $0xc8] sm:$0xff]  ;;  %v3339_v8 = vld [vmem:[%s6717_s1 + $0xc0] sm:$0xff]  ;;  %v3338_v9 = vld [vmem:[%s6717_s1 + $0xb8] sm:$0xff] }
  0x22   : > { %4813 = vmatprep.subr.mxu1 %v3345_v2  ;;  %4094 = vmatprep.subr.mxu0 %v3345_v2  ;;  %v3337_v10 = vld [vmem:[%s6717_s1 + $0xb0] sm:$0xff]  ;;  %v3336_v11 = vld [vmem:[%s6717_s1 + $0xa8] sm:$0xff]  ;;  %v3335_v12 = vld [vmem:[%s6717_s1 + $0xa0] sm:$0xff] }
  0x23   : > { %4829 = vmatpush3.msra.mxu1 %v3345_v2  ;;  %4095 = vmatpush3.msra.mxu0 %v3345_v2  ;;  %v3334_v13 = vld [vmem:[%s6717_s1 + $0x98] sm:$0xff]  ;;  %v3333_v14 = vld [vmem:[%s6717_s1 + $0x90] sm:$0xff]  ;;  %v3332_v15 = vld [vmem:[%s6717_s1 + $0x88] sm:$0xff] }
  0x24   : > { %4814 = vmatprep.subr.mxu1 %v3344_v3  ;;  %4096 = vmatprep.subr.mxu0 %v3344_v3  ;;  %v3331_v16 = vld [vmem:[%s6717_s1 + $0x80] sm:$0xff]  ;;  %v5182_v19 = vld [vmem:[%s5124_s14 + $0xc9] sm:$0xff]  ;;  %v338_v20 = vld [vmem:[%s6717_s1 + $0x78] sm:$0xff] }
  0x25   : > { %4830 = vmatpush3.msra.mxu1 %v3344_v3  ;;  %4097 = vmatpush3.msra.mxu0 %v3344_v3  ;;  %v5178_v17 = vld [vmem:[%s5124_s14 + $0xc1] sm:$0xff]  ;;  %v340_v21 = vld [vmem:[%s5124_s14 + $0x9] sm:$0xff]  ;;  %v3362_v22 = vld [vmem:[%s6717_s1 + $0x178] sm:$0xff] }
  0x26   : > { %4815 = vmatprep.subr.mxu1 %v3343_v4  ;;  %4098 = vmatprep.subr.mxu0 %v3343_v4  ;;  %v339_v18 = vld [vmem:[%s5124_s14 + $0x1] sm:$0xff]  ;;  %v337_v23 = vld [vmem:[%s6717_s1 + $0x70] sm:$0xff]  ;;  %v5197_v24 = vld [vmem:[%s5124_s14 + $0xd9] sm:$0xff] }
  0x27   : > { %4831 = vmatpush3.msra.mxu1 %v3343_v4  ;;  %4099 = vmatpush3.msra.mxu0 %v3343_v4  ;;  %v3361_v25 = vld [vmem:[%s6717_s1 + $0x170] sm:$0xff]  ;;  %v5203_v26 = vld [vmem:[%s5124_s14 + $0x19] sm:$0xff]  ;;  %v5206_v27 = vld [vmem:[%s5124_s14 + $0xe1] sm:$0xff] }
  0x28   : > { %4816 = vmatprep.subr.mxu1 %v3342_v5  ;;  %4100 = vmatprep.subr.mxu0 %v3342_v5  ;;  %v336_v28 = vld [vmem:[%s6717_s1 + $0x68] sm:$0xff]  ;;  %v335_v31 = vld [vmem:[%s6717_s1 + $0x60] sm:$0xff]  ;;  %v5224_v32 = vld [vmem:[%s5124_s14 + $0xf1] sm:$0xff] }
  0x29   : > { %4832 = vmatpush3.msra.mxu1 %v3342_v5  ;;  %4101 = vmatpush3.msra.mxu0 %v3342_v5  ;;  %v5213_v29 = vld [vmem:[%s5124_s14 + $0x21] sm:$0xff]  ;;  %v5231_v34 = vld [vmem:[%s5124_s14 + $0x31] sm:$0xff]  ;;  %v5234_v35 = vld [vmem:[%s5124_s14 + $0xf9] sm:$0xff] }
  0x2a   : > { %4817 = vmatprep.subr.mxu1 %v3341_v6  ;;  %4102 = vmatprep.subr.mxu0 %v3341_v6  ;;  %v3360_v30 = vld [vmem:[%s6717_s1 + $0x168] sm:$0xff]  ;;  %v3359_v33 = vld [vmem:[%s6717_s1 + $0x160] sm:$0xff]  ;;  %v334_v36 = vld [vmem:[%s6717_s1 + $0x58] sm:$0xff] }
  0x2b   : > { %4833 = vmatpush3.msra.mxu1 %v3341_v6  ;;  %4103 = vmatpush3.msra.mxu0 %v3341_v6  ;;  %v5241_v37 = vld [vmem:[%s5124_s14 + $0x39] sm:$0xff]  ;;  %v333_v39 = vld [vmem:[%s6717_s1 + $0x50] sm:$0xff]  ;;  %v332_v44 = vld [vmem:[%s6717_s1 + $0x48] sm:$0xff] }
  0x2c   : > { %4818 = vmatprep.subr.mxu1 %v3340_v7  ;;  %4104 = vmatprep.subr.mxu0 %v3340_v7  ;;  %v3358_v38 = vld [vmem:[%s6717_s1 + $0x158] sm:$0xff]  ;;  %v5252_v40 = vld [vmem:[%s5124_s14 + $0x109] sm:$0xff]  ;;  %v331_v47 = vld [vmem:[%s6717_s1 + $0x40] sm:$0xff] }
  0x2d   : > { %4834 = vmatpush3.msra.mxu1 %v3340_v7  ;;  %4105 = vmatpush3.msra.mxu0 %v3340_v7  ;;  %v3357_v41 = vld [vmem:[%s6717_s1 + $0x150] sm:$0xff]  ;;  %v3356_v46 = vld [vmem:[%s6717_s1 + $0x148] sm:$0xff]  ;;  %v3355_v49 = vld [vmem:[%s6717_s1 + $0x140] sm:$0xff] }
  0x2e   : > { %4819 = vmatprep.subr.mxu1 %v3339_v8  ;;  %4106 = vmatprep.subr.mxu0 %v3339_v8  ;;  %v5259_v42 = vld [vmem:[%s5124_s14 + $0x49] sm:$0xff]  ;;  %v5262_v43 = vld [vmem:[%s5124_s14 + $0x111] sm:$0xff]  ;;  %v5280_v48 = vld [vmem:[%s5124_s14 + $0x121] sm:$0xff] }
  0x2f   : > { %4835 = vmatpush3.msra.mxu1 %v3339_v8  ;;  %4107 = vmatpush3.msra.mxu0 %v3339_v8  ;;  %v5269_v45 = vld [vmem:[%s5124_s14 + $0x51] sm:$0xff]  ;;  %v5287_v50 = vld [vmem:[%s5124_s14 + $0x61] sm:$0xff]  ;;  %v5290_v51 = vld [vmem:[%s5124_s14 + $0x129] sm:$0xff] }
  0x30   : > { %4820 = vmatprep.subr.mxu1 %v3338_v9  ;;  %4108 = vmatprep.subr.mxu0 %v3338_v9  ;;  %v330_v52 = vld [vmem:[%s6717_s1 + $0x38] sm:$0xff]  ;;  %v5297_v53 = vld [vmem:[%s5124_s14 + $0x69] sm:$0xff]  ;;  %v5318_v59 = vld [vmem:[%s5124_s14 + $0x141] sm:$0xff] }
  0x31   : > { %4836 = vmatpush3.msra.mxu1 %v3338_v9  ;;  %4109 = vmatpush3.msra.mxu0 %v3338_v9  ;;  %v3354_v54 = vld [vmem:[%s6717_s1 + $0x138] sm:$0xff]  ;;  %v329_v55 = vld [vmem:[%s6717_s1 + $0x30] sm:$0xff]  ;;  %v328_v60 = vld [vmem:[%s6717_s1 + $0x28] sm:$0xff] }
  0x32   : > { %4821 = vmatprep.subr.mxu1 %v3337_v10  ;;  %4110 = vmatprep.subr.mxu0 %v3337_v10  ;;  %v5308_v56 = vld [vmem:[%s5124_s14 + $0x139] sm:$0xff]  ;;  %v3353_v57 = vld [vmem:[%s6717_s1 + $0x130] sm:$0xff]  ;;  %v5325_v61 = vld [vmem:[%s5124_s14 + $0x81] sm:$0xff] }
  0x33   : > { %4837 = vmatpush3.msra.mxu1 %v3337_v10  ;;  %4111 = vmatpush3.msra.mxu0 %v3337_v10  ;;  %v5315_v58 = vld [vmem:[%s5124_s14 + $0x79] sm:$0xff]  ;;  %v3352_v62 = vld [vmem:[%s6717_s1 + $0x128] sm:$0xff]  ;;  %v5336_v0 = vld [vmem:[%s5124_s14 + $0x151] sm:$0xff] }
  0x34   : > { %4822 = vmatprep.subr.mxu1 %v3336_v11  ;;  %4112 = vmatprep.subr.mxu0 %v3336_v11  ;;  %v327_v63 = vld [vmem:[%s6717_s1 + $0x20] sm:$0xff]  ;;  %v5343_v2 = vld [vmem:[%s5124_s14 + $0x91] sm:$0xff]  ;;  %v5364_v8 = vld [vmem:[%s5124_s14 + $0x169] sm:$0xff] }
  0x35   : > { %4838 = vmatpush3.msra.mxu1 %v3336_v11  ;;  %4113 = vmatpush3.msra.mxu0 %v3336_v11  ;;  %v3351_v1 = vld [vmem:[%s6717_s1 + $0x120] sm:$0xff]  ;;  %v326_v4 = vld [vmem:[%s6717_s1 + $0x18] sm:$0xff]  ;;  %v325_v7 = vld [vmem:[%s6717_s1 + $0x10] sm:$0xff]  ;;  %6756 = vst [vmem:[#allocation9_spill] sm:$0xff] %v5364_v8 }
  0x36   : > { %4823 = vmatprep.subr.mxu1 %v3335_v12  ;;  %4114 = vmatprep.subr.mxu0 %v3335_v12  ;;  %v5346_v3 = vld [vmem:[%s5124_s14 + $0x159] sm:$0xff]  ;;  %v3349_v9 = vld [vmem:[%s6717_s1 + $0x110] sm:$0xff] }
  0x37   : > { %4839 = vmatpush3.msra.mxu1 %v3335_v12  ;;  %4115 = vmatpush3.msra.mxu0 %v3335_v12  ;;  %6755 = vst [vmem:[#allocation8_spill] sm:$0xff] %v5346_v3  ;;  %v5353_v5 = vld [vmem:[%s5124_s14 + $0x99] sm:$0xff]  ;;  %v5371_v10 = vld [vmem:[%s5124_s14 + $0xa9] sm:$0xff]  ;;  %v5374_v11 = vld [vmem:[%s5124_s14 + $0x171] sm:$0xff] }
  0x38   : > { %4824 = vmatprep.subr.mxu1 %v3334_v13  ;;  %4116 = vmatprep.subr.mxu0 %v3334_v13  ;;  %v3350_v6 = vld [vmem:[%s6717_s1 + $0x118] sm:$0xff]  ;;  %6757 = vst [vmem:[#allocation10_spill] sm:$0xff] %v5374_v11  ;;  %v324_v12 = vld [vmem:[%s6717_s1 + $0x8] sm:$0xff] }
  0x39   : > { %4840 = vmatpush3.msra.mxu1 %v3334_v13  ;;  %4117 = vmatpush3.msra.mxu0 %v3334_v13  ;;  %v5381_v13 = vld [vmem:[%s5124_s14 + $0xb1] sm:$0xff] }
  0x3a   : > { %4825 = vmatprep.subr.mxu1 %v3333_v14  ;;  %4118 = vmatprep.subr.mxu0 %v3333_v14 }
  0x3b   : > { %4841 = vmatpush3.msra.mxu1 %v3333_v14  ;;  %4119 = vmatpush3.msra.mxu0 %v3333_v14  ;;  %v3348_v14 = vld [vmem:[%s6717_s1 + $0x108] sm:$0xff] }
  0x3c   : > { %4826 = vmatprep.subr.mxu1 %v3332_v15  ;;  %4120 = vmatprep.subr.mxu0 %v3332_v15 }
  0x3d   : > { %4842 = vmatpush3.msra.mxu1 %v3332_v15  ;;  %4121 = vmatpush3.msra.mxu0 %v3332_v15  ;;  %v323_v15 = vld [vmem:[%s6717_s1] sm:$0xff] }
  0x3e   : > { %4827 = vmatprep.subr.mxu1 %v3331_v16  ;;  %4122 = vmatprep.subr.mxu0 %v3331_v16 }
  0x3f   : > { %4843 = vmatpush3.msra.mxu1 %v3331_v16  ;;  %4148 = vmatprep.mubr.f32.mxu1 %v5178_v17 }
  0x40   : > { %4123 = vmatpush3.msra.mxu0 %v3331_v16  ;;  %4124 = vmatprep.mubr.f32.mxu0 %v339_v18  ;;  %v291_v16 = vld [vmem:[%s5124_s14] sm:$0xff] }
  0x41   : > { %4149 = vmatmul.mubr.f32.vlgmr.msra.gmra.mxu1 %v5182_v19  ;;  %4172 = vmatprep.subr.mxu1 %v338_v20  ;;  %v3347_v18 = vld [vmem:[%s6717_s1 + $0x100] sm:$0xff] }
  0x42   : > { %4125 = vmatmul.mubr.f32.vlgmr.msra.gmra.mxu0 %v340_v21  ;;  %4173 = vmatpush3.msra.mxu1 %v338_v20  ;;  %v292_v20 = vld [vmem:[%s5124_s14 + $0x8] sm:$0xff] }
  0x43   : > { %4252 = vmatprep.subr.mxu0 %v3362_v22  ;;  %4174 = vmatprep.subr.mxu1 %v337_v23  ;;  %v838_v21 = vld [vmem:[%s5124_s14 + $0x2] sm:$0xff] }
  0x44   : > { %4253 = vmatpush3.msra.mxu0 %v3362_v22  ;;  %4151 = vmatprep.mubr.f32.mxu1 %v5197_v24  ;;  %v3410_v22 = vld [vmem:[%s6717_s1 + $0x1f8] sm:$0xff] }
  0x45   : > { %4175 = vmatpush3.msra.mxu1 %v337_v23  ;;  %4254 = vmatprep.subr.mxu0 %v3361_v25  ;;  %v839_v23 = vld [vmem:[%s5124_s14 + $0xa] sm:$0xff] }
  0x46   : > { %4127 = vmatprep.mubr.f32.mxu0 %v5203_v26  ;;  %4152 = vmatmul.mubr.f32.gmra.mxu1 %v5206_v27 }
  0x47   : > { %4176 = vmatprep.subr.mxu1 %v336_v28  ;;  %4255 = vmatpush3.msra.mxu0 %v3361_v25  ;;  %v3458_v25 = vld [vmem:[%s6717_s1 + $0x278] sm:$0xff] }
  0x48   : > { %4128 = vmatmul.mubr.f32.gmra.mxu0 %v5213_v29  ;;  %4177 = vmatpush3.msra.mxu1 %v336_v28  ;;  %v5406_v28 = vld [vmem:[%s5124_s14 + $0x18] sm:$0xff] }
  0x49   : > { %4256 = vmatprep.subr.mxu0 %v3360_v30  ;;  %4178 = vmatprep.subr.mxu1 %v335_v31 }
  0x4a   : > { %4257 = vmatpush3.msra.mxu0 %v3360_v30  ;;  %4154 = vmatprep.mubr.f32.mxu1 %v5224_v32  ;;  %v5409_v30 = vld [vmem:[%s5124_s14 + $0x20] sm:$0xff] }
  0x4b   : > { %4179 = vmatpush3.msra.mxu1 %v335_v31  ;;  %4258 = vmatprep.subr.mxu0 %v3359_v33  ;;  %v5412_v31 = vld [vmem:[%s5124_s14 + $0x1a] sm:$0xff] }
  0x4c   : > { %4130 = vmatprep.mubr.f32.mxu0 %v5231_v34  ;;  %4155 = vmatmul.mubr.f32.gmra.mxu1 %v5234_v35  ;;  %6758 = vst [vmem:[#allocation11_spill] sm:$0xff] %v5412_v31 }
  0x4d   : > { %4180 = vmatprep.subr.mxu1 %v334_v36  ;;  %4259 = vmatpush3.msra.mxu0 %v3359_v33  ;;  %v3409_v33 = vld [vmem:[%s6717_s1 + $0x1f0] sm:$0xff] }
  0x4e   : > { %4131 = vmatmul.mubr.f32.gmra.mxu0 %v5241_v37  ;;  %4181 = vmatpush3.msra.mxu1 %v334_v36  ;;  %v5419_v36 = vld [vmem:[%s5124_s14 + $0x22] sm:$0xff] }
  0x4f   : > { %4260 = vmatprep.subr.mxu0 %v3358_v38  ;;  %4182 = vmatprep.subr.mxu1 %v333_v39  ;;  %6759 = vst [vmem:[#allocation12_spill] sm:$0xff] %v5419_v36 }
  0x50   : > { %4261 = vmatpush3.msra.mxu0 %v3358_v38  ;;  %4157 = vmatprep.mubr.f32.mxu1 %v5252_v40  ;;  %v3457_v38 = vld [vmem:[%s6717_s1 + $0x270] sm:$0xff] }
  0x51   : > { %4183 = vmatpush3.msra.mxu1 %v333_v39  ;;  %4262 = vmatprep.subr.mxu0 %v3357_v41  ;;  %v5426_v39 = vld [vmem:[%s5124_s14 + $0x30] sm:$0xff] }
  0x52   : > { %4133 = vmatprep.mubr.f32.mxu0 %v5259_v42  ;;  %4158 = vmatmul.mubr.f32.gmra.mxu1 %v5262_v43 }
  0x53   : > { %4184 = vmatprep.subr.mxu1 %v332_v44  ;;  %4263 = vmatpush3.msra.mxu0 %v3357_v41  ;;  %v5430_v41 = vld [vmem:[%s5124_s14 + $0x38] sm:$0xff] }
  0x54   : > { %4134 = vmatmul.mubr.f32.gmra.mxu0 %v5269_v45  ;;  %4185 = vmatpush3.msra.mxu1 %v332_v44  ;;  %v5434_v44 = vld [vmem:[%s5124_s14 + $0x32] sm:$0xff] }
  0x55   : > { %4264 = vmatprep.subr.mxu0 %v3356_v46  ;;  %4186 = vmatprep.subr.mxu1 %v331_v47  ;;  %6760 = vst [vmem:[#allocation13_spill] sm:$0xff] %v5434_v44 }
  0x56   : > { %4265 = vmatpush3.msra.mxu0 %v3356_v46  ;;  %4160 = vmatprep.mubr.f32.mxu1 %v5280_v48  ;;  %v3408_v46 = vld [vmem:[%s6717_s1 + $0x1e8] sm:$0xff] }
  0x57   : > { %4187 = vmatpush3.msra.mxu1 %v331_v47  ;;  %4266 = vmatprep.subr.mxu0 %v3355_v49  ;;  %v5441_v47 = vld [vmem:[%s5124_s14 + $0x3a] sm:$0xff] }
  0x58   : > { %4136 = vmatprep.mubr.f32.mxu0 %v5287_v50  ;;  %4161 = vmatmul.mubr.f32.gmra.mxu1 %v5290_v51  ;;  %6761 = vst [vmem:[#allocation14_spill] sm:$0xff] %v5441_v47 }
  0x59   : > { %4188 = vmatprep.subr.mxu1 %v330_v52  ;;  %4267 = vmatpush3.msra.mxu0 %v3355_v49  ;;  %v3456_v49 = vld [vmem:[%s6717_s1 + $0x268] sm:$0xff] }
  0x5a   : > { %4137 = vmatmul.mubr.f32.gmra.mxu0 %v5297_v53  ;;  %4189 = vmatpush3.msra.mxu1 %v330_v52  ;;  %v5448_v52 = vld [vmem:[%s5124_s14 + $0x48] sm:$0xff] }
  0x5b   : > { %4268 = vmatprep.subr.mxu0 %v3354_v54  ;;  %4190 = vmatprep.subr.mxu1 %v329_v55 }
  0x5c   : > { %4269 = vmatpush3.msra.mxu0 %v3354_v54  ;;  %4163 = vmatprep.mubr.f32.mxu1 %v5308_v56  ;;  %v5452_v54 = vld [vmem:[%s5124_s14 + $0x50] sm:$0xff] }
  0x5d   : > { %4191 = vmatpush3.msra.mxu1 %v329_v55  ;;  %4270 = vmatprep.subr.mxu0 %v3353_v57  ;;  %v5456_v55 = vld [vmem:[%s5124_s14 + $0x4a] sm:$0xff] }
  0x5e   : > { %4139 = vmatprep.mubr.f32.mxu0 %v5315_v58  ;;  %4164 = vmatmul.mubr.f32.gmra.mxu1 %v5318_v59  ;;  %6762 = vst [vmem:[#allocation15_spill] sm:$0xff] %v5456_v55 }
  0x5f   : > { %4192 = vmatprep.subr.mxu1 %v328_v60  ;;  %4271 = vmatpush3.msra.mxu0 %v3353_v57  ;;  %v3407_v57 = vld [vmem:[%s6717_s1 + $0x1e0] sm:$0xff] }
  0x60   : > { %4140 = vmatmul.mubr.f32.gmra.mxu0 %v5325_v61  ;;  %4193 = vmatpush3.msra.mxu1 %v328_v60  ;;  %v5463_v60 = vld [vmem:[%s5124_s14 + $0x52] sm:$0xff] }
  0x61   : > { %4272 = vmatprep.subr.mxu0 %v3352_v62  ;;  %4194 = vmatprep.subr.mxu1 %v327_v63  ;;  %6763 = vst [vmem:[#allocation16_spill] sm:$0xff] %v5463_v60 }
  0x62   : > { %4273 = vmatpush3.msra.mxu0 %v3352_v62  ;;  %4166 = vmatprep.mubr.f32.mxu1 %v5336_v0  ;;  %v3455_v62 = vld [vmem:[%s6717_s1 + $0x260] sm:$0xff] }
  0x63   : > { %4195 = vmatpush3.msra.mxu1 %v327_v63  ;;  %4274 = vmatprep.subr.mxu0 %v3351_v1  ;;  %v5470_v63 = vld [vmem:[%s5124_s14 + $0x60] sm:$0xff] }
  0x64   : > { %4142 = vmatprep.mubr.f32.mxu0 %v5343_v2  ;;  %4167 = vmatmul.mubr.f32.gmra.mxu1 %v5346_v3  ;;  %v5727_v3 = vld [vmem:[%s5124_s14 + $0x172] sm:$0xff] }
  0x65   : > { %4196 = vmatprep.subr.mxu1 %v326_v4  ;;  %4275 = vmatpush3.msra.mxu0 %v3351_v1  ;;  %v5474_v1 = vld [vmem:[%s5124_s14 + $0x68] sm:$0xff] }
  0x66   : > { %4143 = vmatmul.mubr.f32.gmra.mxu0 %v5353_v5  ;;  %4197 = vmatpush3.msra.mxu1 %v326_v4  ;;  %v5478_v4 = vld [vmem:[%s5124_s14 + $0x62] sm:$0xff] }
  0x67   : > { %4276 = vmatprep.subr.mxu0 %v3350_v6  ;;  %4198 = vmatprep.subr.mxu1 %v325_v7  ;;  %6764 = vst [vmem:[#allocation17_spill] sm:$0xff] %v5478_v4 }
  0x68   : > { %4277 = vmatpush3.msra.mxu0 %v3350_v6  ;;  %4169 = vmatprep.mubr.f32.mxu1 %v5364_v8  ;;  %v3406_v6 = vld [vmem:[%s6717_s1 + $0x1d8] sm:$0xff]  ;;  %v5720_v8 = vld [vmem:[%s5124_s14 + $0x16a] sm:$0xff] }
  0x69   : > { %4199 = vmatpush3.msra.mxu1 %v325_v7  ;;  %4278 = vmatprep.subr.mxu0 %v3349_v9  ;;  %v5485_v7 = vld [vmem:[%s5124_s14 + $0x6a] sm:$0xff] }
  0x6a   : > { %4145 = vmatprep.mubr.f32.mxu0 %v5371_v10  ;;  %4170 = vmatmul.mubr.f32.gmra.mxu1 %v5374_v11  ;;  %6765 = vst [vmem:[#allocation18_spill] sm:$0xff] %v5485_v7  ;;  %v5705_v11 = vld [vmem:[%s5124_s14 + $0x15a] sm:$0xff] }
  0x6b   : > { %4200 = vmatprep.subr.mxu1 %v324_v12  ;;  %4279 = vmatpush3.msra.mxu0 %v3349_v9  ;;  %v3454_v9 = vld [vmem:[%s6717_s1 + $0x258] sm:$0xff] }
  0x6c   : > { %4146 = vmatmul.mubr.f32.gmra.mxu0 %v5381_v13  ;;  %4201 = vmatpush3.msra.mxu1 %v324_v12  ;;  %v5492_v12 = vld [vmem:[%s5124_s14 + $0x78] sm:$0xff] }
  0x6d   : > { %4280 = vmatprep.subr.mxu0 %v3348_v14  ;;  %4202 = vmatprep.subr.mxu1 %v323_v15 }
  0x6e   : > { %4281 = vmatpush3.msra.mxu0 %v3348_v14  ;;  %4203 = vmatpush3.msra.mxu1 %v323_v15  ;;  %v5496_v14 = vld [vmem:[%s5124_s14 + $0x80] sm:$0xff] }
  0x6f   : > { %4204 = vmatprep.mubr.f32.mxu1 %v291_v16  ;;  %4282 = vmatprep.subr.mxu0 %v3347_v18  ;;  %v5500_v15 = vld [vmem:[%s5124_s14 + $0x7a] sm:$0xff]  ;;  %v3405_v16 = vld [vmem:[%s6717_s1 + $0x1d0] sm:$0xff] }
  0x70   : > { %4205 = vmatmul.mubr.f32.vlgmr.msra.gmra.mxu1 %v292_v20  ;;  %4283 = vmatpush3.msra.mxu0 %v3347_v18  ;;  %6766 = vst [vmem:[#allocation19_spill] sm:$0xff] %v5500_v15  ;;  %v5507_v18 = vld [vmem:[%s5124_s14 + $0x82] sm:$0xff]  ;;  %v3453_v20 = vld [vmem:[%s6717_s1 + $0x250] sm:$0xff] }
  0x71   : > { %4284 = vmatprep.mubr.f32.mxu0 %v838_v21  ;;  %4332 = vmatprep.subr.mxu1 %v3410_v22  ;;  %6767 = vst [vmem:[#allocation20_spill] sm:$0xff] %v5507_v18  ;;  %v5514_v21 = vld [vmem:[%s5124_s14 + $0x90] sm:$0xff] }
  0x72   : > { %4285 = vmatmul.mubr.f32.vlgmr.msra.gmra.mxu0 %v839_v23  ;;  %4333 = vmatpush3.msra.mxu1 %v3410_v22  ;;  %v5518_v22 = vld [vmem:[%s5124_s14 + $0x98] sm:$0xff] }
  0x73   : > { %4412 = vmatprep.subr.mxu0 %v3458_v25  ;;  %4207 = vmatprep.mubr.f32.mxu1 %v5406_v28  ;;  %v5522_v23 = vld [vmem:[%s5124_s14 + $0x92] sm:$0xff] }
  0x74   : > { %4413 = vmatpush3.msra.mxu0 %v3458_v25  ;;  %4208 = vmatmul.mubr.f32.gmra.mxu1 %v5409_v30  ;;  %6768 = vst [vmem:[#allocation21_spill] sm:$0xff] %v5522_v23  ;;  %v3404_v25 = vld [vmem:[%s6717_s1 + $0x1c8] sm:$0xff] }
  0x75   : > { %4287 = vmatprep.mubr.f32.mxu0 %v5412_v31  ;;  %4334 = vmatprep.subr.mxu1 %v3409_v33  ;;  %v3396_v31 = vld [vmem:[%s6717_s1 + $0x188] sm:$0xff] }
  0x76   : > { %4288 = vmatmul.mubr.f32.gmra.mxu0 %v5419_v36  ;;  %4335 = vmatpush3.msra.mxu1 %v3409_v33  ;;  %v5529_v33 = vld [vmem:[%s5124_s14 + $0x9a] sm:$0xff]  ;;  %v5683_v36 = vld [vmem:[%s5124_s14 + $0x142] sm:$0xff] }
  0x77   : > { %4414 = vmatprep.subr.mxu0 %v3457_v38  ;;  %4210 = vmatprep.mubr.f32.mxu1 %v5426_v39  ;;  %6769 = vst [vmem:[#allocation22_spill] sm:$0xff] %v5529_v33  ;;  %6783 = vst [vmem:[#allocation36_spill] sm:$0xff] %v5683_v36 }
  0x78   : > { %4415 = vmatpush3.msra.mxu0 %v3457_v38  ;;  %4211 = vmatmul.mubr.f32.gmra.mxu1 %v5430_v41  ;;  %v3452_v38 = vld [vmem:[%s6717_s1 + $0x248] sm:$0xff] }
  0x79   : > { %4290 = vmatprep.mubr.f32.mxu0 %v5434_v44  ;;  %4336 = vmatprep.subr.mxu1 %v3408_v46  ;;  %v3397_v44 = vld [vmem:[%s6717_s1 + $0x190] sm:$0xff] }
  0x7a   : > { %4291 = vmatmul.mubr.f32.gmra.mxu0 %v5441_v47  ;;  %4337 = vmatpush3.msra.mxu1 %v3408_v46  ;;  %v5536_v46 = vld [vmem:[%s5124_s14 + $0xa8] sm:$0xff] }
  0x7b   : > { %4416 = vmatprep.subr.mxu0 %v3456_v49  ;;  %4213 = vmatprep.mubr.f32.mxu1 %v5448_v52  ;;  %v5661_v47 = vld [vmem:[%s5124_s14 + $0x12a] sm:$0xff] }
  0x7c   : > { %4417 = vmatpush3.msra.mxu0 %v3456_v49  ;;  %4214 = vmatmul.mubr.f32.gmra.mxu1 %v5452_v54  ;;  %v5540_v49 = vld [vmem:[%s5124_s14 + $0xb0] sm:$0xff]  ;;  %6781 = vst [vmem:[#allocation34_spill] sm:$0xff] %v5661_v47 }
  0x7d   : > { %4293 = vmatprep.mubr.f32.mxu0 %v5456_v55  ;;  %4338 = vmatprep.subr.mxu1 %v3407_v57  ;;  %v3398_v55 = vld [vmem:[%s6717_s1 + $0x198] sm:$0xff] }
  0x7e   : > { %4294 = vmatmul.mubr.f32.gmra.mxu0 %v5463_v60  ;;  %4339 = vmatpush3.msra.mxu1 %v3407_v57  ;;  %v5544_v57 = vld [vmem:[%s5124_s14 + $0xaa] sm:$0xff]  ;;  %v5639_v60 = vld [vmem:[%s5124_s14 + $0x112] sm:$0xff] }
  0x7f   : > { %4418 = vmatprep.subr.mxu0 %v3455_v62  ;;  %4216 = vmatprep.mubr.f32.mxu1 %v5470_v63  ;;  %6770 = vst [vmem:[#allocation23_spill] sm:$0xff] %v5544_v57  ;;  %6779 = vst [vmem:[#allocation32_spill] sm:$0xff] %v5639_v60 }
  0x80   : > { %4419 = vmatpush3.msra.mxu0 %v3455_v62  ;;  %4217 = vmatmul.mubr.f32.gmra.mxu1 %v5474_v1  ;;  %v3403_v62 = vld [vmem:[%s6717_s1 + $0x1c0] sm:$0xff] }
  0x81   : > { %4296 = vmatprep.mubr.f32.mxu0 %v5478_v4  ;;  %4340 = vmatprep.subr.mxu1 %v3406_v6  ;;  %v3399_v4 = vld [vmem:[%s6717_s1 + $0x1a0] sm:$0xff] }
  0x82   : > { %4297 = vmatmul.mubr.f32.gmra.mxu0 %v5485_v7  ;;  %4341 = vmatpush3.msra.mxu1 %v3406_v6  ;;  %v5551_v6 = vld [vmem:[%s5124_s14 + $0xb2] sm:$0xff]  ;;  %v5617_v7 = vld [vmem:[%s5124_s14 + $0xfa] sm:$0xff] }
  0x83   : > { %4420 = vmatprep.subr.mxu0 %v3454_v9  ;;  %4219 = vmatprep.mubr.f32.mxu1 %v5492_v12  ;;  %6771 = vst [vmem:[#allocation24_spill] sm:$0xff] %v5551_v6  ;;  %6777 = vst [vmem:[#allocation30_spill] sm:$0xff] %v5617_v7 }
  0x84   : > { %4421 = vmatpush3.msra.mxu0 %v3454_v9  ;;  %4220 = vmatmul.mubr.f32.gmra.mxu1 %v5496_v14  ;;  %v3451_v9 = vld [vmem:[%s6717_s1 + $0x240] sm:$0xff] }
  0x85   : > { %4299 = vmatprep.mubr.f32.mxu0 %v5500_v15  ;;  %4342 = vmatprep.subr.mxu1 %v3405_v16  ;;  %v3400_v15 = vld [vmem:[%s6717_s1 + $0x1a8] sm:$0xff] }
  0x86   : > { %4300 = vmatmul.mubr.f32.gmra.mxu0 %v5507_v18  ;;  %4343 = vmatpush3.msra.mxu1 %v3405_v16  ;;  %v5558_v16 = vld [vmem:[%s5124_s14 + $0xc0] sm:$0xff] }
  0x87   : > { %4422 = vmatprep.subr.mxu0 %v3453_v20  ;;  %4222 = vmatprep.mubr.f32.mxu1 %v5514_v21  ;;  %v5595_v18 = vld [vmem:[%s5124_s14 + $0xe2] sm:$0xff] }
  0x88   : > { %4423 = vmatpush3.msra.mxu0 %v3453_v20  ;;  %4223 = vmatmul.mubr.f32.gmra.mxu1 %v5518_v22  ;;  %v5562_v20 = vld [vmem:[%s5124_s14 + $0xc8] sm:$0xff]  ;;  %6775 = vst [vmem:[#allocation28_spill] sm:$0xff] %v5595_v18 }
  0x89   : > { %4302 = vmatprep.mubr.f32.mxu0 %v5522_v23  ;;  %4344 = vmatprep.subr.mxu1 %v3404_v25  ;;  %v3401_v23 = vld [vmem:[%s6717_s1 + $0x1b0] sm:$0xff] }
  0x8a   : > { %4303 = vmatmul.mubr.f32.gmra.mxu0 %v5529_v33  ;;  %4345 = vmatpush3.msra.mxu1 %v3404_v25  ;;  %v5566_v25 = vld [vmem:[%s5124_s14 + $0xc2] sm:$0xff]  ;;  %v5573_v33 = vld [vmem:[%s5124_s14 + $0xca] sm:$0xff] }
  0x8b   : > { %4424 = vmatprep.subr.mxu0 %v3452_v38  ;;  %4225 = vmatprep.mubr.f32.mxu1 %v5536_v46  ;;  %6772 = vst [vmem:[#allocation25_spill] sm:$0xff] %v5566_v25  ;;  %6773 = vst [vmem:[#allocation26_spill] sm:$0xff] %v5573_v33 }
  0x8c   : > { %4425 = vmatpush3.msra.mxu0 %v3452_v38  ;;  %4226 = vmatmul.mubr.f32.gmra.mxu1 %v5540_v49  ;;  %v3402_v38 = vld [vmem:[%s6717_s1 + $0x1b8] sm:$0xff] }
  0x8d   : > { %4305 = vmatprep.mubr.f32.mxu0 %v5544_v57  ;;  %4346 = vmatprep.subr.mxu1 %v3403_v62  ;;  %v5584_v57 = vld [vmem:[%s5124_s14 + $0xe0] sm:$0xff] }
  0x8e   : > { %4306 = vmatmul.mubr.f32.gmra.mxu0 %v5551_v6  ;;  %4347 = vmatpush3.msra.mxu1 %v3403_v62  ;;  %v3450_v62 = vld [vmem:[%s6717_s1 + $0x238] sm:$0xff] }
  0x8f   : > { %4426 = vmatprep.subr.mxu0 %v3451_v9  ;;  %4228 = vmatprep.mubr.f32.mxu1 %v5558_v16  ;;  %v5580_v6 = vld [vmem:[%s5124_s14 + $0xd8] sm:$0xff] }
  0x90   : > { %4427 = vmatpush3.msra.mxu0 %v3451_v9  ;;  %4229 = vmatmul.mubr.f32.gmra.mxu1 %v5562_v20  ;;  %v5588_v9 = vld [vmem:[%s5124_s14 + $0xda] sm:$0xff] }
  0x91   : > { %4308 = vmatprep.mubr.f32.mxu0 %v5566_v25  ;;  %4348 = vmatprep.subr.mxu1 %v3402_v38  ;;  %6774 = vst [vmem:[#allocation27_spill] sm:$0xff] %v5588_v9  ;;  %v5606_v25 = vld [vmem:[%s5124_s14 + $0xf8] sm:$0xff] }
  0x92   : > { %4309 = vmatmul.mubr.f32.gmra.mxu0 %v5573_v33  ;;  %4349 = vmatpush3.msra.mxu1 %v3402_v38  ;;  %v3449_v38 = vld [vmem:[%s6717_s1 + $0x230] sm:$0xff] }
  0x93   : > { %4428 = vmatprep.subr.mxu0 %v3450_v62  ;;  %4231 = vmatprep.mubr.f32.mxu1 %v5580_v6  ;;  %v5602_v33 = vld [vmem:[%s5124_s14 + $0xf0] sm:$0xff] }
  0x94   : > { %4429 = vmatpush3.msra.mxu0 %v3450_v62  ;;  %4232 = vmatmul.mubr.f32.gmra.mxu1 %v5584_v57  ;;  %v5610_v62 = vld [vmem:[%s5124_s14 + $0xf2] sm:$0xff] }
  0x95   : > { %4311 = vmatprep.mubr.f32.mxu0 %v5588_v9  ;;  %4350 = vmatprep.subr.mxu1 %v3401_v23  ;;  %6776 = vst [vmem:[#allocation29_spill] sm:$0xff] %v5610_v62  ;;  %v5628_v9 = vld [vmem:[%s5124_s14 + $0x110] sm:$0xff] }
  0x96   : > { %4312 = vmatmul.mubr.f32.gmra.mxu0 %v5595_v18  ;;  %4351 = vmatpush3.msra.mxu1 %v3401_v23  ;;  %v3448_v23 = vld [vmem:[%s6717_s1 + $0x228] sm:$0xff] }
  0x97   : > { %4430 = vmatprep.subr.mxu0 %v3449_v38  ;;  %4234 = vmatprep.mubr.f32.mxu1 %v5602_v33  ;;  %v5624_v18 = vld [vmem:[%s5124_s14 + $0x108] sm:$0xff] }
  0x98   : > { %4431 = vmatpush3.msra.mxu0 %v3449_v38  ;;  %4235 = vmatmul.mubr.f32.gmra.mxu1 %v5606_v25  ;;  %v5632_v38 = vld [vmem:[%s5124_s14 + $0x10a] sm:$0xff] }
  0x99   : > { %4314 = vmatprep.mubr.f32.mxu0 %v5610_v62  ;;  %4352 = vmatprep.subr.mxu1 %v3400_v15  ;;  %6778 = vst [vmem:[#allocation31_spill] sm:$0xff] %v5632_v38  ;;  %v5650_v62 = vld [vmem:[%s5124_s14 + $0x128] sm:$0xff] }
  0x9a   : > { %4315 = vmatmul.mubr.f32.gmra.mxu0 %v5617_v7  ;;  %4353 = vmatpush3.msra.mxu1 %v3400_v15  ;;  %v3447_v15 = vld [vmem:[%s6717_s1 + $0x220] sm:$0xff] }
  0x9b   : > { %4432 = vmatprep.subr.mxu0 %v3448_v23  ;;  %4237 = vmatprep.mubr.f32.mxu1 %v5624_v18  ;;  %v5646_v7 = vld [vmem:[%s5124_s14 + $0x120] sm:$0xff] }
  0x9c   : > { %4433 = vmatpush3.msra.mxu0 %v3448_v23  ;;  %4238 = vmatmul.mubr.f32.gmra.mxu1 %v5628_v9  ;;  %v5654_v23 = vld [vmem:[%s5124_s14 + $0x122] sm:$0xff] }
  0x9d   : > { %4317 = vmatprep.mubr.f32.mxu0 %v5632_v38  ;;  %4354 = vmatprep.subr.mxu1 %v3399_v4  ;;  %6780 = vst [vmem:[#allocation33_spill] sm:$0xff] %v5654_v23  ;;  %v5672_v38 = vld [vmem:[%s5124_s14 + $0x140] sm:$0xff] }
  0x9e   : > { %4318 = vmatmul.mubr.f32.gmra.mxu0 %v5639_v60  ;;  %4355 = vmatpush3.msra.mxu1 %v3399_v4  ;;  %v3446_v4 = vld [vmem:[%s6717_s1 + $0x218] sm:$0xff] }
  0x9f   : > { %4434 = vmatprep.subr.mxu0 %v3447_v15  ;;  %4240 = vmatprep.mubr.f32.mxu1 %v5646_v7  ;;  %v5668_v60 = vld [vmem:[%s5124_s14 + $0x138] sm:$0xff] }
  0xa0   : > { %4435 = vmatpush3.msra.mxu0 %v3447_v15  ;;  %4241 = vmatmul.mubr.f32.gmra.mxu1 %v5650_v62  ;;  %v5676_v15 = vld [vmem:[%s5124_s14 + $0x13a] sm:$0xff] }
  0xa1   : > { %4320 = vmatprep.mubr.f32.mxu0 %v5654_v23  ;;  %4356 = vmatprep.subr.mxu1 %v3398_v55  ;;  %6782 = vst [vmem:[#allocation35_spill] sm:$0xff] %v5676_v15  ;;  %v5694_v23 = vld [vmem:[%s5124_s14 + $0x158] sm:$0xff] }
  0xa2   : > { %4321 = vmatmul.mubr.f32.gmra.mxu0 %v5661_v47  ;;  %4357 = vmatpush3.msra.mxu1 %v3398_v55  ;;  %v3445_v55 = vld [vmem:[%s6717_s1 + $0x210] sm:$0xff] }
  0xa3   : > { %4436 = vmatprep.subr.mxu0 %v3446_v4  ;;  %4243 = vmatprep.mubr.f32.mxu1 %v5668_v60  ;;  %v5690_v47 = vld [vmem:[%s5124_s14 + $0x150] sm:$0xff] }
  0xa4   : > { %4437 = vmatpush3.msra.mxu0 %v3446_v4  ;;  %4244 = vmatmul.mubr.f32.gmra.mxu1 %v5672_v38  ;;  %v5698_v4 = vld [vmem:[%s5124_s14 + $0x152] sm:$0xff] }
  0xa5   : > { %4323 = vmatprep.mubr.f32.mxu0 %v5676_v15  ;;  %4358 = vmatprep.subr.mxu1 %v3397_v44  ;;  %6784 = vst [vmem:[#allocation37_spill] sm:$0xff] %v5698_v4  ;;  %v5716_v15 = vld [vmem:[%s5124_s14 + $0x170] sm:$0xff] }
  0xa6   : > { %4324 = vmatmul.mubr.f32.gmra.mxu0 %v5683_v36  ;;  %4359 = vmatpush3.msra.mxu1 %v3397_v44  ;;  %v3444_v36 = vld [vmem:[%s6717_s1 + $0x208] sm:$0xff] }
  0xa7   : > { %4438 = vmatprep.subr.mxu0 %v3445_v55  ;;  %4246 = vmatprep.mubr.f32.mxu1 %v5690_v47  ;;  %v5712_v44 = vld [vmem:[%s5124_s14 + $0x168] sm:$0xff] }
  0xa8   : > { %4439 = vmatpush3.msra.mxu0 %v3445_v55  ;;  %4247 = vmatmul.mubr.f32.gmra.mxu1 %v5694_v23  ;;  %v3395_v55 = vld [vmem:[%s6717_s1 + $0x180] sm:$0xff] }
  0xa9   : > { %4326 = vmatprep.mubr.f32.mxu0 %v5698_v4  ;;  %4360 = vmatprep.subr.mxu1 %v3396_v31  ;;  %v3443_v4 = vld [vmem:[%s6717_s1 + $0x200] sm:$0xff] }
  0xaa   : > { %4327 = vmatmul.mubr.f32.gmra.mxu0 %v5705_v11  ;;  %4361 = vmatpush3.msra.mxu1 %v3396_v31  ;;  %v3506_v31 = vld [vmem:[%s6717_s1 + $0x2f8] sm:$0xff] }
  0xab   : > { %4440 = vmatprep.subr.mxu0 %v3444_v36  ;;  %4249 = vmatprep.mubr.f32.mxu1 %v5712_v44 }
  0xac   : > { %4441 = vmatpush3.msra.mxu0 %v3444_v36  ;;  %4250 = vmatmul.mubr.f32.gmra.mxu1 %v5716_v15  ;;  %v3554_v36 = vld [vmem:[%s6717_s1 + $0x378] sm:$0xff] }
  0xad   : > { %4329 = vmatprep.mubr.f32.mxu0 %v5720_v8  ;;  %4362 = vmatprep.subr.mxu1 %v3395_v55 }
  0xae   : > { %4330 = vmatmul.mubr.f32.gmra.mxu0 %v5727_v3  ;;  %4363 = vmatpush3.msra.mxu1 %v3395_v55  ;;  %v3505_v55 = vld [vmem:[%s6717_s1 + $0x2f0] sm:$0xff] }
  0xaf   : > { %4442 = vmatprep.subr.mxu0 %v3443_v4  ;;  %4364 = vmatprep.mubr.f32.mxu1 %v5406_v28  ;;  %v3553_v28 = vld [vmem:[%s6717_s1 + $0x370] sm:$0xff] }
  0xb0   : > { %4443 = vmatpush3.msra.mxu0 %v3443_v4  ;;  %4365 = vmatmul.mubr.f32.vlgmr.msra.gmra.mxu1 %v5409_v30  ;;  %v5884_v30 = vld [vmem:[%s5124_s14 + $0x180] sm:$0xff]  ;;  %v6786_v4 = vld [vmem:[#allocation9_spill] sm:$0xff] }
  0xb1   : > { %4444 = vmatprep.mubr.f32.mxu0 %v5203_v26  ;;  %4492 = vmatprep.subr.mxu1 %v3506_v31  ;;  %v3504_v26 = vld [vmem:[%s6717_s1 + $0x2e8] sm:$0xff] }
  0xb2   : > { %4445 = vmatmul.mubr.f32.vlgmr.msra.gmra.mxu0 %v5213_v29  ;;  %4493 = vmatpush3.msra.mxu1 %v3506_v31  ;;  %v3552_v29 = vld [vmem:[%s6717_s1 + $0x368] sm:$0xff] }
  0xb3   : > { %4572 = vmatprep.subr.mxu0 %v3554_v36  ;;  %4367 = vmatprep.mubr.f32.mxu1 %v5426_v39  ;;  %v5888_v31 = vld [vmem:[%s5124_s14 + $0x188] sm:$0xff] }
  0xb4   : > { %4573 = vmatpush3.msra.mxu0 %v3554_v36  ;;  %4368 = vmatmul.mubr.f32.gmra.mxu1 %v5430_v41  ;;  %v6787_v36 = vld [vmem:[#allocation10_spill] sm:$0xff] }
  0xb5   : > { %4447 = vmatprep.mubr.f32.mxu0 %v5231_v34  ;;  %4494 = vmatprep.subr.mxu1 %v3505_v55  ;;  %v3503_v34 = vld [vmem:[%s6717_s1 + $0x2e0] sm:$0xff] }
  0xb6   : > { %4448 = vmatmul.mubr.f32.gmra.mxu0 %v5241_v37  ;;  %4495 = vmatpush3.msra.mxu1 %v3505_v55  ;;  %v3551_v37 = vld [vmem:[%s6717_s1 + $0x360] sm:$0xff] }
  0xb7   : > { %4574 = vmatprep.subr.mxu0 %v3553_v28  ;;  %4370 = vmatprep.mubr.f32.mxu1 %v5448_v52  ;;  %v5892_v55 = vld [vmem:[%s5124_s14 + $0x181] sm:$0xff] }
  0xb8   : > { %4575 = vmatpush3.msra.mxu0 %v3553_v28  ;;  %4371 = vmatmul.mubr.f32.gmra.mxu1 %v5452_v54  ;;  %v3491_v28 = vld [vmem:[%s6717_s1 + $0x280] sm:$0xff] }
  0xb9   : > { %4450 = vmatprep.mubr.f32.mxu0 %v5259_v42  ;;  %4496 = vmatprep.subr.mxu1 %v3504_v26  ;;  %v3502_v42 = vld [vmem:[%s6717_s1 + $0x2d8] sm:$0xff] }
  0xba   : > { %4451 = vmatmul.mubr.f32.gmra.mxu0 %v5269_v45  ;;  %4497 = vmatpush3.msra.mxu1 %v3504_v26  ;;  %v3550_v45 = vld [vmem:[%s6717_s1 + $0x358] sm:$0xff]  ;;  %v5899_v26 = vld [vmem:[%s5124_s14 + $0x189] sm:$0xff] }
  0xbb   : > { %4576 = vmatprep.subr.mxu0 %v3552_v29  ;;  %4373 = vmatprep.mubr.f32.mxu1 %v5470_v63 }
  0xbc   : > { %4577 = vmatpush3.msra.mxu0 %v3552_v29  ;;  %4374 = vmatmul.mubr.f32.gmra.mxu1 %v5474_v1  ;;  %v3539_v29 = vld [vmem:[%s6717_s1 + $0x300] sm:$0xff] }
  0xbd   : > { %4453 = vmatprep.mubr.f32.mxu0 %v5287_v50  ;;  %4498 = vmatprep.subr.mxu1 %v3503_v34  ;;  %v3501_v50 = vld [vmem:[%s6717_s1 + $0x2d0] sm:$0xff] }
  0xbe   : > { %4454 = vmatmul.mubr.f32.gmra.mxu0 %v5297_v53  ;;  %4499 = vmatpush3.msra.mxu1 %v3503_v34  ;;  %v3549_v53 = vld [vmem:[%s6717_s1 + $0x350] sm:$0xff]  ;;  %v3602_v34 = vld [vmem:[%s6717_s1 + $0x3f8] sm:$0xff] }
  0xbf   : > { %4578 = vmatprep.subr.mxu0 %v3551_v37  ;;  %4376 = vmatprep.mubr.f32.mxu1 %v5492_v12 }
  0xc0   : > { %4579 = vmatpush3.msra.mxu0 %v3551_v37  ;;  %4377 = vmatmul.mubr.f32.gmra.mxu1 %v5496_v14  ;;  %v6788_v37 = vld [vmem:[#allocation11_spill] sm:$0xff] }
  0xc1   : > { %4456 = vmatprep.mubr.f32.mxu0 %v5315_v58  ;;  %4500 = vmatprep.subr.mxu1 %v3502_v42  ;;  %v3500_v58 = vld [vmem:[%s6717_s1 + $0x2c8] sm:$0xff] }
  0xc2   : > { %4457 = vmatmul.mubr.f32.gmra.mxu0 %v5325_v61  ;;  %4501 = vmatpush3.msra.mxu1 %v3502_v42  ;;  %v3548_v61 = vld [vmem:[%s6717_s1 + $0x348] sm:$0xff] }
  0xc3   : > { %4580 = vmatprep.subr.mxu0 %v3550_v45  ;;  %4379 = vmatprep.mubr.f32.mxu1 %v5514_v21  ;;  %v6789_v42 = vld [vmem:[#allocation12_spill] sm:$0xff] }
  0xc4   : > { %4581 = vmatpush3.msra.mxu0 %v3550_v45  ;;  %4380 = vmatmul.mubr.f32.gmra.mxu1 %v5518_v22  ;;  %v3650_v45 = vld [vmem:[%s6717_s1 + $0x478] sm:$0xff] }
  0xc5   : > { %4459 = vmatprep.mubr.f32.mxu0 %v5343_v2  ;;  %4502 = vmatprep.subr.mxu1 %v3501_v50  ;;  %v3499_v2 = vld [vmem:[%s6717_s1 + $0x2c0] sm:$0xff] }
  0xc6   : > { %4460 = vmatmul.mubr.f32.gmra.mxu0 %v5353_v5  ;;  %4503 = vmatpush3.msra.mxu1 %v3501_v50  ;;  %v3547_v5 = vld [vmem:[%s6717_s1 + $0x340] sm:$0xff]  ;;  %v3601_v50 = vld [vmem:[%s6717_s1 + $0x3f0] sm:$0xff] }
  0xc7   : > { %4582 = vmatprep.subr.mxu0 %v3549_v53  ;;  %4382 = vmatprep.mubr.f32.mxu1 %v5536_v46 }
  0xc8   : > { %4583 = vmatpush3.msra.mxu0 %v3549_v53  ;;  %4383 = vmatmul.mubr.f32.gmra.mxu1 %v5540_v49  ;;  %v6790_v53 = vld [vmem:[#allocation13_spill] sm:$0xff] }
  0xc9   : > { %4462 = vmatprep.mubr.f32.mxu0 %v5371_v10  ;;  %4504 = vmatprep.subr.mxu1 %v3500_v58  ;;  %v3498_v10 = vld [vmem:[%s6717_s1 + $0x2b8] sm:$0xff] }
  0xca   : > { %4463 = vmatmul.mubr.f32.gmra.mxu0 %v5381_v13  ;;  %4505 = vmatpush3.msra.mxu1 %v3500_v58  ;;  %v3546_v13 = vld [vmem:[%s6717_s1 + $0x338] sm:$0xff] }
  0xcb   : > { %4584 = vmatprep.subr.mxu0 %v3548_v61  ;;  %4385 = vmatprep.mubr.f32.mxu1 %v5558_v16  ;;  %v6791_v58 = vld [vmem:[#allocation14_spill] sm:$0xff] }
  0xcc   : > { %4585 = vmatpush3.msra.mxu0 %v3548_v61  ;;  %4386 = vmatmul.mubr.f32.gmra.mxu1 %v5562_v20  ;;  %v3649_v61 = vld [vmem:[%s6717_s1 + $0x470] sm:$0xff] }
  0xcd   : > { %4465 = vmatprep.mubr.f32.mxu0 %v5178_v17  ;;  %4506 = vmatprep.subr.mxu1 %v3499_v2  ;;  %v3497_v17 = vld [vmem:[%s6717_s1 + $0x2b0] sm:$0xff] }
  0xce   : > { %4466 = vmatmul.mubr.f32.gmra.mxu0 %v5182_v19  ;;  %4507 = vmatpush3.msra.mxu1 %v3499_v2  ;;  %v3545_v19 = vld [vmem:[%s6717_s1 + $0x330] sm:$0xff]  ;;  %v6793_v2 = vld [vmem:[#allocation16_spill] sm:$0xff] }
  0xcf   : > { %4586 = vmatprep.subr.mxu0 %v3547_v5  ;;  %4388 = vmatprep.mubr.f32.mxu1 %v5580_v6 }
  0xd0   : > { %4587 = vmatpush3.msra.mxu0 %v3547_v5  ;;  %4389 = vmatmul.mubr.f32.gmra.mxu1 %v5584_v57  ;;  %v3648_v5 = vld [vmem:[%s6717_s1 + $0x468] sm:$0xff] }
  0xd1   : > { %4468 = vmatprep.mubr.f32.mxu0 %v5197_v24  ;;  %4508 = vmatprep.subr.mxu1 %v3498_v10  ;;  %v3496_v24 = vld [vmem:[%s6717_s1 + $0x2a8] sm:$0xff] }
  0xd2   : > { %4469 = vmatmul.mubr.f32.gmra.mxu0 %v5206_v27  ;;  %4509 = vmatpush3.msra.mxu1 %v3498_v10  ;;  %v3544_v27 = vld [vmem:[%s6717_s1 + $0x328] sm:$0xff]  ;;  %v6795_v10 = vld [vmem:[#allocation18_spill] sm:$0xff] }
  0xd3   : > { %4588 = vmatprep.subr.mxu0 %v3546_v13  ;;  %4391 = vmatprep.mubr.f32.mxu1 %v5602_v33 }
  0xd4   : > { %4589 = vmatpush3.msra.mxu0 %v3546_v13  ;;  %4392 = vmatmul.mubr.f32.gmra.mxu1 %v5606_v25  ;;  %v3647_v13 = vld [vmem:[%s6717_s1 + $0x460] sm:$0xff] }
  0xd5   : > { %4471 = vmatprep.mubr.f32.mxu0 %v5224_v32  ;;  %4510 = vmatprep.subr.mxu1 %v3497_v17  ;;  %v3495_v32 = vld [vmem:[%s6717_s1 + $0x2a0] sm:$0xff] }
  0xd6   : > { %4472 = vmatmul.mubr.f32.gmra.mxu0 %v5234_v35  ;;  %4511 = vmatpush3.msra.mxu1 %v3497_v17  ;;  %v3543_v35 = vld [vmem:[%s6717_s1 + $0x320] sm:$0xff] }
  0xd7   : > { %4590 = vmatprep.subr.mxu0 %v3545_v19  ;;  %4394 = vmatprep.mubr.f32.mxu1 %v5624_v18  ;;  %v6797_v17 = vld [vmem:[#allocation20_spill] sm:$0xff] }
  0xd8   : > { %4591 = vmatpush3.msra.mxu0 %v3545_v19  ;;  %4395 = vmatmul.mubr.f32.gmra.mxu1 %v5628_v9  ;;  %v3646_v19 = vld [vmem:[%s6717_s1 + $0x458] sm:$0xff] }
  0xd9   : > { %4474 = vmatprep.mubr.f32.mxu0 %v5252_v40  ;;  %4512 = vmatprep.subr.mxu1 %v3496_v24  ;;  %v3494_v40 = vld [vmem:[%s6717_s1 + $0x298] sm:$0xff] }
  0xda   : > { %4475 = vmatmul.mubr.f32.gmra.mxu0 %v5262_v43  ;;  %4513 = vmatpush3.msra.mxu1 %v3496_v24  ;;  %v3542_v43 = vld [vmem:[%s6717_s1 + $0x318] sm:$0xff] }
  0xdb   : > { %4592 = vmatprep.subr.mxu0 %v3544_v27  ;;  %4397 = vmatprep.mubr.f32.mxu1 %v5646_v7 }
  0xdc   : > { %4593 = vmatpush3.msra.mxu0 %v3544_v27  ;;  %4398 = vmatmul.mubr.f32.gmra.mxu1 %v5650_v62  ;;  %v6798_v27 = vld [vmem:[#allocation21_spill] sm:$0xff] }
  0xdd   : > { %4477 = vmatprep.mubr.f32.mxu0 %v5280_v48  ;;  %4514 = vmatprep.subr.mxu1 %v3495_v32  ;;  %v3493_v48 = vld [vmem:[%s6717_s1 + $0x290] sm:$0xff] }
  0xde   : > { %4478 = vmatmul.mubr.f32.gmra.mxu0 %v5290_v51  ;;  %4515 = vmatpush3.msra.mxu1 %v3495_v32  ;;  %v3541_v51 = vld [vmem:[%s6717_s1 + $0x310] sm:$0xff] }
  0xdf   : > { %4594 = vmatprep.subr.mxu0 %v3543_v35  ;;  %4400 = vmatprep.mubr.f32.mxu1 %v5668_v60 }
  0xe0   : > { %4595 = vmatpush3.msra.mxu0 %v3543_v35  ;;  %4401 = vmatmul.mubr.f32.gmra.mxu1 %v5672_v38  ;;  %v6799_v35 = vld [vmem:[#allocation22_spill] sm:$0xff] }
  0xe1   : > { %4480 = vmatprep.mubr.f32.mxu0 %v5308_v56  ;;  %4516 = vmatprep.subr.mxu1 %v3494_v40  ;;  %v6785_v56 = vld [vmem:[#allocation8_spill] sm:$0xff] }
  0xe2   : > { %4481 = vmatmul.mubr.f32.gmra.mxu0 %v5318_v59  ;;  %4517 = vmatpush3.msra.mxu1 %v3494_v40  ;;  %v3492_v59 = vld [vmem:[%s6717_s1 + $0x288] sm:$0xff] }
  0xe3   : > { %4596 = vmatprep.subr.mxu0 %v3542_v43  ;;  %4403 = vmatprep.mubr.f32.mxu1 %v5690_v47  ;;  %v3596_v40 = vld [vmem:[%s6717_s1 + $0x3c8] sm:$0xff] }
  0xe4   : > { %4597 = vmatpush3.msra.mxu0 %v3542_v43  ;;  %4404 = vmatmul.mubr.f32.gmra.mxu1 %v5694_v23 }
  0xe5   : > { %4483 = vmatprep.mubr.f32.mxu0 %v5336_v0  ;;  %4518 = vmatprep.subr.mxu1 %v3493_v48  ;;  %v3540_v0 = vld [vmem:[%s6717_s1 + $0x308] sm:$0xff] }
  0xe6   : > { %4484 = vmatmul.mubr.f32.gmra.mxu0 %v6785_v56  ;;  %4519 = vmatpush3.msra.mxu1 %v3493_v48  ;;  %v6800_v48 = vld [vmem:[#allocation23_spill] sm:$0xff] }
  0xe7   : > { %4598 = vmatprep.subr.mxu0 %v3541_v51  ;;  %4406 = vmatprep.mubr.f32.mxu1 %v5712_v44 }
  0xe8   : > { %4599 = vmatpush3.msra.mxu0 %v3541_v51  ;;  %4407 = vmatmul.mubr.f32.gmra.mxu1 %v5716_v15  ;;  %v6801_v51 = vld [vmem:[#allocation24_spill] sm:$0xff] }
  0xe9   : > { %4486 = vmatprep.mubr.f32.mxu0 %v6786_v4  ;;  %4520 = vmatprep.subr.mxu1 %v3492_v59  ;;  %v6802_v4 = vld [vmem:[#allocation25_spill] sm:$0xff] }
  0xea   : > { %4487 = vmatmul.mubr.f32.gmra.mxu0 %v6787_v36  ;;  %4521 = vmatpush3.msra.mxu1 %v3492_v59  ;;  %v3595_v59 = vld [vmem:[%s6717_s1 + $0x3c0] sm:$0xff]  ;;  %v6803_v36 = vld [vmem:[#allocation26_spill] sm:$0xff] }
  0xeb   : > { %4600 = vmatprep.subr.mxu0 %v3540_v0  ;;  %4409 = vmatprep.mubr.f32.mxu1 %v5884_v30 }
  0xec   : > { %4601 = vmatpush3.msra.mxu0 %v3540_v0  ;;  %4410 = vmatmul.mubr.f32.gmra.mxu1 %v5888_v31 }
  0xed   : > { %4489 = vmatprep.mubr.f32.mxu0 %v5892_v55  ;;  %4522 = vmatprep.subr.mxu1 %v3491_v28 }
  0xee   : > { %4490 = vmatmul.mubr.f32.gmra.mxu0 %v5899_v26  ;;  %4523 = vmatpush3.msra.mxu1 %v3491_v28 }
  0xef   : > { %4602 = vmatprep.subr.mxu0 %v3539_v29  ;;  %4524 = vmatprep.mubr.f32.mxu1 %v6788_v37  ;;  %v6804_v37 = vld [vmem:[#allocation27_spill] sm:$0xff] }
  0xf0   : > { %4603 = vmatpush3.msra.mxu0 %v3539_v29  ;;  %4525 = vmatmul.mubr.f32.vlgmr.msra.gmra.mxu1 %v6789_v42  ;;  %v6805_v42 = vld [vmem:[#allocation28_spill] sm:$0xff] }
  0xf1   : > { %4604 = vmatprep.mubr.f32.mxu0 %v5426_v39  ;;  %4652 = vmatprep.subr.mxu1 %v3602_v34  ;;  %v3600_v39 = vld [vmem:[%s6717_s1 + $0x3e8] sm:$0xff] }
  0xf2   : > { %4605 = vmatmul.mubr.f32.vlgmr.msra.gmra.mxu0 %v5430_v41  ;;  %4653 = vmatpush3.msra.mxu1 %v3602_v34  ;;  %v6792_v41 = vld [vmem:[#allocation15_spill] sm:$0xff] }
  0xf3   : > { %4732 = vmatprep.subr.mxu0 %v3650_v45  ;;  %4527 = vmatprep.mubr.f32.mxu1 %v6790_v53  ;;  %v6806_v53 = vld [vmem:[#allocation29_spill] sm:$0xff] }
  0xf4   : > { %4733 = vmatpush3.msra.mxu0 %v3650_v45  ;;  %4528 = vmatmul.mubr.f32.gmra.mxu1 %v6791_v58  ;;  %v3593_v45 = vld [vmem:[%s6717_s1 + $0x3b0] sm:$0xff] }
  0xf5   : > { %4607 = vmatprep.mubr.f32.mxu0 %v5448_v52  ;;  %4654 = vmatprep.subr.mxu1 %v3601_v50  ;;  %v3599_v52 = vld [vmem:[%s6717_s1 + $0x3e0] sm:$0xff]  ;;  %v6807_v58 = vld [vmem:[#allocation30_spill] sm:$0xff] }
  0xf6   : > { %4608 = vmatmul.mubr.f32.gmra.mxu0 %v5452_v54  ;;  %4655 = vmatpush3.msra.mxu1 %v3601_v50  ;;  %v6794_v54 = vld [vmem:[#allocation17_spill] sm:$0xff] }
  0xf7   : > { %4734 = vmatprep.subr.mxu0 %v3649_v61  ;;  %4530 = vmatprep.mubr.f32.mxu1 %v6792_v41 }
  0xf8   : > { %4735 = vmatpush3.msra.mxu0 %v3649_v61  ;;  %4531 = vmatmul.mubr.f32.gmra.mxu1 %v6793_v2  ;;  %v6808_v2 = vld [vmem:[#allocation31_spill] sm:$0xff] }
  0xf9   : > { %4610 = vmatprep.mubr.f32.mxu0 %v5470_v63  ;;  %4656 = vmatprep.subr.mxu1 %v3600_v39  ;;  %v3598_v63 = vld [vmem:[%s6717_s1 + $0x3d8] sm:$0xff] }
  0xfa   : > { %4611 = vmatmul.mubr.f32.gmra.mxu0 %v5474_v1  ;;  %4657 = vmatpush3.msra.mxu1 %v3600_v39  ;;  %v6796_v1 = vld [vmem:[#allocation19_spill] sm:$0xff]  ;;  %v3592_v39 = vld [vmem:[%s6717_s1 + $0x3a8] sm:$0xff] }
  0xfb   : > { %4736 = vmatprep.subr.mxu0 %v3648_v5  ;;  %4533 = vmatprep.mubr.f32.mxu1 %v6794_v54 }
  0xfc   : > { %4737 = vmatpush3.msra.mxu0 %v3648_v5  ;;  %4534 = vmatmul.mubr.f32.gmra.mxu1 %v6795_v10  ;;  %v6809_v5 = vld [vmem:[#allocation32_spill] sm:$0xff] }
  0xfd   : > { %4613 = vmatprep.mubr.f32.mxu0 %v5492_v12  ;;  %4658 = vmatprep.subr.mxu1 %v3599_v52 }
  0xfe   : > { %4614 = vmatmul.mubr.f32.gmra.mxu0 %v5496_v14  ;;  %4659 = vmatpush3.msra.mxu1 %v3599_v52  ;;  %v3597_v14 = vld [vmem:[%s6717_s1 + $0x3d0] sm:$0xff] }
  0xff   : > { %4738 = vmatprep.subr.mxu0 %v3647_v13  ;;  %4536 = vmatprep.mubr.f32.mxu1 %v6796_v1  ;;  %v3590_v1 = vld [vmem:[%s6717_s1 + $0x398] sm:$0xff] }
 0x100   : > { %4739 = vmatpush3.msra.mxu0 %v3647_v13  ;;  %4537 = vmatmul.mubr.f32.gmra.mxu1 %v6797_v17  ;;  %v6810_v13 = vld [vmem:[#allocation33_spill] sm:$0xff] }
 0x101   : > { %4616 = vmatprep.mubr.f32.mxu0 %v5514_v21  ;;  %4660 = vmatprep.subr.mxu1 %v3598_v63  ;;  %v5956_v12 = vpop.f32.mrf.mxu1  ;;  %v3645_v21 = vld [vmem:[%s6717_s1 + $0x450] sm:$0xff] }
 0x102   : > { %4617 = vmatmul.mubr.f32.gmra.mxu0 %v5518_v22  ;;  %4661 = vmatpush3.msra.mxu1 %v3598_v63  ;;  %v5962_v24 = vpop.f32.mrf.mxu0  ;;  %v6811_v63 = vld [vmem:[#allocation34_spill] sm:$0xff] }
 0x103   : > { %4740 = vmatprep.subr.mxu0 %v3646_v19  ;;  %4539 = vmatprep.mubr.f32.mxu1 %v6798_v27  ;;  %v5965_v32 = vpop.f32.mrf.mxu1 }
 0x104   : > { %4741 = vmatpush3.msra.mxu0 %v3646_v19  ;;  %4540 = vmatmul.mubr.f32.gmra.mxu1 %v6799_v35  ;;  %v5971_v22 = vpop.f32.mrf.mxu0  ;;  %v6812_v19 = vld [vmem:[#allocation35_spill] sm:$0xff]  ;;  %v3589_v35 = vld [vmem:[%s6717_s1 + $0x390] sm:$0xff] }
 0x105   : > { %4619 = vmatprep.mubr.f32.mxu0 %v5536_v46  ;;  %4662 = vmatprep.subr.mxu1 %v3597_v14  ;;  %v3644_v46 = vld [vmem:[%s6717_s1 + $0x448] sm:$0xff] }
 0x106   : > { %4620 = vmatmul.mubr.f32.gmra.mxu0 %v5540_v49  ;;  %4663 = vmatpush3.msra.mxu1 %v3597_v14  ;;  %v5978_v43 = vpop.f32.mrf.mxu1  ;;  %v6813_v14 = vld [vmem:[#allocation36_spill] sm:$0xff] }
 0x107   : > { %4742 = vmatprep.subr.mxu0 %v3645_v21  ;;  %4542 = vmatprep.mubr.f32.mxu1 %v6800_v48 }
 0x108   : > { %4743 = vmatpush3.msra.mxu0 %v3645_v21  ;;  %4543 = vmatmul.mubr.f32.gmra.mxu1 %v6801_v51  ;;  %v5985_v56 = vpop.f32.mrf.mxu0  ;;  %v5987_v49 = vpop.f32.mrf.mxu1 }
 0x109   : > { %4622 = vmatprep.mubr.f32.mxu0 %v5558_v16  ;;  %4664 = vmatprep.subr.mxu1 %v3596_v40  ;;  %v3643_v16 = vld [vmem:[%s6717_s1 + $0x440] sm:$0xff] }
 0x10a   : > { %4623 = vmatmul.mubr.f32.gmra.mxu0 %v5562_v20  ;;  %4665 = vmatpush3.msra.mxu1 %v3596_v40  ;;  %v5994_v0 = vpop.f32.mrf.mxu0  ;;  %v3594_v20 = vld [vmem:[%s6717_s1 + $0x3b8] sm:$0xff]  ;;  %v6814_v40 = vld [vmem:[#allocation37_spill] sm:$0xff] }
 0x10b   : > { %4744 = vmatprep.subr.mxu0 %v3644_v46  ;;  %4545 = vmatprep.mubr.f32.mxu1 %v6802_v4  ;;  %v3587_v4 = vld [vmem:[%s6717_s1 + $0x380] sm:$0xff] }
 0x10c   : > { %4745 = vmatpush3.msra.mxu0 %v3644_v46  ;;  %4546 = vmatmul.mubr.f32.gmra.mxu1 %v6803_v36  ;;  %v6001_v28 = vpop.f32.mrf.mxu1  ;;  %v6112_v46 = vld [vmem:[%s5124_s14 + $0x182] sm:$0xff] }
 0x10d   : > { %4625 = vmatprep.mubr.f32.mxu0 %v5580_v6  ;;  %4666 = vmatprep.subr.mxu1 %v3595_v59  ;;  %v3642_v6 = vld [vmem:[%s6717_s1 + $0x438] sm:$0xff] }
 0x10e   : > { %4626 = vmatmul.mubr.f32.gmra.mxu0 %v5584_v57  ;;  %4667 = vmatpush3.msra.mxu1 %v3595_v59  ;;  %v6008_v29 = vpop.f32.mrf.mxu0  ;;  %v6010_v34 = vpop.f32.mrf.mxu1  ;;  %v6116_v59 = vld [vmem:[%s5124_s14 + $0x18a] sm:$0xff] }
 0x10f   : > { %4746 = vmatprep.subr.mxu0 %v3643_v16  ;;  %4548 = vmatprep.mubr.f32.mxu1 %v6804_v37  ;;  %v3556_v37 = vld [vmem:[%s5124_s14 + $0x39] sm:$0xff] }
 0x110   : > { %4747 = vmatpush3.msra.mxu0 %v3643_v16  ;;  %4549 = vmatmul.mubr.f32.gmra.mxu1 %v6805_v42  ;;  %v6017_v57 = vpop.f32.mrf.mxu0  ;;  %v3635_v16 = vld [vmem:[%s6717_s1 + $0x400] sm:$0xff] }
 0x111   : > { %4628 = vmatprep.mubr.f32.mxu0 %v5602_v33  ;;  %4668 = vmatprep.subr.mxu1 %v3594_v20  ;;  %v3641_v33 = vld [vmem:[%s6717_s1 + $0x430] sm:$0xff] }
 0x112   : > { %4629 = vmatmul.mubr.f32.gmra.mxu0 %v5606_v25  ;;  %4669 = vmatpush3.msra.mxu1 %v3594_v20  ;;  %v6024_v50 = vpop.f32.mrf.mxu1  ;;  %v3555_v20 = vld [vmem:[%s5124_s14 + $0x31] sm:$0xff] }
 0x113   : > { %4748 = vmatprep.subr.mxu0 %v3642_v6  ;;  %4551 = vmatprep.mubr.f32.mxu1 %v6806_v53  ;;  %v3604_v53 = vld [vmem:[%s5124_s14 + $0x3a] sm:$0xff] }
 0x114   : > { %4749 = vmatpush3.msra.mxu0 %v3642_v6  ;;  %4552 = vmatmul.mubr.f32.gmra.mxu1 %v6807_v58  ;;  %v6031_v61 = vpop.f32.mrf.mxu0  ;;  %v6033_v25 = vpop.f32.mrf.mxu1  ;;  %v3603_v6 = vld [vmem:[%s5124_s14 + $0x32] sm:$0xff] }
 0x115   : > { %4631 = vmatprep.mubr.f32.mxu0 %v5624_v18  ;;  %4670 = vmatprep.subr.mxu1 %v3593_v45  ;;  %v3640_v18 = vld [vmem:[%s6717_s1 + $0x428] sm:$0xff] }
 0x116   : > { %4632 = vmatmul.mubr.f32.gmra.mxu0 %v5628_v9  ;;  %4671 = vmatpush3.msra.mxu1 %v3593_v45  ;;  %v6040_v41 = vpop.f32.mrf.mxu0  ;;  %v3591_v9 = vld [vmem:[%s6717_s1 + $0x3a0] sm:$0xff]  ;;  %v3557_v45 = vld [vmem:[%s5124_s14 + $0x49] sm:$0xff] }
 0x117   : > { %4750 = vmatprep.subr.mxu0 %v3641_v33  ;;  %4554 = vmatprep.mubr.f32.mxu1 %v6808_v2  ;;  %v3558_v2 = vld [vmem:[%s5124_s14 + $0x51] sm:$0xff] }
 0x118   : > { %4751 = vmatpush3.msra.mxu0 %v3641_v33  ;;  %4555 = vmatmul.mubr.f32.gmra.mxu1 %v6809_v5  ;;  %v6047_v52 = vpop.f32.mrf.mxu1  ;;  %v3605_v33 = vld [vmem:[%s5124_s14 + $0x4a] sm:$0xff] }
 0x119   : > { %4634 = vmatprep.mubr.f32.mxu0 %v5646_v7  ;;  %4672 = vmatprep.subr.mxu1 %v3592_v39  ;;  %v3639_v7 = vld [vmem:[%s6717_s1 + $0x420] sm:$0xff] }
 0x11a   : > { %4635 = vmatmul.mubr.f32.gmra.mxu0 %v5650_v62  ;;  %4673 = vmatpush3.msra.mxu1 %v3592_v39  ;;  %v6054_v54 = vpop.f32.mrf.mxu0  ;;  %v6056_v10 = vpop.f32.mrf.mxu1 }
 0x11b   : > { %4752 = vmatprep.subr.mxu0 %v3640_v18  ;;  %4557 = vmatprep.mubr.f32.mxu1 %v6810_v13 }
 0x11c   : > { %4753 = vmatpush3.msra.mxu0 %v3640_v18  ;;  %4558 = vmatmul.mubr.f32.gmra.mxu1 %v6811_v63  ;;  %v6063_v62 = vpop.f32.mrf.mxu0 }
 0x11d   : > { %4637 = vmatprep.mubr.f32.mxu0 %v5668_v60  ;;  %4674 = vmatprep.subr.mxu1 %v3591_v9  ;;  %v3638_v60 = vld [vmem:[%s6717_s1 + $0x418] sm:$0xff] }
 0x11e   : > { %4638 = vmatmul.mubr.f32.gmra.mxu0 %v5672_v38  ;;  %4675 = vmatpush3.msra.mxu1 %v3591_v9  ;;  %v6070_v17 = vpop.f32.mrf.mxu1  ;;  %v3559_v9 = vld [vmem:[%s5124_s14 + $0x61] sm:$0xff] }
 0x11f   : > { %4754 = vmatprep.subr.mxu0 %v3639_v7  ;;  %4560 = vmatprep.mubr.f32.mxu1 %v6812_v19 }
 0x120   : > { %4755 = vmatpush3.msra.mxu0 %v3639_v7  ;;  %4561 = vmatmul.mubr.f32.gmra.mxu1 %v6813_v14  ;;  %v6077_v27 = vpop.f32.mrf.mxu0  ;;  %v6079_v38 = vpop.f32.mrf.mxu1  ;;  %v3606_v7 = vld [vmem:[%s5124_s14 + $0x52] sm:$0xff] }
 0x121   : > { %4640 = vmatprep.mubr.f32.mxu0 %v5690_v47  ;;  %4676 = vmatprep.subr.mxu1 %v3590_v1  ;;  %v3637_v47 = vld [vmem:[%s6717_s1 + $0x410] sm:$0xff] }
 0x122   : > { %4641 = vmatmul.mubr.f32.gmra.mxu0 %v5694_v23  ;;  %4677 = vmatpush3.msra.mxu1 %v3590_v1  ;;  %v6086_v21 = vpop.f32.mrf.mxu0  ;;  %v3588_v23 = vld [vmem:[%s6717_s1 + $0x388] sm:$0xff] }
 0x123   : > { %4756 = vmatprep.subr.mxu0 %v3638_v60  ;;  %4563 = vmatprep.mubr.f32.mxu1 %v6814_v40 }
 0x124   : > { %4757 = vmatpush3.msra.mxu0 %v3638_v60  ;;  %4564 = vmatmul.mubr.f32.gmra.mxu1 %v5705_v11  ;;  %v6093_v48 = vpop.f32.mrf.mxu1 }
 0x125   : > { %4643 = vmatprep.mubr.f32.mxu0 %v5712_v44  ;;  %4678 = vmatprep.subr.mxu1 %v3589_v35 }
 0x126   : > { %4644 = vmatmul.mubr.f32.gmra.mxu0 %v5716_v15  ;;  %4679 = vmatpush3.msra.mxu1 %v3589_v35  ;;  %v6100_v11 = vpop.f32.mrf.mxu0  ;;  %v6102_v51 = vpop.f32.mrf.mxu1  ;;  %v3636_v15 = vld [vmem:[%s6717_s1 + $0x408] sm:$0xff] }
 0x127   : > { %4758 = vmatprep.subr.mxu0 %v3637_v47  ;;  %4566 = vmatprep.mubr.f32.mxu1 %v5720_v8  ;;  %v3560_v35 = vld [vmem:[%s5124_s14 + $0x69] sm:$0xff] }
 0x128   : > { %4759 = vmatpush3.msra.mxu0 %v3637_v47  ;;  %4567 = vmatmul.mubr.f32.gmra.mxu1 %v5727_v3  ;;  %v6109_v44 = vpop.f32.mrf.mxu0  ;;  %v3537_v3 = vld [vmem:[%s5124_s14 + $0x198] sm:$0xff] }
 0x129   : > { %4646 = vmatprep.mubr.f32.mxu0 %v5884_v30  ;;  %4680 = vmatprep.subr.mxu1 %v3588_v23  ;;  %v3538_v30 = vld [vmem:[%s5124_s14 + $0x1a0] sm:$0xff] }
 0x12a   : > { %4647 = vmatmul.mubr.f32.gmra.mxu0 %v5888_v31  ;;  %4681 = vmatpush3.msra.mxu1 %v3588_v23  ;;  %v6119_v8 = vpop.f32.mrf.mxu1  ;;  %v3561_v23 = vld [vmem:[%s5124_s14 + $0x79] sm:$0xff] }
 0x12b   : > { %4760 = vmatprep.subr.mxu0 %v3636_v15  ;;  %4569 = vmatprep.mubr.f32.mxu1 %v6112_v46 }
 0x12c   : > { %4761 = vmatpush3.msra.mxu0 %v3636_v15  ;;  %4570 = vmatmul.mubr.f32.gmra.mxu1 %v6116_v59  ;;  %v6128_v31 = vpop.f32.mrf.mxu0  ;;  %v6130_v36 = vpop.f32.mrf.mxu1 }
 0x12d   : > { %4649 = vmatprep.mubr.f32.mxu0 %v3537_v3  ;;  %4682 = vmatprep.subr.mxu1 %v3587_v4  ;;  %v3608_v3 = vld [vmem:[%s5124_s14 + $0x6a] sm:$0xff] }
 0x12e   : > { %4650 = vmatmul.mubr.f32.gmra.mxu0 %v3538_v30  ;;  %4683 = vmatpush3.msra.mxu1 %v3587_v4  ;;  %v6137_v42 = vpop.f32.mrf.mxu0 }
 0x12f   : > { %4762 = vmatprep.subr.mxu0 %v3635_v16  ;;  %4684 = vmatprep.mubr.f32.mxu1 %v3555_v20 }
 0x130   : > { %4763 = vmatpush3.msra.mxu0 %v3635_v16  ;;  %v4206_v58 = vpop.f32.mrf.mxu1  ;;  %4685 = vmatmul.mubr.f32.vlgmr.msra.gmra.mxu1 %v3556_v37  ;;  %v3609_v16 = vld [vmem:[%s5124_s14 + $0x7a] sm:$0xff] }
 0x131   : > { %v685_v39 = vadd.f32 %v4206_v58, %v5962_v24  ;;  %4764 = vmatprep.mubr.f32.mxu0 %v3603_v6  ;;  %4687 = vmatprep.mubr.f32.mxu1 %v3557_v45  ;;  %v3607_v24 = vld [vmem:[%s5124_s14 + $0x62] sm:$0xff] }
 0x132   : > { %v4286_v5 = vpop.f32.mrf.mxu0  ;;  %4765 = vmatmul.mubr.f32.vlgmr.msra.gmra.mxu0 %v3604_v53  ;;  %v679_v18 = vpop.f32.mrf.mxu1  ;;  %v3562_v37 = vld [vmem:[%s5124_s14 + $0x81] sm:$0xff]  ;;  %v3563_v53 = vld [vmem:[%s5124_s14 + $0x91] sm:$0xff] }
 0x133   : > { %v6146_v13 = vadd.f32 %v4286_v5, %v685_v39  ;;  %v680_v63 = vadd.f32 %v679_v18, %v5971_v22  ;;  %4767 = vmatprep.mubr.f32.mxu0 %v3605_v33  ;;  %v3610_v33 = vld [vmem:[%s5124_s14 + $0x82] sm:$0xff]  ;;  %v3611_v5 = vld [vmem:[%s5124_s14 + $0x92] sm:$0xff] }
 0x134   : > { %v953_v1 = vpop.f32.mrf.mxu0  ;;  %v4209_v19 = vpop.f32.mrf.mxu1  ;;  %4688 = vmatmul.mubr.f32.gmra.mxu1 %v3558_v2 }
 0x135   : > { %v6151_v14 = vadd.f32 %v953_v1, %v680_v63  ;;  %v695_v60 = vadd.f32 %v4209_v19, %v5985_v56  ;;  %4690 = vmatprep.mubr.f32.mxu1 %v3559_v9  ;;  %v3564_v9 = vld [vmem:[%s5124_s14 + $0x99] sm:$0xff]  ;;  %v3565_v1 = vld [vmem:[%s5124_s14 + $0xa9] sm:$0xff] }
 0x136   : > { %v4289_v40 = vpop.f32.mrf.mxu0  ;;  %4768 = vmatmul.mubr.f32.gmra.mxu0 %v3606_v7  ;;  %v689_v47 = vpop.f32.mrf.mxu1 }
 0x137   : > { %v6156_v22 = vadd.f32 %v4289_v40, %v695_v60  ;;  %v690_v15 = vadd.f32 %v689_v47, %v5994_v0  ;;  %4770 = vmatprep.mubr.f32.mxu0 %v3607_v24  ;;  %v3612_v24 = vld [vmem:[%s5124_s14 + $0x9a] sm:$0xff]  ;;  %v3613_v40 = vld [vmem:[%s5124_s14 + $0xaa] sm:$0xff] }
 0x138   : > { %v963_v4 = vpop.f32.mrf.mxu0  ;;  %v4212_v30 = vpop.f32.mrf.mxu1  ;;  %4691 = vmatmul.mubr.f32.gmra.mxu1 %v3560_v35 }
 0x139   : > { %v6161_v56 = vadd.f32 %v963_v4, %v690_v15  ;;  %v705_v20 = vadd.f32 %v4212_v30, %v6008_v29  ;;  %4693 = vmatprep.mubr.f32.mxu1 %v3561_v23  ;;  %v3566_v23 = vld [vmem:[%s5124_s14 + $0xb1] sm:$0xff]  ;;  %v3567_v4 = vld [vmem:[%s5124_s14 + $0xc1] sm:$0xff] }
 0x13a   : > { %v4292_v6 = vpop.f32.mrf.mxu0  ;;  %4771 = vmatmul.mubr.f32.gmra.mxu0 %v3608_v3  ;;  %v699_v45 = vpop.f32.mrf.mxu1 }
 0x13b   : > { %v6166_v0 = vadd.f32 %v4292_v6, %v705_v20  ;;  %v700_v58 = vadd.f32 %v699_v45, %v6017_v57  ;;  %4773 = vmatprep.mubr.f32.mxu0 %v3609_v16  ;;  %v3614_v16 = vld [vmem:[%s5124_s14 + $0xb2] sm:$0xff]  ;;  %v3615_v6 = vld [vmem:[%s5124_s14 + $0xc2] sm:$0xff] }
 0x13c   : > { %v973_v39 = vpop.f32.mrf.mxu0  ;;  %v4215_v2 = vpop.f32.mrf.mxu1  ;;  %4694 = vmatmul.mubr.f32.gmra.mxu1 %v3562_v37 }
 0x13d   : > { %v6171_v29 = vadd.f32 %v973_v39, %v700_v58  ;;  %v715_v18 = vadd.f32 %v4215_v2, %v6031_v61  ;;  %4696 = vmatprep.mubr.f32.mxu1 %v3563_v53  ;;  %v3568_v53 = vld [vmem:[%s5124_s14 + $0xc9] sm:$0xff]  ;;  %v3569_v39 = vld [vmem:[%s5124_s14 + $0xd9] sm:$0xff] }
 0x13e   : > { %v4295_v63 = vpop.f32.mrf.mxu0  ;;  %4774 = vmatmul.mubr.f32.gmra.mxu0 %v3610_v33  ;;  %v709_v7 = vpop.f32.mrf.mxu1 }
 0x13f   : > { %v6176_v57 = vadd.f32 %v4295_v63, %v715_v18  ;;  %v710_v19 = vadd.f32 %v709_v7, %v6040_v41  ;;  %4776 = vmatprep.mubr.f32.mxu0 %v3611_v5  ;;  %v3616_v5 = vld [vmem:[%s5124_s14 + $0xca] sm:$0xff]  ;;  %v3617_v63 = vld [vmem:[%s5124_s14 + $0xda] sm:$0xff] }
 0x140   : > { %v983_v60 = vpop.f32.mrf.mxu0  ;;  %v4218_v35 = vpop.f32.mrf.mxu1  ;;  %4697 = vmatmul.mubr.f32.gmra.mxu1 %v3564_v9 }
 0x141   : > { %v6181_v61 = vadd.f32 %v983_v60, %v710_v19  ;;  %v725_v47 = vadd.f32 %v4218_v35, %v6054_v54  ;;  %4699 = vmatprep.mubr.f32.mxu1 %v3565_v1  ;;  %v3570_v1 = vld [vmem:[%s5124_s14 + $0xe1] sm:$0xff]  ;;  %v3571_v60 = vld [vmem:[%s5124_s14 + $0xf1] sm:$0xff] }
 0x142   : > { %v4298_v15 = vpop.f32.mrf.mxu0  ;;  %4777 = vmatmul.mubr.f32.gmra.mxu0 %v3612_v24  ;;  %v719_v3 = vpop.f32.mrf.mxu1 }
 0x143   : > { %v6186_v41 = vadd.f32 %v4298_v15, %v725_v47  ;;  %v720_v30 = vadd.f32 %v719_v3, %v6063_v62  ;;  %4779 = vmatprep.mubr.f32.mxu0 %v3613_v40  ;;  %v3618_v40 = vld [vmem:[%s5124_s14 + $0xe2] sm:$0xff]  ;;  %v3619_v15 = vld [vmem:[%s5124_s14 + $0xf2] sm:$0xff] }
 0x144   : > { %v993_v20 = vpop.f32.mrf.mxu0  ;;  %v4221_v37 = vpop.f32.mrf.mxu1  ;;  %4700 = vmatmul.mubr.f32.gmra.mxu1 %v3566_v23 }
 0x145   : > { %v6191_v54 = vadd.f32 %v993_v20, %v720_v30  ;;  %v735_v45 = vadd.f32 %v4221_v37, %v6077_v27  ;;  %4702 = vmatprep.mubr.f32.mxu1 %v3567_v4  ;;  %v3572_v4 = vld [vmem:[%s5124_s14 + $0xf9] sm:$0xff]  ;;  %v3573_v20 = vld [vmem:[%s5124_s14 + $0x109] sm:$0xff] }
 0x146   : > { %v4301_v58 = vpop.f32.mrf.mxu0  ;;  %4780 = vmatmul.mubr.f32.gmra.mxu0 %v3614_v16  ;;  %v729_v33 = vpop.f32.mrf.mxu1 }
 0x147   : > { %v6196_v62 = vadd.f32 %v4301_v58, %v735_v45  ;;  %v730_v2 = vadd.f32 %v729_v33, %v6086_v21  ;;  %4782 = vmatprep.mubr.f32.mxu0 %v3615_v6  ;;  %v3620_v6 = vld [vmem:[%s5124_s14 + $0xfa] sm:$0xff]  ;;  %v3621_v58 = vld [vmem:[%s5124_s14 + $0x10a] sm:$0xff] }
 0x148   : > { %v1003_v18 = vpop.f32.mrf.mxu0  ;;  %v4224_v9 = vpop.f32.mrf.mxu1  ;;  %4703 = vmatmul.mubr.f32.gmra.mxu1 %v3568_v53 }
 0x149   : > { %v6201_v27 = vadd.f32 %v1003_v18, %v730_v2  ;;  %v745_v7 = vadd.f32 %v4224_v9, %v6100_v11  ;;  %4705 = vmatprep.mubr.f32.mxu1 %v3569_v39  ;;  %v3574_v39 = vld [vmem:[%s5124_s14 + $0x111] sm:$0xff]  ;;  %v3575_v18 = vld [vmem:[%s5124_s14 + $0x121] sm:$0xff] }
 0x14a   : > { %v4304_v19 = vpop.f32.mrf.mxu0  ;;  %4783 = vmatmul.mubr.f32.gmra.mxu0 %v3616_v5  ;;  %v739_v24 = vpop.f32.mrf.mxu1 }
 0x14b   : > { %v6206_v21 = vadd.f32 %v4304_v19, %v745_v7  ;;  %v740_v35 = vadd.f32 %v739_v24, %v6109_v44  ;;  %4785 = vmatprep.mubr.f32.mxu0 %v3617_v63  ;;  %v3622_v63 = vld [vmem:[%s5124_s14 + $0x112] sm:$0xff]  ;;  %v3623_v19 = vld [vmem:[%s5124_s14 + $0x122] sm:$0xff] }
 0x14c   : > { %v1013_v47 = vpop.f32.mrf.mxu0  ;;  %v4227_v23 = vpop.f32.mrf.mxu1  ;;  %4706 = vmatmul.mubr.f32.gmra.mxu1 %v3570_v1 }
 0x14d   : > { %v6211_v11 = vadd.f32 %v1013_v47, %v740_v35  ;;  %v755_v3 = vadd.f32 %v4227_v23, %v6128_v31  ;;  %4708 = vmatprep.mubr.f32.mxu1 %v3571_v60  ;;  %v3576_v60 = vld [vmem:[%s5124_s14 + $0x129] sm:$0xff]  ;;  %v3577_v47 = vld [vmem:[%s5124_s14 + $0x139] sm:$0xff] }
 0x14e   : > { %v4307_v30 = vpop.f32.mrf.mxu0  ;;  %4786 = vmatmul.mubr.f32.gmra.mxu0 %v3618_v40  ;;  %v749_v16 = vpop.f32.mrf.mxu1 }
 0x14f   : > { %v6216_v44 = vadd.f32 %v4307_v30, %v755_v3  ;;  %v750_v37 = vadd.f32 %v749_v16, %v6137_v42  ;;  %4788 = vmatprep.mubr.f32.mxu0 %v3619_v15  ;;  %v3624_v15 = vld [vmem:[%s5124_s14 + $0x12a] sm:$0xff]  ;;  %v3625_v30 = vld [vmem:[%s5124_s14 + $0x13a] sm:$0xff] }
 0x150   : > { %v1023_v45 = vpop.f32.mrf.mxu0  ;;  %v4230_v53 = vpop.f32.mrf.mxu1  ;;  %4709 = vmatmul.mubr.f32.gmra.mxu1 %v3572_v4 }
 0x151   : > { %v6221_v31 = vadd.f32 %v1023_v45, %v750_v37  ;;  %v765_v33 = vadd.f32 %v4230_v53, %v5956_v12  ;;  %4711 = vmatprep.mubr.f32.mxu1 %v3573_v20  ;;  %v3578_v20 = vld [vmem:[%s5124_s14 + $0x141] sm:$0xff]  ;;  %v3579_v45 = vld [vmem:[%s5124_s14 + $0x151] sm:$0xff] }
 0x152   : > { %v4310_v2 = vpop.f32.mrf.mxu0  ;;  %4789 = vmatmul.mubr.f32.gmra.mxu0 %v3620_v6  ;;  %v759_v5 = vpop.f32.mrf.mxu1 }
 0x153   : > { %v6226_v42 = vadd.f32 %v4310_v2, %v765_v33  ;;  %v760_v9 = vadd.f32 %v759_v5, %v5965_v32  ;;  %4791 = vmatprep.mubr.f32.mxu0 %v3621_v58  ;;  %v3626_v58 = vld [vmem:[%s5124_s14 + $0x142] sm:$0xff]  ;;  %v3627_v2 = vld [vmem:[%s5124_s14 + $0x152] sm:$0xff] }
 0x154   : > { %v1033_v7 = vpop.f32.mrf.mxu0  ;;  %v4233_v1 = vpop.f32.mrf.mxu1  ;;  %4712 = vmatmul.mubr.f32.gmra.mxu1 %v3574_v39 }
 0x155   : > { %v6231_v12 = vadd.f32 %v1033_v7, %v760_v9  ;;  %v775_v24 = vadd.f32 %v4233_v1, %v5978_v43  ;;  %4714 = vmatprep.mubr.f32.mxu1 %v3575_v18  ;;  %v3580_v18 = vld [vmem:[%s5124_s14 + $0x159] sm:$0xff]  ;;  %v3581_v7 = vld [vmem:[%s5124_s14 + $0x169] sm:$0xff] }
 0x156   : > { %v4313_v35 = vpop.f32.mrf.mxu0  ;;  %4792 = vmatmul.mubr.f32.gmra.mxu0 %v3622_v63  ;;  %v769_v40 = vpop.f32.mrf.mxu1 }
 0x157   : > { %v6236_v32 = vadd.f32 %v4313_v35, %v775_v24  ;;  %v770_v23 = vadd.f32 %v769_v40, %v5987_v49  ;;  %4794 = vmatprep.mubr.f32.mxu0 %v3623_v19  ;;  %v3628_v19 = vld [vmem:[%s5124_s14 + $0x15a] sm:$0xff]  ;;  %v3629_v35 = vld [vmem:[%s5124_s14 + $0x16a] sm:$0xff] }
 0x158   : > { %v1043_v3 = vpop.f32.mrf.mxu0  ;;  %v4236_v4 = vpop.f32.mrf.mxu1  ;;  %4715 = vmatmul.mubr.f32.gmra.mxu1 %v3576_v60 }
 0x159   : > { %v6241_v43 = vadd.f32 %v1043_v3, %v770_v23  ;;  %v785_v16 = vadd.f32 %v4236_v4, %v6001_v28  ;;  %4717 = vmatprep.mubr.f32.mxu1 %v3577_v47  ;;  %v3582_v47 = vld [vmem:[%s5124_s14 + $0x171] sm:$0xff] }
 0x15a   : > { %v4316_v37 = vpop.f32.mrf.mxu0  ;;  %4795 = vmatmul.mubr.f32.gmra.mxu0 %v3624_v15  ;;  %v779_v6 = vpop.f32.mrf.mxu1  ;;  %v3630_v4 = vld [vmem:[%s5124_s14 + $0x172] sm:$0xff] }
 0x15b   : > { %v6246_v49 = vadd.f32 %v4316_v37, %v785_v16  ;;  %v780_v53 = vadd.f32 %v779_v6, %v6010_v34  ;;  %4797 = vmatprep.mubr.f32.mxu0 %v3625_v30 }
 0x15c   : > { %v1053_v33 = vpop.f32.mrf.mxu0  ;;  %v4239_v39 = vpop.f32.mrf.mxu1  ;;  %4718 = vmatmul.mubr.f32.gmra.mxu1 %v3578_v20 }
 0x15d   : > { %v6251_v28 = vadd.f32 %v1053_v33, %v780_v53  ;;  %v795_v5 = vadd.f32 %v4239_v39, %v6024_v50  ;;  %4720 = vmatprep.mubr.f32.mxu1 %v3579_v45  ;;  %v3585_v45 = vld [vmem:[%s5124_s14 + $0x199] sm:$0xff] }
 0x15e   : > { %v4319_v9 = vpop.f32.mrf.mxu0  ;;  %4798 = vmatmul.mubr.f32.gmra.mxu0 %v3626_v58  ;;  %v789_v63 = vpop.f32.mrf.mxu1  ;;  %v3633_v39 = vld [vmem:[%s5124_s14 + $0x19a] sm:$0xff] }
 0x15f   : > { %v6256_v34 = vadd.f32 %v4319_v9, %v795_v5  ;;  %v790_v1 = vadd.f32 %v789_v63, %v6033_v25  ;;  %4800 = vmatprep.mubr.f32.mxu0 %v3627_v2  ;;  %v3586_v2 = vld [vmem:[%s5124_s14 + $0x1a1] sm:$0xff] }
 0x160   : > { %v1063_v24 = vpop.f32.mrf.mxu0  ;;  %v4242_v60 = vpop.f32.mrf.mxu1  ;;  %4721 = vmatmul.mubr.f32.gmra.mxu1 %v3580_v18 }
 0x161   : > { %v6261_v40 = vadd.f32 %v1063_v24, %v790_v1  ;;  %v805_v50 = vadd.f32 %v4242_v60, %v6047_v52  ;;  %4723 = vmatprep.mubr.f32.mxu1 %v3581_v7 }
 0x162   : > { %v4322_v23 = vpop.f32.mrf.mxu0  ;;  %4801 = vmatmul.mubr.f32.gmra.mxu0 %v3628_v19  ;;  %v799_v15 = vpop.f32.mrf.mxu1 }
 0x163   : > { %v6265_v3 = vadd.f32 %v4322_v23, %v805_v50  ;;  %v800_v25 = vadd.f32 %v799_v15, %v6056_v10  ;;  %4803 = vmatprep.mubr.f32.mxu0 %v3629_v35 }
 0x164   : > { %v1073_v30 = vpop.f32.mrf.mxu0  ;;  %v4245_v16 = vpop.f32.mrf.mxu1  ;;  %4724 = vmatmul.mubr.f32.gmra.mxu1 %v3582_v47 }
 0x165   : > { %v6269_v20 = vadd.f32 %v1073_v30, %v800_v25  ;;  %v815_v52 = vadd.f32 %v4245_v16, %v6070_v17  ;;  %4726 = vmatprep.mubr.f32.mxu1 %v5892_v55 }
 0x166   : > { %v4325_v37 = vpop.f32.mrf.mxu0  ;;  %4804 = vmatmul.mubr.f32.gmra.mxu0 %v3630_v4  ;;  %v809_v6 = vpop.f32.mrf.mxu1 }
 0x167   : > { %v6274_v53 = vadd.f32 %v4325_v37, %v815_v52  ;;  %v810_v10 = vadd.f32 %v809_v6, %v6079_v38  ;;  %4806 = vmatprep.mubr.f32.mxu0 %v6112_v46  ;;  %v3634_v46 = vld [vmem:[%s5124_s14 + $0x1a2] sm:$0xff] }
 0x168   : > { %v1083_v58 = vpop.f32.mrf.mxu0  ;;  %v4248_v33 = vpop.f32.mrf.mxu1  ;;  %4727 = vmatmul.mubr.f32.gmra.mxu1 %v5899_v26 }
 0x169   : > { %v6280_v17 = vadd.f32 %v1083_v58, %v810_v10  ;;  %v825_v55 = vadd.f32 %v4248_v33, %v6093_v48  ;;  %4729 = vmatprep.mubr.f32.mxu1 %v3585_v45 }
 0x16a   : > { %v4328_v5 = vpop.f32.mrf.mxu0  ;;  %4807 = vmatmul.mubr.f32.gmra.mxu0 %v6116_v59  ;;  %v819_v18 = vpop.f32.mrf.mxu1 }
 0x16b   : > { %v6285_v9 = vadd.f32 %v4328_v5, %v825_v55  ;;  %v820_v38 = vadd.f32 %v819_v18, %v6102_v51  ;;  %4809 = vmatprep.mubr.f32.mxu0 %v3633_v39 }
 0x16c   : > { %v1093_v63 = vpop.f32.mrf.mxu0  ;;  %v4251_v7 = vpop.f32.mrf.mxu1  ;;  %4730 = vmatmul.mubr.f32.gmra.mxu1 %v3586_v2 }
 0x16d   : > { %v6289_v26 = vadd.f32 %v1093_v63, %v820_v38  ;;  %v835_v1 = vadd.f32 %v4251_v7, %v6119_v8 }
 0x16e   : > { %v4331_v48 = vpop.f32.mrf.mxu0  ;;  %4810 = vmatmul.mubr.f32.gmra.mxu0 %v3634_v46  ;;  %v829_v19 = vpop.f32.mrf.mxu1 }
 0x16f   : > { %v6292_v24 = vadd.f32 %v4331_v48, %v835_v1  ;;  %v830_v59 = vadd.f32 %v829_v19, %v6130_v36 }
 0x170   : > { %v1103_v60 = vpop.f32.mrf.mxu0  ;;  %v4366_v35 = vpop.f32.mrf.mxu1 }
 0x171   : > { %v6295_v50 = vadd.f32 %v1103_v60, %v830_v59  ;;  %v1420_v51 = vadd.f32 %v4366_v35, %v6146_v13 }
 0x172   : > { %v4446_v47 = vpop.f32.mrf.mxu0  ;;  %v1260_v23 = vpop.f32.mrf.mxu1 }
 0x173   : > { %v6298_v15 = vadd.f32 %v4446_v47, %v1420_v51  ;;  %v1419_v25 = vadd.f32 %v1260_v23, %v6151_v14 }
 0x174   : > { %v1566_v8 = vpop.f32.mrf.mxu0  ;;  %v4369_v4 = vpop.f32.mrf.mxu1 }
 0x175   : > { %v6301_v30 = vadd.f32 %v1566_v8, %v1419_v25  ;;  %v1422_v16 = vadd.f32 %v4369_v4, %v6156_v22 }
 0x176   : > { %v4449_v52 = vpop.f32.mrf.mxu0  ;;  %v1270_v36 = vpop.f32.mrf.mxu1 }
 0x177   : > { %v6304_v37 = vadd.f32 %v4449_v52, %v1422_v16  ;;  %v1421_v6 = vadd.f32 %v1270_v36, %v6161_v56 }
 0x178   : > { %v1576_v45 = vpop.f32.mrf.mxu0  ;;  %v4372_v13 = vpop.f32.mrf.mxu1 }
 0x179   : > { %v6307_v10 = vadd.f32 %v1576_v45, %v1421_v6  ;;  %v1424_v58 = vadd.f32 %v4372_v13, %v6166_v0 }
 0x17a   : > { %v4452_v33 = vpop.f32.mrf.mxu0  ;;  %v1280_v14 = vpop.f32.mrf.mxu1 }
 0x17b   : > { %v6310_v39 = vadd.f32 %v4452_v33, %v1424_v58  ;;  %v1423_v55 = vadd.f32 %v1280_v14, %v6171_v29 }
 0x17c   : > { %v1586_v2 = vpop.f32.mrf.mxu0  ;;  %v4375_v22 = vpop.f32.mrf.mxu1 }
 0x17d   : > { %v6313_v5 = vadd.f32 %v1586_v2, %v1423_v55  ;;  %v1426_v18 = vadd.f32 %v4375_v22, %v6176_v57 }
 0x17e   : > { %v4455_v38 = vpop.f32.mrf.mxu0  ;;  %v1290_v56 = vpop.f32.mrf.mxu1 }
 0x17f   : > { %v6316_v46 = vadd.f32 %v4455_v38, %v1426_v18  ;;  %v1425_v63 = vadd.f32 %v1290_v56, %v6181_v61 }
 0x180   : > { %v1596_v7 = vpop.f32.mrf.mxu0  ;;  %v4378_v0 = vpop.f32.mrf.mxu1 }
 0x181   : > { %v6319_v1 = vadd.f32 %v1596_v7, %v1425_v63  ;;  %v1428_v48 = vadd.f32 %v4378_v0, %v6186_v41 }
 0x182   : > { %v4458_v19 = vpop.f32.mrf.mxu0  ;;  %v1300_v29 = vpop.f32.mrf.mxu1 }
 0x183   : > { %v6322_v59 = vadd.f32 %v4458_v19, %v1428_v48  ;;  %v1427_v60 = vadd.f32 %v1300_v29, %v6191_v54 }
 0x184   : > { %v1606_v35 = vpop.f32.mrf.mxu0  ;;  %v4381_v57 = vpop.f32.mrf.mxu1 }
 0x185   : > { %v6325_v51 = vadd.f32 %v1606_v35, %v1427_v60  ;;  %v1430_v47 = vadd.f32 %v4381_v57, %v6196_v62 }
 0x186   : > { %v4461_v23 = vpop.f32.mrf.mxu0  ;;  %v1310_v61 = vpop.f32.mrf.mxu1 }
 0x187   : > { %v6328_v25 = vadd.f32 %v4461_v23, %v1430_v47  ;;  %v1429_v8 = vadd.f32 %v1310_v61, %v6201_v27 }
 0x188   : > { %v1616_v4 = vpop.f32.mrf.mxu0  ;;  %v4384_v41 = vpop.f32.mrf.mxu1 }
 0x189   : > { %v6331_v16 = vadd.f32 %v1616_v4, %v1429_v8  ;;  %v1432_v52 = vadd.f32 %v4384_v41, %v6206_v21 }
 0x18a   : > { %v4464_v36 = vpop.f32.mrf.mxu0  ;;  %v1320_v54 = vpop.f32.mrf.mxu1 }
 0x18b   : > { %v6334_v6 = vadd.f32 %v4464_v36, %v1432_v52  ;;  %v1431_v45 = vadd.f32 %v1320_v54, %v6211_v11 }
 0x18c   : > { %v1626_v13 = vpop.f32.mrf.mxu0  ;;  %v4387_v62 = vpop.f32.mrf.mxu1 }
 0x18d   : > { %v6337_v58 = vadd.f32 %v1626_v13, %v1431_v45  ;;  %v1434_v33 = vadd.f32 %v4387_v62, %v6216_v44 }
 0x18e   : > { %v4467_v14 = vpop.f32.mrf.mxu0  ;;  %v1330_v27 = vpop.f32.mrf.mxu1 }
 0x18f   : > { %v6340_v55 = vadd.f32 %v4467_v14, %v1434_v33  ;;  %v1433_v2 = vadd.f32 %v1330_v27, %v6221_v31 }
 0x190   : > { %v1636_v22 = vpop.f32.mrf.mxu0  ;;  %v4390_v21 = vpop.f32.mrf.mxu1 }
 0x191   : > { %v6343_v18 = vadd.f32 %v1636_v22, %v1433_v2  ;;  %v1436_v38 = vadd.f32 %v4390_v21, %v6226_v42 }
 0x192   : > { %v4470_v56 = vpop.f32.mrf.mxu0  ;;  %v1340_v11 = vpop.f32.mrf.mxu1 }
 0x193   : > { %v6346_v63 = vadd.f32 %v4470_v56, %v1436_v38  ;;  %v1435_v7 = vadd.f32 %v1340_v11, %v6231_v12 }
 0x194   : > { %v1646_v0 = vpop.f32.mrf.mxu0  ;;  %v4393_v44 = vpop.f32.mrf.mxu1 }
 0x195   : > { %v6349_v48 = vadd.f32 %v1646_v0, %v1435_v7  ;;  %v1438_v19 = vadd.f32 %v4393_v44, %v6236_v32 }
 0x196   : > { %v4473_v29 = vpop.f32.mrf.mxu0  ;;  %v1350_v31 = vpop.f32.mrf.mxu1 }
 0x197   : > { %v6352_v60 = vadd.f32 %v4473_v29, %v1438_v19  ;;  %v1437_v35 = vadd.f32 %v1350_v31, %v6241_v43 }
 0x198   : > { %v1656_v57 = vpop.f32.mrf.mxu0  ;;  %v4396_v42 = vpop.f32.mrf.mxu1 }
 0x199   : > { %6815 = vst [vmem:[#allocation8_spill] sm:$0xff] %v6352_v60  ;;  %v6355_v47 = vadd.f32 %v1656_v57, %v1437_v35  ;;  %v1440_v23 = vadd.f32 %v4396_v42, %v6246_v49 }
 0x19a   : > { %v4476_v61 = vpop.f32.mrf.mxu0  ;;  %v1360_v12 = vpop.f32.mrf.mxu1 }
 0x19b   : > { %6816 = vst [vmem:[#allocation9_spill] sm:$0xff] %v6355_v47  ;;  %v6358_v8 = vadd.f32 %v4476_v61, %v1440_v23  ;;  %v1439_v4 = vadd.f32 %v1360_v12, %v6251_v28 }
 0x19c   : > { %v1666_v41 = vpop.f32.mrf.mxu0  ;;  %v4399_v32 = vpop.f32.mrf.mxu1 }
 0x19d   : > { %6817 = vst [vmem:[#allocation10_spill] sm:$0xff] %v6358_v8  ;;  %v6361_v52 = vadd.f32 %v1666_v41, %v1439_v4  ;;  %v1442_v36 = vadd.f32 %v4399_v32, %v6256_v34 }
 0x19e   : > { %v4479_v54 = vpop.f32.mrf.mxu0  ;;  %v1370_v43 = vpop.f32.mrf.mxu1 }
 0x19f   : > { %6818 = vst [vmem:[#allocation11_spill] sm:$0xff] %v6361_v52  ;;  %v6364_v45 = vadd.f32 %v4479_v54, %v1442_v36  ;;  %v1441_v13 = vadd.f32 %v1370_v43, %v6261_v40 }
 0x1a0   : > { %v1676_v62 = vpop.f32.mrf.mxu0  ;;  %v4402_v49 = vpop.f32.mrf.mxu1 }
 0x1a1   : > { %6819 = vst [vmem:[#allocation12_spill] sm:$0xff] %v6364_v45  ;;  %v6367_v33 = vadd.f32 %v1676_v62, %v1441_v13  ;;  %v1444_v14 = vadd.f32 %v4402_v49, %v6265_v3 }
 0x1a2   : > { %v4482_v27 = vpop.f32.mrf.mxu0  ;;  %v1380_v28 = vpop.f32.mrf.mxu1 }
 0x1a3   : > { %6820 = vst [vmem:[#allocation13_spill] sm:$0xff] %v6367_v33  ;;  %v6370_v2 = vadd.f32 %v4482_v27, %v1444_v14  ;;  %v1443_v22 = vadd.f32 %v1380_v28, %v6269_v20 }
 0x1a4   : > { %v1686_v21 = vpop.f32.mrf.mxu0  ;;  %v4405_v34 = vpop.f32.mrf.mxu1 }
 0x1a5   : > { %6821 = vst [vmem:[#allocation14_spill] sm:$0xff] %v6370_v2  ;;  %v6373_v38 = vadd.f32 %v1686_v21, %v1443_v22  ;;  %v1446_v56 = vadd.f32 %v4405_v34, %v6274_v53 }
 0x1a6   : > { %v4485_v11 = vpop.f32.mrf.mxu0  ;;  %v1390_v40 = vpop.f32.mrf.mxu1 }
 0x1a7   : > { %6822 = vst [vmem:[#allocation15_spill] sm:$0xff] %v6373_v38  ;;  %v6376_v7 = vadd.f32 %v4485_v11, %v1446_v56  ;;  %v1445_v0 = vadd.f32 %v1390_v40, %v6280_v17 }
 0x1a8   : > { %v1696_v44 = vpop.f32.mrf.mxu0  ;;  %v4408_v3 = vpop.f32.mrf.mxu1 }
 0x1a9   : > { %6823 = vst [vmem:[#allocation16_spill] sm:$0xff] %v6376_v7  ;;  %v6379_v19 = vadd.f32 %v1696_v44, %v1445_v0  ;;  %v1448_v29 = vadd.f32 %v4408_v3, %v6285_v9 }
 0x1aa   : > { %v4488_v31 = vpop.f32.mrf.mxu0  ;;  %v1400_v20 = vpop.f32.mrf.mxu1 }
 0x1ab   : > { %6824 = vst [vmem:[#allocation17_spill] sm:$0xff] %v6379_v19  ;;  %v6382_v35 = vadd.f32 %v4488_v31, %v1448_v29  ;;  %v1447_v57 = vadd.f32 %v1400_v20, %v6289_v26 }
 0x1ac   : > { %v1706_v42 = vpop.f32.mrf.mxu0  ;;  %v4411_v53 = vpop.f32.mrf.mxu1 }
 0x1ad   : > { %6825 = vst [vmem:[#allocation18_spill] sm:$0xff] %v6382_v35  ;;  %v6385_v23 = vadd.f32 %v1706_v42, %v1447_v57  ;;  %v1450_v61 = vadd.f32 %v4411_v53, %v6292_v24 }
 0x1ae   : > { %v4491_v12 = vpop.f32.mrf.mxu0  ;;  %v1410_v17 = vpop.f32.mrf.mxu1 }
 0x1af   : > { %6826 = vst [vmem:[#allocation19_spill] sm:$0xff] %v6385_v23  ;;  %v6388_v4 = vadd.f32 %v4491_v12, %v1450_v61  ;;  %v1449_v41 = vadd.f32 %v1410_v17, %v6295_v50 }
 0x1b0   : > { %v1716_v32 = vpop.f32.mrf.mxu0  ;;  %v4526_v9 = vpop.f32.mrf.mxu1 }
 0x1b1   : > { %6827 = vst [vmem:[#allocation20_spill] sm:$0xff] %v6388_v4  ;;  %v6391_v36 = vadd.f32 %v1716_v32, %v1449_v41 }
 0x1b2   : > { %v6393_v54 = vpop.f32.mrf.mxu0  ;;  %v1872_v43 = vpop.f32.mrf.mxu1 }
 0x1b3   : > { %6828 = vst [vmem:[#allocation21_spill] sm:$0xff] %v6391_v36 }
 0x1b4   : > { %v6395_v26 = vpop.f32.mrf.mxu0  ;;  %v4529_v13 = vpop.f32.mrf.mxu1 }
 0x1b6   : > { %v6397_v62 = vpop.f32.mrf.mxu0  ;;  %v6399_v49 = vpop.f32.mrf.mxu1 }
 0x1b8   : > { %v6401_v24 = vpop.f32.mrf.mxu0  ;;  %v6403_v14 = vpop.f32.mrf.mxu1 }
 0x1ba   : > { %v6405_v27 = vpop.f32.mrf.mxu0  ;;  %v6407_v50 = vpop.f32.mrf.mxu1 }
 0x1bc   : > { %v6409_v28 = vpop.f32.mrf.mxu0  ;;  %v6411_v22 = vpop.f32.mrf.mxu1 }
 0x1be   : > { %v6413_v21 = vpop.f32.mrf.mxu0  ;;  %v6415_v34 = vpop.f32.mrf.mxu1 }
 0x1c0   : > { %v6417_v56 = vpop.f32.mrf.mxu0  ;;  %v6419_v11 = vpop.f32.mrf.mxu1 }
 0x1c2   : > { %v6421_v40 = vpop.f32.mrf.mxu0  ;;  %v6423_v0 = vpop.f32.mrf.mxu1 }
 0x1c4   : > { %v6425_v44 = vpop.f32.mrf.mxu0  ;;  %v6427_v3 = vpop.f32.mrf.mxu1 }
 0x1c6   : > { %v6429_v29 = vpop.f32.mrf.mxu0  ;;  %v6431_v31 = vpop.f32.mrf.mxu1 }
 0x1c8   : > { %v6433_v20 = vpop.f32.mrf.mxu0  ;;  %v6435_v57 = vpop.f32.mrf.mxu1 }
 0x1ca   : > { %v6437_v42 = vpop.f32.mrf.mxu0  ;;  %v6439_v53 = vpop.f32.mrf.mxu1 }
 0x1cc   : > { %v6441_v61 = vpop.f32.mrf.mxu0  ;;  %v6443_v12 = vpop.f32.mrf.mxu1 }
 0x1ce   : > { %v6445_v17 = vpop.f32.mrf.mxu0  ;;  %v6447_v41 = vpop.f32.mrf.mxu1 }
 0x1d0   : > { %v6449_v32 = vpop.f32.mrf.mxu0  ;;  %v6451_v36 = vpop.f32.mrf.mxu1 }
 0x1d2   : > { %v6453_v4 = vpop.f32.mrf.mxu0  ;;  %v6455_v23 = vpop.f32.mrf.mxu1 }
 0x1d4   : > { %v6457_v35 = vpop.f32.mrf.mxu0  ;;  %v6459_v19 = vpop.f32.mrf.mxu1 }
 0x1d5   : > { %6829 = vst [vmem:[#allocation22_spill] sm:$0xff] %v6457_v35  ;;  %6830 = vst [vmem:[#allocation23_spill] sm:$0xff] %v6459_v19 }
 0x1d6   : > { %v6461_v7 = vpop.f32.mrf.mxu0  ;;  %v6463_v38 = vpop.f32.mrf.mxu1 }
 0x1d7   : > { %6831 = vst [vmem:[#allocation24_spill] sm:$0xff] %v6461_v7  ;;  %6832 = vst [vmem:[#allocation25_spill] sm:$0xff] %v6463_v38 }
 0x1d8   : > { %v6465_v2 = vpop.f32.mrf.mxu0  ;;  %v6467_v33 = vpop.f32.mrf.mxu1 }
 0x1d9   : > { %6833 = vst [vmem:[#allocation26_spill] sm:$0xff] %v6465_v2  ;;  %6834 = vst [vmem:[#allocation27_spill] sm:$0xff] %v6467_v33 }
 0x1da   : > { %v6469_v45 = vpop.f32.mrf.mxu0  ;;  %v6471_v52 = vpop.f32.mrf.mxu1 }
 0x1db   : > { %6835 = vst [vmem:[#allocation28_spill] sm:$0xff] %v6469_v45  ;;  %6836 = vst [vmem:[#allocation29_spill] sm:$0xff] %v6471_v52 }
 0x1dc   : > { %v6473_v8 = vpop.f32.mrf.mxu0  ;;  %v6475_v47 = vpop.f32.mrf.mxu1 }
 0x1dd   : > { %6837 = vst [vmem:[#allocation30_spill] sm:$0xff] %v6473_v8  ;;  %6838 = vst [vmem:[#allocation31_spill] sm:$0xff] %v6475_v47 }
 0x1de   : > { %v6477_v60 = vpop.f32.mrf.mxu0  ;;  %v6479_v35 = vpop.f32.mrf.mxu1 }
 0x1df   : > { %6839 = vst [vmem:[#allocation32_spill] sm:$0xff] %v6477_v60  ;;  %6840 = vst [vmem:[#allocation33_spill] sm:$0xff] %v6479_v35 }
 0x1e0   : > { %v6481_v19 = vpop.f32.mrf.mxu0  ;;  %v6483_v7 = vpop.f32.mrf.mxu1 }
 0x1e1   : > { %6841 = vst [vmem:[#allocation34_spill] sm:$0xff] %v6481_v19  ;;  %6842 = vst [vmem:[#allocation35_spill] sm:$0xff] %v6483_v7 }
 0x1e2   : > { %v6485_v38 = vpop.f32.mrf.mxu0  ;;  %v6487_v2 = vpop.f32.mrf.mxu1 }
 0x1e3   : > { %6843 = vst [vmem:[#allocation36_spill] sm:$0xff] %v6485_v38  ;;  %6844 = vst [vmem:[#allocation37_spill] sm:$0xff] %v6487_v2  ;;  %v2032_v38 = vadd.f32 %v4526_v9, %v6298_v15  ;;  %v2033_v9 = vadd.f32 %v6399_v49, %v6307_v10 }
 0x1e4   : > { %v6489_v33 = vpop.f32.mrf.mxu0  ;;  %v6491_v45 = vpop.f32.mrf.mxu1 }
 0x1e5   : > { %6845 = vst [vmem:[#allocation38_spill] sm:$0xff] %v6489_v33  ;;  %6846 = vst [vmem:[#allocation39_spill] sm:$0xff] %v6491_v45  ;;  %v2031_v33 = vadd.f32 %v1872_v43, %v6301_v30  ;;  %v2036_v30 = vadd.f32 %v6403_v14, %v6310_v39 }
 0x1e6   : > { %v6493_v52 = vpop.f32.mrf.mxu0  ;;  %v6495_v8 = vpop.f32.mrf.mxu1 }
 0x1e7   : > { %6847 = vst [vmem:[#allocation40_spill] sm:$0xff] %v6493_v52  ;;  %v2338_v15 = vadd.f32 %v6395_v26, %v2031_v33  ;;  %v2035_v33 = vadd.f32 %v6407_v50, %v6313_v5  ;;  %v2343_v39 = vadd.f32 %v6405_v27, %v2036_v30  ;;  %v2037_v5 = vadd.f32 %v6415_v34, %v6319_v1 }
 0x1e8   : > { %v6497_v47 = vpop.f32.mrf.mxu0  ;;  %v6499_v60 = vpop.f32.mrf.mxu1  ;;  %v2040_v30 = vadd.f32 %v6419_v11, %v6322_v59  ;;  %v2039_v11 = vadd.f32 %v6423_v0, %v6325_v51 }
 0x1e9   : > { %6848 = vst [vmem:[#allocation41_spill] sm:$0xff] %v6497_v47  ;;  %6849 = vst [vmem:[#allocation42_spill] sm:$0xff] %v6499_v60  ;;  %v2339_v47 = vadd.f32 %v6393_v54, %v2032_v38  ;;  %v2034_v60 = vadd.f32 %v4529_v13, %v6304_v37  ;;  %v2342_v50 = vadd.f32 %v6409_v28, %v2035_v33 }
 0x1ea   : > { %v6501_v35 = vpop.f32.mrf.mxu0  ;;  %v6503_v19 = vpop.f32.mrf.mxu1  ;;  %v2344_v28 = vadd.f32 %v6417_v56, %v2037_v5  ;;  %v2347_v59 = vadd.f32 %v6421_v40, %v2040_v30 }
 0x1eb   : > { %6850 = vst [vmem:[#allocation43_spill] sm:$0xff] %v6501_v35  ;;  %6851 = vst [vmem:[#allocation44_spill] sm:$0xff] %v6503_v19  ;;  %v2341_v38 = vadd.f32 %v6397_v62, %v2034_v60 }
 0x1ec   : > { %v6506_v7 = vpop.f32.mrf.mxu0  ;;  %v6508_v2 = vpop.f32.mrf.mxu1 }
 0x1ed   : > { %6852 = vst [vmem:[#allocation45_spill] sm:$0xff] %v6506_v7 }
 0x1ee   : > { %v6511_v45 = vpop.f32.mrf.mxu0  ;;  %v6513_v52 = vpop.f32.mrf.mxu1 }
 0x1ef   : > { %6853 = vst [vmem:[#allocation46_spill] sm:$0xff] %v6511_v45  ;;  %6854 = vst [vmem:[#allocation47_spill] sm:$0xff] %v6513_v52 }
 0x1f0   : > { %v6517_v35 = vpop.f32.mrf.mxu0  ;;  %v4686_v19 = vpop.f32.mrf.mxu1 }
 0x1f1   : > { %6855 = vst [vmem:[#allocation48_spill] sm:$0xff] %v6517_v35  ;;  %v2645_v7 = vadd.f32 %v4686_v19, %v2339_v47  ;;  %v2340_v35 = vadd.f32 %v6401_v24, %v2033_v9  ;;  %v2038_v24 = vadd.f32 %v6411_v22, %v6316_v46 }
 0x1f2   : > { %v4766_v43 = vpop.f32.mrf.mxu0  ;;  %v2485_v45 = vpop.f32.mrf.mxu1 }
 0x1f3   : > { %v2951_v54 = vadd.f32 %v4766_v43, %v2645_v7  ;;  %v2644_v37 = vadd.f32 %v2485_v45, %v2338_v15  ;;  %v2345_v1 = vadd.f32 %v6413_v21, %v2038_v24 }
 0x1f4   : > { %v2791_v13 = vpop.f32.mrf.mxu0  ;;  %v4689_v52 = vpop.f32.mrf.mxu1 }
 0x1f5   : > { %2983 = vst [vmem:[%s5126_s15 + $0x8] sm:$0xff] %v2951_v54  ;;  %v2950_v10 = vadd.f32 %v2791_v13, %v2644_v37  ;;  %v2647_v47 = vadd.f32 %v4689_v52, %v2341_v38  ;;  %v3052_v19 = vmul.f32 %v2951_v54, %v2951_v54 }
 0x1f6   : > { %v4769_v26 = vpop.f32.mrf.mxu0  ;;  %v2495_v49 = vpop.f32.mrf.mxu1 }
 0x1f7   : > { %2982 = vst [vmem:[%s5126_s15] sm:$0xff] %v2950_v10  ;;  %v3014_v60 = vadd.f32 %v2951_v54, %v2950_v10  ;;  %v3051_v45 = vmul.f32 %v2950_v10, %v2950_v10  ;;  %v2953_v7 = vadd.f32 %v4769_v26, %v2647_v47  ;;  %v2646_v62 = vadd.f32 %v2495_v49, %v2340_v35 }
 0x1f8   : > { %v2801_v14 = vpop.f32.mrf.mxu0  ;;  %v4692_v52 = vpop.f32.mrf.mxu1 }
 0x1f9   : > { %v3083_v27 = vadd.f32 %v3052_v19, %v3051_v45  ;;  %2985 = vst [vmem:[%s5126_s15 + $0x18] sm:$0xff] %v2953_v7  ;;  %v2952_v15 = vadd.f32 %v2801_v14, %v2646_v62  ;;  %v2649_v9 = vadd.f32 %v4692_v52, %v2343_v39  ;;  %v3054_v13 = vmul.f32 %v2953_v7, %v2953_v7 }
 0x1fa   : > { %v4772_v43 = vpop.f32.mrf.mxu0  ;;  %v2505_v35 = vpop.f32.mrf.mxu1  ;;  %v2042_v39 = vadd.f32 %v6427_v3, %v6328_v25  ;;  %v2346_v14 = vadd.f32 %v6425_v44, %v2039_v11 }
 0x1fb   : > { %2984 = vst [vmem:[%s5126_s15 + $0x10] sm:$0xff] %v2952_v15  ;;  %v3015_v38 = vadd.f32 %v3014_v60, %v2952_v15  ;;  %v3053_v46 = vmul.f32 %v2952_v15, %v2952_v15  ;;  %v2955_v22 = vadd.f32 %v4772_v43, %v2649_v9  ;;  %v2648_v54 = vadd.f32 %v2505_v35, %v2342_v50 }
 0x1fc   : > { %v2811_v34 = vpop.f32.mrf.mxu0  ;;  %v4695_v37 = vpop.f32.mrf.mxu1  ;;  %v2349_v52 = vadd.f32 %v6429_v29, %v2042_v39  ;;  %v2044_v50 = vadd.f32 %v6435_v57, %v6334_v6  ;;  %v2043_v35 = vadd.f32 %v6439_v53, %v6337_v58 }
 0x1fd   : > { %v3084_v33 = vadd.f32 %v3083_v27, %v3053_v46  ;;  %2987 = vst [vmem:[%s5126_s15 + $0x28] sm:$0xff] %v2955_v22  ;;  %v2954_v10 = vadd.f32 %v2811_v34, %v2648_v54  ;;  %v3016_v47 = vadd.f32 %v3015_v38, %v2953_v7  ;;  %v2651_v19 = vadd.f32 %v4695_v37, %v2345_v1 }
 0x1fe   : > { %v4775_v26 = vpop.f32.mrf.mxu0  ;;  %v2515_v21 = vpop.f32.mrf.mxu1  ;;  %v2041_v7 = vadd.f32 %v6431_v31, %v6331_v16  ;;  %v3056_v40 = vmul.f32 %v2955_v22, %v2955_v22  ;;  %v2351_v54 = vadd.f32 %v6437_v42, %v2044_v50  ;;  %v2045_v42 = vadd.f32 %v6447_v41, %v6343_v18 }
 0x1ff   : > { %2986 = vst [vmem:[%s5126_s15 + $0x20] sm:$0xff] %v2954_v10  ;;  %v3017_v56 = vadd.f32 %v3016_v47, %v2954_v10  ;;  %v3055_v49 = vmul.f32 %v2954_v10, %v2954_v10  ;;  %v3085_v60 = vadd.f32 %v3084_v33, %v3054_v13  ;;  %v2650_v45 = vadd.f32 %v2515_v21, %v2344_v28 }
 0x200   : > { %v2957_v62 = vadd.f32 %v4775_v26, %v2651_v19  ;;  %v2821_v24 = vpop.f32.mrf.mxu0  ;;  %v4698_v51 = vpop.f32.mrf.mxu1  ;;  %v2348_v43 = vadd.f32 %v6433_v20, %v2041_v7  ;;  %v2046_v20 = vadd.f32 %v6443_v12, %v6340_v55  ;;  %v2048_v55 = vadd.f32 %v6451_v36, %v6346_v63 }
 0x201   : > { %v3086_v0 = vadd.f32 %v3085_v60, %v3055_v49  ;;  %v2956_v5 = vadd.f32 %v2821_v24, %v2650_v45  ;;  %v3018_v25 = vadd.f32 %v3017_v56, %v2955_v22  ;;  %v2653_v3 = vadd.f32 %v4698_v51, %v2347_v59 }
 0x202   : > { %2989 = vst [vmem:[%s5126_s15 + $0x38] sm:$0xff] %v2957_v62  ;;  %v4778_v27 = vpop.f32.mrf.mxu0  ;;  %v2525_v15 = vpop.f32.mrf.mxu1  ;;  %v3058_v46 = vmul.f32 %v2957_v62, %v2957_v62  ;;  %v2350_v59 = vadd.f32 %v6441_v61, %v2043_v35  ;;  %v2353_v49 = vadd.f32 %v6445_v17, %v2046_v20  ;;  %v2047_v63 = vadd.f32 %v6455_v23, %v6349_v48 }
 0x203   : > { %2988 = vst [vmem:[%s5126_s15 + $0x30] sm:$0xff] %v2956_v5  ;;  %v3019_v16 = vadd.f32 %v3018_v25, %v2956_v5  ;;  %v3057_v31 = vmul.f32 %v2956_v5, %v2956_v5  ;;  %v3087_v9 = vadd.f32 %v3086_v0, %v3056_v40  ;;  %v2959_v30 = vadd.f32 %v4778_v27, %v2653_v3 }
 0x204   : > { %v2652_v44 = vadd.f32 %v2525_v15, %v2346_v14  ;;  %v2831_v29 = vpop.f32.mrf.mxu0  ;;  %v4701_v38 = vpop.f32.mrf.mxu1  ;;  %v2355_v51 = vadd.f32 %v6453_v4, %v2048_v55  ;;  %v6856_v14 = vld [vmem:[#allocation8_spill] sm:$0xff] }
 0x205   : > { %v3088_v6 = vadd.f32 %v3087_v9, %v3057_v31  ;;  %2991 = vst [vmem:[%s5126_s15 + $0x48] sm:$0xff] %v2959_v30  ;;  %v3020_v57 = vadd.f32 %v3019_v16, %v2957_v62  ;;  %v2655_v22 = vadd.f32 %v4701_v38, %v2349_v52  ;;  %v3060_v12 = vmul.f32 %v2959_v30, %v2959_v30  ;;  %v6857_v52 = vld [vmem:[#allocation23_spill] sm:$0xff]  ;;  %v6858_v9 = vld [vmem:[#allocation22_spill] sm:$0xff] }
 0x206   : > { %v2958_v1 = vadd.f32 %v2831_v29, %v2652_v44  ;;  %v4781_v28 = vpop.f32.mrf.mxu0  ;;  %v2535_v34 = vpop.f32.mrf.mxu1  ;;  %v2352_v62 = vadd.f32 %v6449_v32, %v2045_v42  ;;  %v2050_v50 = vadd.f32 %v6857_v52, %v6856_v14  ;;  %v2354_v4 = vadd.f32 %v6858_v9, %v2047_v63  ;;  %v6861_v38 = vld [vmem:[#allocation10_spill] sm:$0xff] }
 0x207   : > { %v3089_v37 = vadd.f32 %v3088_v6, %v3058_v46  ;;  %v2961_v58 = vadd.f32 %v4781_v28, %v2655_v22  ;;  %v2654_v53 = vadd.f32 %v2535_v34, %v2348_v43  ;;  %v6860_v43 = vld [vmem:[#allocation25_spill] sm:$0xff]  ;;  %v6862_v46 = vld [vmem:[#allocation27_spill] sm:$0xff]  ;;  %v6863_v34 = vld [vmem:[#allocation24_spill] sm:$0xff] }
 0x208   : > { %2990 = vst [vmem:[%s5126_s15 + $0x40] sm:$0xff] %v2958_v1  ;;  %v3021_v13 = vadd.f32 %v3020_v57, %v2958_v1  ;;  %v3059_v33 = vmul.f32 %v2958_v1, %v2958_v1  ;;  %v2841_v10 = vpop.f32.mrf.mxu0  ;;  %v4704_v47 = vpop.f32.mrf.mxu1  ;;  %v2052_v6 = vadd.f32 %v6862_v46, %v6861_v38  ;;  %v2357_v20 = vadd.f32 %v6863_v34, %v2050_v50 }
 0x209   : > { %2993 = vst [vmem:[%s5126_s15 + $0x58] sm:$0xff] %v2961_v58  ;;  %v2960_v11 = vadd.f32 %v2841_v10, %v2654_v53  ;;  %v2657_v39 = vadd.f32 %v4704_v47, %v2351_v54  ;;  %v3062_v17 = vmul.f32 %v2961_v58, %v2961_v58 }
 0x20a   : > { %v3090_v19 = vadd.f32 %v3089_v37, %v3059_v33  ;;  %v3022_v26 = vadd.f32 %v3021_v13, %v2959_v30  ;;  %v4784_v21 = vpop.f32.mrf.mxu0  ;;  %v2545_v56 = vpop.f32.mrf.mxu1  ;;  %v6859_v30 = vld [vmem:[#allocation9_spill] sm:$0xff] }
 0x20b   : > { %2992 = vst [vmem:[%s5126_s15 + $0x50] sm:$0xff] %v2960_v11  ;;  %v3061_v60 = vmul.f32 %v2960_v11, %v2960_v11  ;;  %v2963_v61 = vadd.f32 %v4784_v21, %v2657_v39  ;;  %v2656_v45 = vadd.f32 %v2545_v56, %v2350_v59  ;;  %v2049_v35 = vadd.f32 %v6860_v43, %v6859_v30  ;;  %v6864_v59 = vld [vmem:[#allocation26_spill] sm:$0xff]  ;;  %v6866_v39 = vld [vmem:[#allocation29_spill] sm:$0xff] }
 0x20c   : > { %v3023_v7 = vadd.f32 %v3022_v26, %v2960_v11  ;;  %v3091_v18 = vadd.f32 %v3090_v19, %v3060_v12  ;;  %v2851_v41 = vpop.f32.mrf.mxu0  ;;  %v4707_v40 = vpop.f32.mrf.mxu1  ;;  %v6865_v11 = vld [vmem:[#allocation11_spill] sm:$0xff]  ;;  %v6867_v26 = vld [vmem:[#allocation28_spill] sm:$0xff] }
 0x20d   : > { %2995 = vst [vmem:[%s5126_s15 + $0x68] sm:$0xff] %v2963_v61  ;;  %v2962_v36 = vadd.f32 %v2851_v41, %v2656_v45  ;;  %v2659_v24 = vadd.f32 %v4707_v40, %v2353_v49  ;;  %v3064_v57 = vmul.f32 %v2963_v61, %v2963_v61  ;;  %v2356_v42 = vadd.f32 %v6864_v59, %v2049_v35  ;;  %v6880_v59 = vld [vmem:[#allocation16_spill] sm:$0xff] }
 0x20e   : > { %v3092_v0 = vadd.f32 %v3091_v18, %v3061_v60  ;;  %v3024_v5 = vadd.f32 %v3023_v7, %v2961_v58  ;;  %v4787_v25 = vpop.f32.mrf.mxu0  ;;  %v2555_v3 = vpop.f32.mrf.mxu1  ;;  %v2051_v55 = vadd.f32 %v6866_v39, %v6865_v11  ;;  %v2359_v21 = vadd.f32 %v6867_v26, %v2052_v6  ;;  %v6868_v7 = vld [vmem:[#allocation12_spill] sm:$0xff]  ;;  %v6869_v18 = vld [vmem:[#allocation31_spill] sm:$0xff] }
 0x20f   : > { %2994 = vst [vmem:[%s5126_s15 + $0x60] sm:$0xff] %v2962_v36  ;;  %v3063_v27 = vmul.f32 %v2962_v36, %v2962_v36  ;;  %v2965_v32 = vadd.f32 %v4787_v25, %v2659_v24  ;;  %v2658_v15 = vadd.f32 %v2555_v3, %v2352_v62  ;;  %v2054_v41 = vadd.f32 %v6869_v18, %v6868_v7  ;;  %v6871_v25 = vld [vmem:[#allocation13_spill] sm:$0xff] }
 0x210   : > { %v3025_v16 = vadd.f32 %v3024_v5, %v2962_v36  ;;  %v3093_v48 = vadd.f32 %v3092_v0, %v3062_v17  ;;  %v2861_v23 = vpop.f32.mrf.mxu0  ;;  %v4710_v31 = vpop.f32.mrf.mxu1  ;;  %v6870_v0 = vld [vmem:[#allocation30_spill] sm:$0xff]  ;;  %v6872_v3 = vld [vmem:[#allocation33_spill] sm:$0xff] }
 0x211   : > { %2997 = vst [vmem:[%s5126_s15 + $0x78] sm:$0xff] %v2965_v32  ;;  %v2964_v44 = vadd.f32 %v2861_v23, %v2658_v15  ;;  %v2661_v29 = vadd.f32 %v4710_v31, %v2355_v51  ;;  %v3066_v56 = vmul.f32 %v2965_v32, %v2965_v32  ;;  %v2358_v5 = vadd.f32 %v6870_v0, %v2051_v55  ;;  %v6886_v0 = vld [vmem:[#allocation40_spill] sm:$0xff] }
 0x212   : > { %v3094_v22 = vadd.f32 %v3093_v48, %v3063_v27  ;;  %v3026_v54 = vadd.f32 %v3025_v16, %v2963_v61  ;;  %v4790_v1 = vpop.f32.mrf.mxu0  ;;  %v2565_v28 = vpop.f32.mrf.mxu1  ;;  %v2053_v14 = vadd.f32 %v6872_v3, %v6871_v25  ;;  %v6873_v27 = vld [vmem:[#allocation14_spill] sm:$0xff] }
 0x213   : > { %2996 = vst [vmem:[%s5126_s15 + $0x70] sm:$0xff] %v2964_v44  ;;  %v3065_v37 = vmul.f32 %v2964_v44, %v2964_v44  ;;  %v2967_v58 = vadd.f32 %v4790_v1, %v2661_v29  ;;  %v2660_v53 = vadd.f32 %v2565_v28, %v2354_v4  ;;  %v6875_v4 = vld [vmem:[#allocation32_spill] sm:$0xff]  ;;  %v6878_v1 = vld [vmem:[#allocation37_spill] sm:$0xff] }
 0x214   : > { %v3027_v13 = vadd.f32 %v3026_v54, %v2964_v44  ;;  %v3095_v33 = vadd.f32 %v3094_v22, %v3064_v57  ;;  %v2871_v10 = vpop.f32.mrf.mxu0  ;;  %v4713_v47 = vpop.f32.mrf.mxu1  ;;  %v2361_v30 = vadd.f32 %v6875_v4, %v2054_v41  ;;  %v6876_v57 = vld [vmem:[#allocation34_spill] sm:$0xff]  ;;  %v6877_v54 = vld [vmem:[#allocation15_spill] sm:$0xff] }
 0x215   : > { %2999 = vst [vmem:[%s5126_s15 + $0x88] sm:$0xff] %v2967_v58  ;;  %v2966_v12 = vadd.f32 %v2871_v10, %v2660_v53  ;;  %v2663_v19 = vadd.f32 %v4713_v47, %v2357_v20  ;;  %v3068_v16 = vmul.f32 %v2967_v58, %v2967_v58  ;;  %v2360_v22 = vadd.f32 %v6876_v57, %v2053_v14  ;;  %v6884_v41 = vld [vmem:[#allocation18_spill] sm:$0xff]  ;;  %v6890_v4 = vld [vmem:[#allocation43_spill] sm:$0xff] }
 0x216   : > { %v3096_v49 = vadd.f32 %v3095_v33, %v3065_v37  ;;  %v3028_v60 = vadd.f32 %v3027_v13, %v2965_v32  ;;  %v4793_v61 = vpop.f32.mrf.mxu0  ;;  %v2575_v45 = vpop.f32.mrf.mxu1  ;;  %v6874_v32 = vld [vmem:[#allocation35_spill] sm:$0xff]  ;;  %v2055_v28 = vadd.f32 %v6878_v1, %v6877_v54  ;;  %v6879_v37 = vld [vmem:[#allocation36_spill] sm:$0xff] }
 0x217   : > { %2998 = vst [vmem:[%s5126_s15 + $0x80] sm:$0xff] %v2966_v12  ;;  %v3067_v40 = vmul.f32 %v2966_v12, %v2966_v12  ;;  %v2969_v62 = vadd.f32 %v4793_v61, %v2663_v19  ;;  %v2662_v63 = vadd.f32 %v2575_v45, %v2356_v42  ;;  %v2056_v15 = vadd.f32 %v6874_v32, %v6873_v27  ;;  %v6881_v42 = vld [vmem:[#allocation39_spill] sm:$0xff]  ;;  %v6883_v61 = vld [vmem:[#allocation17_spill] sm:$0xff] }
 0x218   : > { %v3029_v36 = vadd.f32 %v3028_v60, %v2966_v12  ;;  %v3097_v24 = vadd.f32 %v3096_v49, %v3066_v56  ;;  %v2881_v51 = vpop.f32.mrf.mxu0  ;;  %v4716_v17 = vpop.f32.mrf.mxu1  ;;  %v2058_v11 = vadd.f32 %v6881_v42, %v6880_v59  ;;  %v6882_v49 = vld [vmem:[#allocation38_spill] sm:$0xff]  ;;  %v2057_v45 = vadd.f32 %v6495_v8, %v6883_v61  ;;  %v6887_v32 = vld [vmem:[#allocation41_spill] sm:$0xff] }
 0x219   : > { %3001 = vst [vmem:[%s5126_s15 + $0x98] sm:$0xff] %v2969_v62  ;;  %v2968_v52 = vadd.f32 %v2881_v51, %v2662_v63  ;;  %v2665_v50 = vadd.f32 %v4716_v17, %v2359_v21  ;;  %v3070_v53 = vmul.f32 %v2969_v62, %v2969_v62  ;;  %v2362_v60 = vadd.f32 %v6882_v49, %v2055_v28 }
 0x21a   : > { %v3098_v48 = vadd.f32 %v3097_v24, %v3067_v40  ;;  %v3030_v23 = vadd.f32 %v3029_v36, %v2967_v58  ;;  %v4796_v31 = vpop.f32.mrf.mxu0  ;;  %v2585_v9 = vpop.f32.mrf.mxu1  ;;  %v2363_v58 = vadd.f32 %v6879_v37, %v2056_v15  ;;  %v6885_v40 = vld [vmem:[#allocation42_spill] sm:$0xff]  ;;  %v2364_v15 = vadd.f32 %v6887_v32, %v2057_v45  ;;  %v6892_v37 = vld [vmem:[#allocation45_spill] sm:$0xff]  ;;  %v6896_v45 = vld [vmem:[#allocation48_spill] sm:$0xff] }
 0x21b   : > { %3000 = vst [vmem:[%s5126_s15 + $0x90] sm:$0xff] %v2968_v52  ;;  %v3069_v43 = vmul.f32 %v2968_v52, %v2968_v52  ;;  %v2971_v35 = vadd.f32 %v4796_v31, %v2665_v50  ;;  %v2664_v44 = vadd.f32 %v2585_v9, %v2358_v5  ;;  %v2365_v5 = vadd.f32 %v6886_v0, %v2058_v11 }
 0x21c   : > { %v3031_v29 = vadd.f32 %v3030_v23, %v2968_v52  ;;  %v3099_v38 = vadd.f32 %v3098_v48, %v3068_v16  ;;  %v2891_v46 = vpop.f32.mrf.mxu0  ;;  %v4719_v6 = vpop.f32.mrf.mxu1  ;;  %v6888_v16 = vld [vmem:[#allocation19_spill] sm:$0xff]  ;;  %v6889_v48 = vld [vmem:[#allocation44_spill] sm:$0xff] }
 0x21d   : > { %3003 = vst [vmem:[%s5126_s15 + $0xa8] sm:$0xff] %v2971_v35  ;;  %v2970_v34 = vadd.f32 %v2891_v46, %v2664_v44  ;;  %v2667_v20 = vadd.f32 %v4719_v6, %v2361_v30  ;;  %v3072_v63 = vmul.f32 %v2971_v35, %v2971_v35  ;;  %v2059_v23 = vadd.f32 %v6889_v48, %v6888_v16  ;;  %v6891_v46 = vld [vmem:[#allocation20_spill] sm:$0xff] }
 0x21e   : > { %v3100_v13 = vadd.f32 %v3099_v38, %v3069_v43  ;;  %v3032_v33 = vadd.f32 %v3031_v29, %v2969_v62  ;;  %v4799_v10 = vpop.f32.mrf.mxu0  ;;  %v2595_v47 = vpop.f32.mrf.mxu1  ;;  %v2060_v62 = vadd.f32 %v6885_v40, %v6884_v41  ;;  %v2062_v6 = vadd.f32 %v6508_v2, %v6891_v46 }
 0x21f   : > { %3002 = vst [vmem:[%s5126_s15 + $0xa0] sm:$0xff] %v2970_v34  ;;  %v3071_v39 = vmul.f32 %v2970_v34, %v2970_v34  ;;  %v2973_v55 = vadd.f32 %v4799_v10, %v2667_v20  ;;  %v2666_v12 = vadd.f32 %v2595_v47, %v2360_v22 }
 0x220   : > { %v3033_v19 = vadd.f32 %v3032_v33, %v2970_v34  ;;  %v3101_v26 = vadd.f32 %v3100_v13, %v3070_v53  ;;  %v2901_v21 = vpop.f32.mrf.mxu0  ;;  %v4722_v56 = vpop.f32.mrf.mxu1  ;;  %v2367_v30 = vadd.f32 %v6890_v4, %v2060_v62  ;;  %v6893_v53 = vld [vmem:[#allocation21_spill] sm:$0xff]  ;;  %v6894_v13 = vld [vmem:[#allocation47_spill] sm:$0xff] }
 0x221   : > { %3005 = vst [vmem:[%s5126_s15 + $0xb8] sm:$0xff] %v2973_v55  ;;  %v2972_v7 = vadd.f32 %v2901_v21, %v2666_v12  ;;  %v2669_v18 = vadd.f32 %v4722_v56, %v2363_v58  ;;  %v3074_v43 = vmul.f32 %v2973_v55, %v2973_v55  ;;  %v2366_v58 = vadd.f32 %v6892_v37, %v2059_v23 }
 0x222   : > { %v3102_v36 = vadd.f32 %v3101_v26, %v3071_v39  ;;  %v3034_v24 = vadd.f32 %v3033_v19, %v2971_v35  ;;  %v4802_v51 = vpop.f32.mrf.mxu0  ;;  %v2605_v17 = vpop.f32.mrf.mxu1  ;;  %v2061_v33 = vadd.f32 %v6894_v13, %v6893_v53 }
 0x223   : > { %3004 = vst [vmem:[%s5126_s15 + $0xb0] sm:$0xff] %v2972_v7  ;;  %v3073_v25 = vmul.f32 %v2972_v7, %v2972_v7  ;;  %v2975_v3 = vadd.f32 %v4802_v51, %v2669_v18  ;;  %v2668_v14 = vadd.f32 %v2605_v17, %v2362_v60 }
 0x224   : > { %v3035_v52 = vadd.f32 %v3034_v24, %v2972_v7  ;;  %v3103_v8 = vadd.f32 %v3102_v36, %v3072_v63  ;;  %v2911_v50 = vpop.f32.mrf.mxu0  ;;  %v4725_v27 = vpop.f32.mrf.mxu1  ;;  %v2368_v7 = vadd.f32 %v6896_v45, %v2061_v33 }
 0x225   : > { %3007 = vst [vmem:[%s5126_s15 + $0xc8] sm:$0xff] %v2975_v3  ;;  %v2974_v31 = vadd.f32 %v2911_v50, %v2668_v14  ;;  %v2671_v9 = vadd.f32 %v4725_v27, %v2365_v5  ;;  %v3076_v59 = vmul.f32 %v2975_v3, %v2975_v3 }
 0x226   : > { %v3104_v35 = vadd.f32 %v3103_v8, %v3073_v25  ;;  %v3036_v44 = vadd.f32 %v3035_v52, %v2973_v55  ;;  %v4805_v29 = vpop.f32.mrf.mxu0  ;;  %v2615_v38 = vpop.f32.mrf.mxu1  ;;  %v6895_v55 = vld [vmem:[#allocation46_spill] sm:$0xff] }
 0x227   : > { %3006 = vst [vmem:[%s5126_s15 + $0xc0] sm:$0xff] %v2974_v31  ;;  %v3075_v57 = vmul.f32 %v2974_v31, %v2974_v31  ;;  %v2977_v22 = vadd.f32 %v4805_v29, %v2671_v9  ;;  %v2670_v54 = vadd.f32 %v2615_v38, %v2364_v15  ;;  %v2369_v12 = vadd.f32 %v6895_v55, %v2062_v6 }
 0x228   : > { %v3037_v1 = vadd.f32 %v3036_v44, %v2974_v31  ;;  %v3105_v28 = vadd.f32 %v3104_v35, %v3074_v43  ;;  %v2921_v34 = vpop.f32.mrf.mxu0  ;;  %v4728_v20 = vpop.f32.mrf.mxu1 }
 0x229   : > { %3009 = vst [vmem:[%s5126_s15 + $0xd8] sm:$0xff] %v2977_v22  ;;  %v2976_v10 = vadd.f32 %v2921_v34, %v2670_v54  ;;  %v2673_v47 = vadd.f32 %v4728_v20, %v2367_v30  ;;  %v3078_v40 = vmul.f32 %v2977_v22, %v2977_v22  ;;  %v3120_v54 = vld [vmem:[#allocation4] sm:$0x3] }
 0x22a   : > { %v3106_v2 = vadd.f32 %v3105_v28, %v3075_v57  ;;  %v3038_v42 = vadd.f32 %v3037_v1, %v2975_v3  ;;  %v4808_v11 = vpop.f32.mrf.mxu0  ;;  %v2625_v39 = vpop.f32.mrf.mxu1 }
 0x22b   : > { %3008 = vst [vmem:[%s5126_s15 + $0xd0] sm:$0xff] %v2976_v10  ;;  %v3077_v19 = vmul.f32 %v2976_v10, %v2976_v10  ;;  %v2979_v26 = vadd.f32 %v4808_v11, %v2673_v47  ;;  %v2672_v21 = vadd.f32 %v2625_v39, %v2366_v58 }
 0x22c   : > { %v3039_v56 = vadd.f32 %v3038_v42, %v2976_v10  ;;  %v3107_v49 = vadd.f32 %v3106_v2, %v3076_v59  ;;  %v2931_v60 = vpop.f32.mrf.mxu0  ;;  %v4731_v61 = vpop.f32.mrf.mxu1 }
 0x22d   : > { %3011 = vst [vmem:[%s5126_s15 + $0xe8] sm:$0xff] %v2979_v26  ;;  %v2978_v18 = vadd.f32 %v2931_v60, %v2672_v21  ;;  %v2675_v41 = vadd.f32 %v4731_v61, %v2369_v12  ;;  %v3080_v52 = vmul.f32 %v2979_v26, %v2979_v26 }
 0x22e   : > { %v3108_v62 = vadd.f32 %v3107_v49, %v3077_v19  ;;  %v3040_v63 = vadd.f32 %v3039_v56, %v2977_v22  ;;  %v4811_v36 = vpop.f32.mrf.mxu0  ;;  %v2635_v24 = vpop.f32.mrf.mxu1 }
 0x22f   : > { %3010 = vst [vmem:[%s5126_s15 + $0xe0] sm:$0xff] %v2978_v18  ;;  %v3079_v51 = vmul.f32 %v2978_v18, %v2978_v18  ;;  %v2981_v17 = vadd.f32 %v4811_v36, %v2675_v41  ;;  %v2674_v0 = vadd.f32 %v2635_v24, %v2368_v7 }
 0x230   : > { %v3041_v5 = vadd.f32 %v3040_v63, %v2978_v18  ;;  %v3109_v25 = vadd.f32 %v3108_v62, %v3078_v40  ;;  %v2941_v3 = vpop.f32.mrf.mxu0 }
 0x231   : > { %3013 = vst [vmem:[%s5126_s15 + $0xf8] sm:$0xff] %v2981_v17  ;;  %v2980_v14 = vadd.f32 %v2941_v3, %v2674_v0  ;;  %v3082_v16 = vmul.f32 %v2981_v17, %v2981_v17 }
 0x232   : > { %v3110_v8 = vadd.f32 %v3109_v25, %v3079_v51  ;;  %v3042_v50 = vadd.f32 %v3041_v5, %v2979_v26 }
 0x233   : > { %3012 = vst [vmem:[%s5126_s15 + $0xf0] sm:$0xff] %v2980_v14  ;;  %v3081_v27 = vmul.f32 %v2980_v14, %v2980_v14 }
 0x234   : > { %v3043_v32 = vadd.f32 %v3042_v50, %v2980_v14  ;;  %v3111_v15 = vadd.f32 %v3110_v8, %v3080_v52 }
 0x236   : > { %v3044_v48 = vadd.f32 %v3043_v32, %v2981_v17  ;;  %v3112_v23 = vadd.f32 %v3111_v15, %v3081_v27 }
 0x238   : > { %v3045_v31 = vrot.slane %v3044_v48, 4  ;;  %v3113_v9 = vadd.f32 %v3112_v23, %v3082_v16 }
 0x23a   : > { %v3046_v4 = vadd.f32 %v3045_v31, %v3044_v48  ;;  %v3114_v30 = vrot.slane %v3113_v9, 4 }
 0x23c   : > { %v3047_v43 = vrot.slane %v3046_v4, 2  ;;  %v3115_v35 = vadd.f32 %v3114_v30, %v3113_v9 }
 0x23e   : > { %v3048_v44 = vadd.f32 %v3047_v43, %v3046_v4  ;;  %v3116_v29 = vrot.slane %v3115_v35, 2 }
 0x240   : > { %v3049_v38 = vrot.slane %v3048_v44, 1  ;;  %v3117_v46 = vadd.f32 %v3116_v29, %v3115_v35 }
 0x242   : > { %v3118_v6 = vrot.slane %v3117_v46, 1  ;;  %v3050_v57 = vadd.f32 %v3049_v38, %v3048_v44 }
 0x244   : > { %v3119_v22 = vadd.f32 %v3118_v6, %v3117_v46 }
 0x245   : > { %3128 = sbr.rel (%p3651_p13) target bundleno = 633 (0x279), region = 44 }
 0x246   : > { %v3122_v1 = vsel %vm3121_vm0, %v3050_v57, %v3119_v22 }
 0x247   : > { %v3123_v28 = vadd.f32 %v3122_v1, %v3120_v54 }
 0x249   : > { %3124 = vst [vmem:[#allocation4] sm:$0x3] %v3123_v28 }
 0x24a   : > { %v5020_v33 = vmov 1966171168   ;;  %v3143_v47 = vlaneseq  ;;  %v3136_v12 = vld [vmem:[%s6718_s2] sm:$0x1] }
 0x24b   : > { %v3141_v10 = vunpack.c.l.s4 %v5020_v33  ;;  %v3157_v21 = vld [vmem:[%s6719_s3] sm:$0x1] }
 0x24c   : > { %v3144_v2 = vshrl.u32 %v3143_v47, 7 }
 0x24d   : > { %v3142_v59 = vunpack.c.0.s8 %v3141_v10 }
 0x24e   : > { %v3163_v49 = vsub.s32 0, %v3144_v2 }
 0x24f   : > { %v3145_v42 = vsub.s32 %v3142_v59, %v3144_v2 }
 0x250   : > { %v3129_v34 = vld [vmem:[#allocation4] sm:$0x3] }
 0x251   : > { %v3130_v20 = vmul.f32 0.001953125, %v3129_v34 }
 0x253   : > { %v3131_v37 = vmul.f32 %v3130_v20, %v3130_v20 }
 0x255   : > { %v3133_v58 = vrot.slane %v3131_v37, 7 }
 0x257   : > { %v3135_v53 = vsub.f32 %v3130_v20, %v3133_v58 }
 0x259   : > { %v3137_v13 = vadd.f32 1e-05, %v3135_v53 }
 0x25b   : > { %4911 = vrsqrt.f32 %v3137_v13 }
 0x268   : > { %v4912_v11 = vpop.eup %4911 }
 0x269   : > { %v3146_v39 = vrot.slane %v4912_v11, %v3145_v42 }
 0x26b   : > { %v3147_v55 = vcombine.high %v3146_v39, %v3146_v39 }
 0x26d   : > { %v3154_v19 = vrot.slane %v3147_v55, %v3145_v42 }
 0x26f   : > { %v3156_v26 = vmul.f32 %v3154_v19, %v3136_v12 }
 0x271   : > { %v3158_v56 = vmul.f32 %v3156_v26, %v3130_v20 }
 0x273   : > { %v3159_v60 = vsub.f32 %v3157_v21, %v3158_v56 }
 0x275   : > { %v3164_v61 = vrot.slane %v3159_v60, %v3163_v49 }
 0x277   : > { %v3166_v45 = vsel %vm3121_vm0, %v3156_v26, %v3164_v61 }
 0x278   : > { %3167 = vst [vmem:[#allocation4] sm:$0x3] %v3166_v45 }
 0x279 PF: > { %s3659_s30 = sshll.u32 %s5009_s21, 12  ;;  %s3183_s12 = sshll.u32 %s5126_s15, 4  ;;  %s6656_s12 = int_to_ptr.vmem [resolvable:$true] %s3183_s12 }
 0x27a   : > { %s6653_s11 = scalar_lea.hbm %s6720_s4, %s3659_s30  ;;  %s6660_s13 = scalar_lea.sflag [#allocation3], %s266_s8 }
 0x27b   : > { %s4913_s16 = scalar_lea.vmem %s6656_s12, 4096  ;;  %s5021_s21 = smov [#allocation2]  }
 0x27c   : > { %p4914_p0 = scmp.ne.s32.totalorder %s6656_s12, %s4913_s16  ;;  %s4917_s17 = sshll.u32 %s5021_s21, 4  ;;  %s4918_s17 = int_to_ptr.vmem [resolvable:$false] %s4917_s17 }
 0x27d   : > { %s4919_s14 = scalar_lea.vmem %s4918_s17, 8192  ;;  %p4920_p5 = scmp.lt.s32.totalorder %s6656_s12, %s4918_s17 }
 0x27e   : > { %p4915_p1 = pnand %p4914_p0, %p5101_p4  ;;  %p4921_p6 = scmp.lt.s32.totalorder %s4919_s14, %s4913_s16 }
 0x280   : > { %p4916_p3 = pneg %p4915_p1  ;;  %p4922_p7 = por %p4921_p6, %p4920_p5 }
 0x282   : > { %p4923_p9 = pnand %p4922_p7, %p4916_p3 }
 0x284   : > { %4926 = shalt.err (!%p4923_p9)
}
 0x285   : > { %s4927_s8 = scalar_lea.hbm %s6653_s11, 4096  ;;  %s4931_s25 = scalar_lea.hbm %s6720_s4, 8192 }
 0x286   : > { %p4928_p10 = scmp.ne.s32.totalorder %s6653_s11, %s4927_s8  ;;  %p4932_p13 = scmp.lt.s32.totalorder %s6653_s11, %s6720_s4 }
 0x287   : > { %p4933_p0 = scmp.lt.s32.totalorder %s4931_s25, %s4927_s8 }
 0x288   : > { %p4929_p11 = pnand %p4928_p10, %p5101_p4 }
 0x289   : > { %p4934_p1 = por %p4933_p0, %p4932_p13 }
 0x28a   : > { %p4930_p12 = pneg %p4929_p11 }
 0x28c   : > { %p4935_p3 = pnand %p4934_p1, %p4930_p12 }
 0x28e   : > { %4938 = shalt.err (!%p4935_p3)
}
 0x28f   : > { %s5022_s9 = smov 128   ;;  %s5023_s10 = smov 8  }
 0x290   : > { %4845 = dma.vmem_to_hbm [thread:$0]  (%p5101_p4), %s6656_s12, 4096, %s6653_s11, %s6660_s13, %s5022_s9, %s5022_s9, %s5023_s10  }
 0x291   : > { %s5024_s16 = smov [#allocation4]  }
 0x292   : > { %s3199_s21 = sshll.u32 %s5024_s16, 4  ;;  %s3200_s21 = int_to_ptr.vmem [resolvable:$true] %s3199_s21 }
 0x293   : > { %s4939_s17 = scalar_lea.vmem %s3200_s21, 32  ;;  %p4946_p9 = scmp.lt.s32.totalorder %s3200_s21, %s3200_s21 }
 0x294   : > { %p4940_p5 = scmp.ne.s32.totalorder %s3200_s21, %s4939_s17  ;;  %p4947_p10 = scmp.lt.s32.totalorder %s4939_s17, %s4939_s17 }
 0x296   : > { %p4941_p6 = pnand %p4940_p5, %p5091_p2  ;;  %p4948_p11 = por %p4947_p10, %p4946_p9 }
 0x298   : > { %p4942_p7 = pneg %p4941_p6 }
 0x29a   : > { %p4949_p12 = pnand %p4948_p11, %p4942_p7 }
 0x29c   : > { %4952 = shalt.err (!%p4949_p12)
}
 0x29d   : > { %4847 = dma.vmem_to_hbm [thread:$0]  (%p5091_p2), %s3200_s21, 32, %s6721_s5, [#allocation5]  }
 0x29e   : > { %4988 = dma.done.wait (%p5091_p2), [#allocation5], 32  }
 0x29f   : > { %4990 = vsyncadd (%p5091_p2), [#allocation5], 4294967264 }
 0x2a0 PF: > { %p4857_p4 = scmp.ge.s32.totalorder %s5017_s23, 2  ;;  %s3215_s29 = sand.u32 1, %s4997_s18  }
 0x2a1   : > { %s3216_s11 = scalar_lea.sflag [#allocation3], %s3215_s29 }
 0x2a2   : > { %p4852_p13 = pnand %p4857_p4, %p5108_p8 }
 0x2a4   : > { %p4853_p0 = pneg %p4852_p13 }
 0x2a6   : > { %4992 = dma.done.wait (%p4853_p0), %s3216_s11, 4096  }
 0x2a7   : > { %4994 = vsyncadd (%p4853_p0), %s3216_s11, 4294963200  ;;  %s20_s23 = sadd.s32 1, %s5017_s23   ;;  %s6897_s18 = smov %s5001_s19 }
 0x2a8   : > { %p17_p1 = scmp.ge.s32.totalorder %s20_s23, 4   ;;  %s6898_s19 = smov %s5005_s20 }
 0x2a9   : > { %s6899_s20 = smov %s5114_s7  ;;  %s6900_s21 = smov %s5013_s22 }
 0x2aa   : > { %s6901_s22 = smov %s6903_s26  ;;  %19 = sbr.rel (!%p17_p1) target bundleno = 5 (0x5), region = 107 }
 0x2af   :  { %3221 = vsyncpa [#allocation3], 1 }
 0x2b0   :  { %3223 = vsyncpa [#allocation3 + $0x1], 1 }
 0x2b1   :  { %3224 = vsyncpa [#allocation5], 1 }

</bundles_post_ra>
